<compile_context>
chip_gen: v5e
topology: v5e:2x2
jax: 0.10.0
libtpu: 0.0.40
codegen_flags: <defaults>
</compile_context>

<pallas_src>
import functools

import jax
import jax.numpy as jnp
from jax import lax
from jax.experimental import pallas as pl
from jax.experimental.pallas import tpu as pltpu

_HIGHEST = lax.Precision.HIGHEST
_VMEM_LIMIT_BYTES = 48 * 1024 * 1024      # above 32 MiB default scoped, below v7x 64 MiB


# ------------------------------------------------------------------ in-kernel helpers ---
def _layernorm_c(x, w, b, eps=1e-5):
    """LayerNorm over the channel axis (axis 0) of x: (C, N). w, b: (C, 1)."""
    mu = jnp.mean(x, axis=0, keepdims=True)
    xc = x - mu
    var = jnp.mean(xc * xc, axis=0, keepdims=True)
    return xc * lax.rsqrt(var + eps) * w + b


def _dwconv3x3(x, w9, masks, W):
    """Depthwise 3x3 conv (zero padding) on x: (C, N), N = flattened rows of width W.

    w9: (C, 9) per-channel taps, tap index = 3*ky + kx.
    masks: (8, N) precomputed f32 validity masks for the 8 off-centre taps (ky, kx order).
    """
    n = x.shape[-1]
    out = x * w9[:, 4:5]                                    # centre tap, always valid
    m = 0
    for ky in range(3):
        for kx in range(3):
            if ky == 1 and kx == 1:
                continue
            off = (ky - 1) * W + (kx - 1)
            shifted = jnp.roll(x, (-off) % n, axis=1)       # static lane rotation (XLU)
            out = out + shifted * masks[m:m + 1, :] * w9[:, 3 * ky + kx:3 * ky + kx + 1]
            m += 1
    return out


def _mm(a, b):
    """f32 MXU matmul, explicit HIGHEST precision (matches the pure-JAX reference)."""
    return jnp.dot(a, b, precision=_HIGHEST, preferred_element_type=jnp.float32)


# --------------------------------------------------------------------------- kernels ---
def _attn_kernel(x_ref, n1w_ref, n1b_ref, qw_ref, kw_ref, vw_ref, qdw_ref, kdw_ref,
                 vdw_ref, tempc_ref, projw_ref, hm_ref, dm_ref, o_ref, *, W):
    x = x_ref[0]                                            # (C, HW) f32
    masks = dm_ref[...]
    y = _layernorm_c(x, n1w_ref[...], n1b_ref[...])

    q = _dwconv3x3(_mm(qw_ref[...], y), qdw_ref[...], masks, W)
    k = _dwconv3x3(_mm(kw_ref[...], y), kdw_ref[...], masks, W)
    v = _dwconv3x3(_mm(vw_ref[...], y), vdw_ref[...], masks, W)

    # F.normalize(dim=-1) per channel row (rsqrt -> EUP, no divides).
    qn = q * lax.rsqrt(jnp.maximum(jnp.sum(q * q, axis=-1, keepdims=True), 1e-24))
    kn = k * lax.rsqrt(jnp.maximum(jnp.sum(k * k, axis=-1, keepdims=True), 1e-24))

    # One full-depth (HW-contraction) gram matmul for all heads at once; the per-head
    # temperature is a per-row scale and the block-diagonal head mask restricts the
    # softmax to each head's d x d block (mathematically identical to per-head softmax).
    logits = lax.dot_general(qn, kn, (((1,), (1,)), ((), ())),
                             precision=_HIGHEST, preferred_element_type=jnp.float32)
    logits = logits * tempc_ref[...]                        # (C, C)
    p = jnp.exp(logits - jnp.max(logits, axis=-1, keepdims=True)) * hm_ref[...]
    p = p / jnp.sum(p, axis=-1, keepdims=True)              # exact divide (softmax denom)

    # Block-diagonal p => p @ v is the per-head (attn @ v) stacked over channels, so the
    # output projection is one (C,C)@(C,HW) matmul.
    out = _mm(p, v)
    o_ref[0] = x + _mm(projw_ref[...], out)


def _ffn_kernel(xh_ref, dm_ref, n2w_ref, n2b_ref, fi1_ref, fi2_ref, fd1_ref, fd2_ref,
                fow_ref, o_ref, *, W, row_tile):
    xh = xh_ref[0, 0]                                       # (C, (row_tile + 2) * W)
    masks = dm_ref[0]
    y = _layernorm_c(xh, n2w_ref[...], n2b_ref[...])
    x1 = _dwconv3x3(_mm(fi1_ref[...], y), fd1_ref[...], masks, W)
    x2 = _dwconv3x3(_mm(fi2_ref[...], y), fd2_ref[...], masks, W)
    # TODO(synk): PyTorch F.gelu defaults to exact (erf) GELU; the tanh approximation is
    # used because erf has no guaranteed Mosaic lowering.
    g = jax.nn.gelu(x1, approximate=True) * x2
    ffn = _mm(fow_ref[...], g)
    o_ref[0] = (xh + ffn)[:, W:(row_tile + 1) * W]          # drop halo rows


# ------------------------------------------------------- wrapper-side precomputation ---
def _tap_masks(row, col, H, W):
    ms = []
    for ky in range(3):
        for kx in range(3):
            if ky == 1 and kx == 1:
                continue
            dy, dx = ky - 1, kx - 1
            ms.append((row + dy >= 0) & (row + dy < H) & (col + dx >= 0) & (col + dx < W))
    return jnp.stack(ms).astype(jnp.float32)                # (8, N)


def _full_image_masks(H, W):
    p = jnp.arange(H * W, dtype=jnp.int32)
    return _tap_masks(p // W, p % W, H, W)                  # (8, H*W)


def _halo_tile_masks(H, W, row_tile):
    T = H // row_tile
    l = jnp.arange((row_tile + 2) * W, dtype=jnp.int32)
    lrow, col = l // W, l % W
    return jnp.stack([_tap_masks(t * row_tile + lrow - 1, col, H, W) for t in range(T)])


def _halo_tiles(x_img, row_tile):
    """(B, C, H, W) -> (B, T, C, (row_tile + 2) * W): row tiles with a 1-row zero halo."""
    B, C, H, W = x_img.shape
    T = H // row_tile
    xp = jnp.pad(x_img, ((0, 0), (0, 0), (1, 1), (0, 0)))
    tiles = [xp[:, :, t * row_tile:t * row_tile + row_tile + 2, :] for t in range(T)]
    return jnp.stack(tiles, axis=1).reshape(B, T, C, (row_tile + 2) * W)


def _prep_weights(params, num_heads):
    C = params["proj_w"].shape[0]
    d = C // num_heads
    hid = params["ffn_out_w"].shape[1]
    f32 = jnp.float32
    qkv_dw = params["qkv_dw"].reshape(3 * C, 9).astype(f32)
    ffn_dw = params["ffn_dw"].reshape(2 * hid, 9).astype(f32)
    return dict(
        n1w=params["norm1_w"].astype(f32).reshape(C, 1),
        n1b=params["norm1_b"].astype(f32).reshape(C, 1),
        n2w=params["norm2_w"].astype(f32).reshape(C, 1),
        n2b=params["norm2_b"].astype(f32).reshape(C, 1),
        # qkv / project_in weights split at trace time (free) so the kernels never slice
        # large activations at sublane-misaligned offsets.
        qw=params["qkv_w"][0:C].astype(f32),
        kw=params["qkv_w"][C:2 * C].astype(f32),
        vw=params["qkv_w"][2 * C:3 * C].astype(f32),
        qdw=qkv_dw[0:C], kdw=qkv_dw[C:2 * C], vdw=qkv_dw[2 * C:3 * C],
        projw=params["proj_w"].astype(f32),
        fi1w=params["ffn_in_w"][0:hid].astype(f32),
        fi2w=params["ffn_in_w"][hid:].astype(f32),
        fd1w=ffn_dw[0:hid], fd2w=ffn_dw[hid:],
        fow=params["ffn_out_w"].astype(f32),
        temp_c=jnp.repeat(params["temperature"].astype(f32), d).reshape(C, 1),
        head_mask=jnp.repeat(jnp.repeat(jnp.eye(num_heads, dtype=f32), d, axis=0),
                             d, axis=1),
    )


def _auto_row_tile(H, W, C, hidden, budget_bytes=8 * 1024 * 1024):
    """Largest divisor of H whose FFN working set fits a small VMEM budget and whose
    output tile stays lane-dense ((row_tile * W) % 128 == 0, or the whole image)."""
    rows_resident = 2 * C + 4 * hidden + 16                 # rough count of live f32 rows
    for th in range(H, 0, -1):
        if H % th:
            continue
        if th != H and (th * W) % 128:
            continue
        if rows_resident * (th + 2) * W * 4 <= budget_bytes:
            return th
    return H


# --------------------------------------------------------------------------- wrapper ---
@functools.partial(jax.jit, static_argnames=("num_heads", "row_tile"))
def transformer_block(x, params, *, num_heads, row_tile=None):
    B, C, H, W = x.shape
    HW = H * W
    if C % num_heads:
        raise ValueError("channels must be divisible by num_heads")
    w = _prep_weights(params, num_heads)
    hid = w["fow"].shape[1]
    x_flat = x.reshape(B, C, HW).astype(jnp.float32)

    # ---------------- attention: x + MHA(LN1(x)), grid over batch -----------------
    # TODO(synk): for very large H*W the gram / apply matmuls should gain a spatial
    # reduction grid axis (two-pass accumulation); channel attention needs full-HW
    # contractions so the image is kept whole per batch element here.
    attn_masks = _full_image_masks(H, W)

    def rep(a):                                             # whole-array weight block
        return pl.BlockSpec(a.shape, lambda b: (0,) * a.ndim)

    x_attn = pl.pallas_call(
        functools.partial(_attn_kernel, W=W),
        out_shape=jax.ShapeDtypeStruct((B, C, HW), jnp.float32),
        grid=(B,),
        in_specs=[
            pl.BlockSpec((1, C, HW), lambda b: (b, 0, 0)),
            rep(w["n1w"]), rep(w["n1b"]),
            rep(w["qw"]), rep(w["kw"]), rep(w["vw"]),
            rep(w["qdw"]), rep(w["kdw"]), rep(w["vdw"]),
            rep(w["temp_c"]), rep(w["projw"]), rep(w["head_mask"]),
            rep(attn_masks),
        ],
        out_specs=pl.BlockSpec((1, C, HW), lambda b: (b, 0, 0)),
        compiler_params=pltpu.CompilerParams(
            dimension_semantics=("parallel",), vmem_limit_bytes=_VMEM_LIMIT_BYTES),
    )(x_flat, w["n1w"], w["n1b"], w["qw"], w["kw"], w["vw"], w["qdw"], w["kdw"],
      w["vdw"], w["temp_c"], w["projw"], w["head_mask"], attn_masks)

    # -------------- GFFN: x + GFFN(LN2(x)), grid over (batch, row tiles) ----------
    if row_tile is None:
        row_tile = _auto_row_tile(H, W, C, hid)
    if H % row_tile:
        raise ValueError(f"row_tile={row_tile} must divide H={H}")
    if row_tile != H and (row_tile * W) % 128:
        raise ValueError(f"row_tile*W={row_tile * W} must be a multiple of 128")
    T = H // row_tile
    LW = (row_tile + 2) * W

    x_halo = _halo_tiles(x_attn.reshape(B, C, H, W), row_tile)     # (B, T, C, LW)
    ffn_masks = _halo_tile_masks(H, W, row_tile)                   # (T, 8, LW)

    def repf(a):
        return pl.BlockSpec(a.shape, lambda b, t: (0,) * a.ndim)

    out = pl.pallas_call(
        functools.partial(_ffn_kernel, W=W, row_tile=row_tile),
        out_shape=jax.ShapeDtypeStruct((B, C, HW), jnp.float32),
        grid=(B, T),
        in_specs=[
            pl.BlockSpec((1, 1, C, LW), lambda b, t: (b, t, 0, 0)),
            pl.BlockSpec((1, 8, LW), lambda b, t: (t, 0, 0)),
            repf(w["n2w"]), repf(w["n2b"]),
            repf(w["fi1w"]), repf(w["fi2w"]),
            repf(w["fd1w"]), repf(w["fd2w"]),
            repf(w["fow"]),
        ],
        out_specs=pl.BlockSpec((1, C, row_tile * W), lambda b, t: (b, 0, t)),
        compiler_params=pltpu.CompilerParams(
            dimension_semantics=("parallel", "parallel"),
            vmem_limit_bytes=_VMEM_LIMIT_BYTES),
    )(x_halo, ffn_masks, w["n2w"], w["n2b"], w["fi1w"], w["fi2w"], w["fd1w"],
      w["fd2w"], w["fow"])

    return out.reshape(B, C, H, W)


# ------------------------------------------------------------------------- reference ---
def transformer_block_reference(x, params, *, num_heads):
    """Pure-JAX reference mirroring the PyTorch module (HIGHEST-precision matmuls)."""
    B, C, H, W = x.shape
    HW = H * W
    d = C // num_heads
    hid = params["ffn_out_w"].shape[1]
    x = x.astype(jnp.float32)

    def layernorm(z, wt, bs):                               # LN over channels, per pixel
        mu = jnp.mean(z, axis=1, keepdims=True)
        zc = z - mu
        var = jnp.mean(zc * zc, axis=1, keepdims=True)
        return (zc * lax.rsqrt(var + 1e-5) * wt[None, :, None, None]
                + bs[None, :, None, None])

    def conv1x1(z, wt):                                     # wt: (co, ci)
        return jnp.einsum("oc,bchw->bohw", wt, z, precision=_HIGHEST)

    def dwconv3x3(z, wt):                                   # wt: (ch, 3, 3), zero padding
        zp = jnp.pad(z, ((0, 0), (0, 0), (1, 1), (1, 1)))
        out = jnp.zeros_like(z)
        for ky in range(3):
            for kx in range(3):
                out = out + zp[:, :, ky:ky + H, kx:kx + W] * wt[None, :, ky, kx, None, None]
        return out

    # x + MHA(LN1(x))
    y = layernorm(x, params["norm1_w"], params["norm1_b"])
    qkv = dwconv3x3(conv1x1(y, params["qkv_w"]), params["qkv_dw"])
    q = qkv[:, 0 * C:1 * C].reshape(B, num_heads, d, HW)
    k = qkv[:, 1 * C:2 * C].reshape(B, num_heads, d, HW)
    v = qkv[:, 2 * C:3 * C].reshape(B, num_heads, d, HW)
    q = q / jnp.maximum(jnp.sqrt(jnp.sum(q * q, axis=-1, keepdims=True)), 1e-12)
    k = k / jnp.maximum(jnp.sqrt(jnp.sum(k * k, axis=-1, keepdims=True)), 1e-12)
    logits = jnp.einsum("bhdn,bhen->bhde", q, k, precision=_HIGHEST)
    logits = logits * params["temperature"][None, :, None, None]
    attn = jax.nn.softmax(logits, axis=-1)
    o = jnp.einsum("bhde,bhen->bhdn", attn, v, precision=_HIGHEST).reshape(B, C, H, W)
    x = x + conv1x1(o, params["proj_w"])

    # x + GFFN(LN2(x))
    y = layernorm(x, params["norm2_w"], params["norm2_b"])
    t = dwconv3x3(conv1x1(y, params["ffn_in_w"]), params["ffn_dw"])
    x1, x2 = t[:, :hid], t[:, hid:]
    g = jax.nn.gelu(x1, approximate=True) * x2              # TODO(synk): erf GELU
    return x + conv1x1(g, params["ffn_out_w"])


# ------------------------------------------------------------------------------- init ---
def init_params(key, channels, num_heads, expansion_factor):
    hidden = int(channels * expansion_factor)
    ks = jax.random.split(key, 11)

    def conv1x1(k, co, ci):        # nn.Conv2d(ci, co, 1, bias=False).weight -> (co, ci)
        return jax.random.normal(k, (co, ci), jnp.float32) / jnp.sqrt(ci)

    def dwconv(k, c):              # nn.Conv2d(c, c, 3, groups=c).weight -> (c, 3, 3)
        return jax.random.normal(k, (c, 3, 3), jnp.float32) / 3.0

    return dict(
        norm1_w=1.0 + 0.1 * jax.random.normal(ks[0], (channels,), jnp.float32),
        norm1_b=0.1 * jax.random.normal(ks[1], (channels,), jnp.float32),
        qkv_w=conv1x1(ks[2], 3 * channels, channels),
        qkv_dw=dwconv(ks[3], 3 * channels),
        temperature=1.0 + 0.1 * jax.random.normal(ks[4], (num_heads,), jnp.float32),
        proj_w=conv1x1(ks[5], channels, channels),
        norm2_w=1.0 + 0.1 * jax.random.normal(ks[6], (channels,), jnp.float32),
        norm2_b=0.1 * jax.random.normal(ks[7], (channels,), jnp.float32),
        ffn_in_w=conv1x1(ks[8], 2 * hidden, channels),
        ffn_dw=dwconv(ks[9], 2 * hidden),
        ffn_out_w=conv1x1(ks[10], channels, hidden),
    )


# ------------------------------------------------------------------------------- main ---
if __name__ == "__main__":
    B, C, H, W = 2, 4, 16, 16
    num_heads, expansion_factor = 2, 2

    key = jax.random.PRNGKey(0)
    kx, kp = jax.random.split(key)
    x = jax.random.normal(kx, (B, C, H, W), jnp.float32)
    params = init_params(kp, C, num_heads, expansion_factor)

    # row_tile=8 exercises the spatially tiled FFN path (2 row tiles per image); the
    # second call uses the auto tile picker (whole image at this size).
    out_tiled = jax.block_until_ready(
        transformer_block(x, params, num_heads=num_heads, row_tile=8))
    out_auto = jax.block_until_ready(
        transformer_block(x, params, num_heads=num_heads))
    ref = jax.block_until_ready(
        transformer_block_reference(x, params, num_heads=num_heads))

    for out in (out_tiled, out_auto):
        assert out.shape == (B, C, H, W)
        err = float(jnp.max(jnp.abs(out - ref)))
        rel = float(jnp.linalg.norm((out - ref).ravel()) / jnp.linalg.norm(ref.ravel()))
        # The relative-Frobenius check is the tight one; the max-abs bound is
        # LayerNorm-conditioning aware (normalising only C channels means 1/sigma can
        # amplify backend-level transcendental differences at isolated pixels).
        assert rel < 5e-3 and err < 5e-2, (err, rel)

    print("KERNEL_OK")
</pallas_src>

<mosaic_0001>
module attributes {stable_mosaic.version = 11 : i64} {
  func.func @_attn_kernel(%arg0: i32, %arg1: memref<1x4x256xf32, #tpu.memory_space<vmem>>, %arg2: memref<4x1xf32, #tpu.memory_space<vmem>>, %arg3: memref<4x1xf32, #tpu.memory_space<vmem>>, %arg4: memref<4x4xf32, #tpu.memory_space<vmem>>, %arg5: memref<4x4xf32, #tpu.memory_space<vmem>>, %arg6: memref<4x4xf32, #tpu.memory_space<vmem>>, %arg7: memref<4x9xf32, #tpu.memory_space<vmem>>, %arg8: memref<4x9xf32, #tpu.memory_space<vmem>>, %arg9: memref<4x9xf32, #tpu.memory_space<vmem>>, %arg10: memref<4x1xf32, #tpu.memory_space<vmem>>, %arg11: memref<4x4xf32, #tpu.memory_space<vmem>>, %arg12: memref<4x4xf32, #tpu.memory_space<vmem>>, %arg13: memref<8x256xf32, #tpu.memory_space<vmem>>, %arg14: memref<1x4x256xf32, #tpu.memory_space<vmem>>) attributes {dimension_semantics = [#tpu.dimension_semantics<parallel>], iteration_bounds = array<i64: 2>, scalar_prefetch = 0 : i64, scratch_operands = 0 : i64, tpu.core_type = #tpu.core_type<tc>, window_params = [{transform_indices = @transform_0, window_bounds = array<i64: 1, 4, 256>}, {pipeline_mode = #tpu.pipeline_mode<synchronous>, transform_indices = @transform_1, window_bounds = array<i64: 4, 1>}, {pipeline_mode = #tpu.pipeline_mode<synchronous>, transform_indices = @transform_2, window_bounds = array<i64: 4, 1>}, {pipeline_mode = #tpu.pipeline_mode<synchronous>, transform_indices = @transform_3, window_bounds = array<i64: 4, 4>}, {pipeline_mode = #tpu.pipeline_mode<synchronous>, transform_indices = @transform_4, window_bounds = array<i64: 4, 4>}, {pipeline_mode = #tpu.pipeline_mode<synchronous>, transform_indices = @transform_5, window_bounds = array<i64: 4, 4>}, {pipeline_mode = #tpu.pipeline_mode<synchronous>, transform_indices = @transform_6, window_bounds = array<i64: 4, 9>}, {pipeline_mode = #tpu.pipeline_mode<synchronous>, transform_indices = @transform_7, window_bounds = array<i64: 4, 9>}, {pipeline_mode = #tpu.pipeline_mode<synchronous>, transform_indices = @transform_8, window_bounds = array<i64: 4, 9>}, {pipeline_mode = #tpu.pipeline_mode<synchronous>, transform_indices = @transform_9, window_bounds = array<i64: 4, 1>}, {pipeline_mode = #tpu.pipeline_mode<synchronous>, transform_indices = @transform_10, window_bounds = array<i64: 4, 4>}, {pipeline_mode = #tpu.pipeline_mode<synchronous>, transform_indices = @transform_11, window_bounds = array<i64: 4, 4>}, {pipeline_mode = #tpu.pipeline_mode<synchronous>, transform_indices = @transform_12, window_bounds = array<i64: 8, 256>}, {transform_indices = @transform_13, window_bounds = array<i64: 1, 4, 256>}]} {
    %c0 = arith.constant 0 : index
    %c0_0 = arith.constant 0 : index
    %c0_1 = arith.constant 0 : index
    %0 = vector.load %arg1[%c0, %c0_0, %c0_1] : memref<1x4x256xf32, #tpu.memory_space<vmem>>, vector<1x4x256xf32>
    %1 = vector.shape_cast %0 : vector<1x4x256xf32> to vector<4x256xf32>
    %c0_2 = arith.constant 0 : index
    %c0_3 = arith.constant 0 : index
    %2 = vector.load %arg13[%c0_2, %c0_3] : memref<8x256xf32, #tpu.memory_space<vmem>>, vector<8x256xf32>
    %c0_4 = arith.constant 0 : index
    %c0_5 = arith.constant 0 : index
    %3 = vector.load %arg2[%c0_4, %c0_5] : memref<4x1xf32, #tpu.memory_space<vmem>>, vector<4x1xf32>
    %c0_6 = arith.constant 0 : index
    %c0_7 = arith.constant 0 : index
    %4 = vector.load %arg3[%c0_6, %c0_7] : memref<4x1xf32, #tpu.memory_space<vmem>>, vector<4x1xf32>
    %cst = arith.constant dense<0.000000e+00> : vector<256xf32>
    %5 = vector.multi_reduction <add>, %1, %cst [0] : vector<4x256xf32> to vector<256xf32>
    %6 = vector.shape_cast %5 : vector<256xf32> to vector<1x256xf32>
    %cst_8 = arith.constant 4.000000e+00 : f32
    %7 = vector.broadcast %cst_8 : f32 to vector<1x256xf32>
    %8 = arith.divf %6, %7 : vector<1x256xf32>
    %9 = vector.broadcast %8 : vector<1x256xf32> to vector<4x256xf32>
    %10 = arith.subf %1, %9 : vector<4x256xf32>
    %11 = arith.mulf %10, %10 : vector<4x256xf32>
    %cst_9 = arith.constant dense<0.000000e+00> : vector<256xf32>
    %12 = vector.multi_reduction <add>, %11, %cst_9 [0] : vector<4x256xf32> to vector<256xf32>
    %13 = vector.shape_cast %12 : vector<256xf32> to vector<1x256xf32>
    %cst_10 = arith.constant 4.000000e+00 : f32
    %14 = vector.broadcast %cst_10 : f32 to vector<1x256xf32>
    %15 = arith.divf %13, %14 : vector<1x256xf32>
    %cst_11 = arith.constant 9.99999974E-6 : f32
    %16 = vector.broadcast %cst_11 : f32 to vector<1x256xf32>
    %17 = arith.addf %15, %16 : vector<1x256xf32>
    %18 = math.rsqrt %17 : vector<1x256xf32>
    %19 = vector.broadcast %18 : vector<1x256xf32> to vector<4x256xf32>
    %20 = arith.mulf %10, %19 : vector<4x256xf32>
    %21 = vector.broadcast %3 : vector<4x1xf32> to vector<4x256xf32>
    %22 = arith.mulf %20, %21 : vector<4x256xf32>
    %23 = vector.broadcast %4 : vector<4x1xf32> to vector<4x256xf32>
    %24 = arith.addf %22, %23 : vector<4x256xf32>
    %c0_12 = arith.constant 0 : index
    %c0_13 = arith.constant 0 : index
    %25 = vector.load %arg4[%c0_12, %c0_13] : memref<4x4xf32, #tpu.memory_space<vmem>>, vector<4x4xf32>
    %cst_14 = arith.constant dense<0.000000e+00> : vector<4x256xf32>
    %26 = tpu.matmul %25, %24, %cst_14 {dimension_numbers = #tpu.dot_dimension_numbers<[1], [0], [0], [1], [0, 0, 1, 1], [], []>, precision = #tpu.contract_precision<fp32>} : vector<4x4xf32>, vector<4x256xf32>, vector<4x256xf32> -> vector<4x256xf32>
    %c0_15 = arith.constant 0 : index
    %c0_16 = arith.constant 0 : index
    %27 = vector.load %arg7[%c0_15, %c0_16] : memref<4x9xf32, #tpu.memory_space<vmem>>, vector<4x9xf32>
    %28 = vector.extract_strided_slice %27 {offsets = [0, 4], sizes = [4, 1], strides = [1, 1]} : vector<4x9xf32> to vector<4x1xf32>
    %29 = vector.broadcast %28 : vector<4x1xf32> to vector<4x256xf32>
    %30 = arith.mulf %26, %29 : vector<4x256xf32>
    %31 = vector.extract_strided_slice %26 {offsets = [0, 239], sizes = [4, 17], strides = [1, 1]} : vector<4x256xf32> to vector<4x17xf32>
    %32 = vector.extract_strided_slice %26 {offsets = [0, 0], sizes = [4, 239], strides = [1, 1]} : vector<4x256xf32> to vector<4x239xf32>
    %33 = tpu.concatenate %31, %32 in 1 : vector<4x17xf32>, vector<4x239xf32> -> vector<4x256xf32>
    %34 = vector.extract_strided_slice %2 {offsets = [0, 0], sizes = [1, 256], strides = [1, 1]} : vector<8x256xf32> to vector<1x256xf32>
    %35 = vector.broadcast %34 : vector<1x256xf32> to vector<4x256xf32>
    %36 = arith.mulf %33, %35 : vector<4x256xf32>
    %37 = vector.extract_strided_slice %27 {offsets = [0, 0], sizes = [4, 1], strides = [1, 1]} : vector<4x9xf32> to vector<4x1xf32>
    %38 = vector.broadcast %37 : vector<4x1xf32> to vector<4x256xf32>
    %39 = arith.mulf %36, %38 : vector<4x256xf32>
    %40 = arith.addf %30, %39 : vector<4x256xf32>
    %41 = vector.extract_strided_slice %26 {offsets = [0, 240], sizes = [4, 16], strides = [1, 1]} : vector<4x256xf32> to vector<4x16xf32>
    %42 = vector.extract_strided_slice %26 {offsets = [0, 0], sizes = [4, 240], strides = [1, 1]} : vector<4x256xf32> to vector<4x240xf32>
    %43 = tpu.concatenate %41, %42 in 1 : vector<4x16xf32>, vector<4x240xf32> -> vector<4x256xf32>
    %44 = vector.extract_strided_slice %2 {offsets = [1, 0], sizes = [1, 256], strides = [1, 1]} : vector<8x256xf32> to vector<1x256xf32>
    %45 = vector.broadcast %44 : vector<1x256xf32> to vector<4x256xf32>
    %46 = arith.mulf %43, %45 : vector<4x256xf32>
    %47 = vector.extract_strided_slice %27 {offsets = [0, 1], sizes = [4, 1], strides = [1, 1]} : vector<4x9xf32> to vector<4x1xf32>
    %48 = vector.broadcast %47 : vector<4x1xf32> to vector<4x256xf32>
    %49 = arith.mulf %46, %48 : vector<4x256xf32>
    %50 = arith.addf %40, %49 : vector<4x256xf32>
    %51 = vector.extract_strided_slice %26 {offsets = [0, 241], sizes = [4, 15], strides = [1, 1]} : vector<4x256xf32> to vector<4x15xf32>
    %52 = vector.extract_strided_slice %26 {offsets = [0, 0], sizes = [4, 241], strides = [1, 1]} : vector<4x256xf32> to vector<4x241xf32>
    %53 = tpu.concatenate %51, %52 in 1 : vector<4x15xf32>, vector<4x241xf32> -> vector<4x256xf32>
    %54 = vector.extract_strided_slice %2 {offsets = [2, 0], sizes = [1, 256], strides = [1, 1]} : vector<8x256xf32> to vector<1x256xf32>
    %55 = vector.broadcast %54 : vector<1x256xf32> to vector<4x256xf32>
    %56 = arith.mulf %53, %55 : vector<4x256xf32>
    %57 = vector.extract_strided_slice %27 {offsets = [0, 2], sizes = [4, 1], strides = [1, 1]} : vector<4x9xf32> to vector<4x1xf32>
    %58 = vector.broadcast %57 : vector<4x1xf32> to vector<4x256xf32>
    %59 = arith.mulf %56, %58 : vector<4x256xf32>
    %60 = arith.addf %50, %59 : vector<4x256xf32>
    %61 = vector.extract_strided_slice %26 {offsets = [0, 255], sizes = [4, 1], strides = [1, 1]} : vector<4x256xf32> to vector<4x1xf32>
    %62 = vector.extract_strided_slice %26 {offsets = [0, 0], sizes = [4, 255], strides = [1, 1]} : vector<4x256xf32> to vector<4x255xf32>
    %63 = tpu.concatenate %61, %62 in 1 : vector<4x1xf32>, vector<4x255xf32> -> vector<4x256xf32>
    %64 = vector.extract_strided_slice %2 {offsets = [3, 0], sizes = [1, 256], strides = [1, 1]} : vector<8x256xf32> to vector<1x256xf32>
    %65 = vector.broadcast %64 : vector<1x256xf32> to vector<4x256xf32>
    %66 = arith.mulf %63, %65 : vector<4x256xf32>
    %67 = vector.extract_strided_slice %27 {offsets = [0, 3], sizes = [4, 1], strides = [1, 1]} : vector<4x9xf32> to vector<4x1xf32>
    %68 = vector.broadcast %67 : vector<4x1xf32> to vector<4x256xf32>
    %69 = arith.mulf %66, %68 : vector<4x256xf32>
    %70 = arith.addf %60, %69 : vector<4x256xf32>
    %71 = vector.extract_strided_slice %26 {offsets = [0, 1], sizes = [4, 255], strides = [1, 1]} : vector<4x256xf32> to vector<4x255xf32>
    %72 = vector.extract_strided_slice %26 {offsets = [0, 0], sizes = [4, 1], strides = [1, 1]} : vector<4x256xf32> to vector<4x1xf32>
    %73 = tpu.concatenate %71, %72 in 1 : vector<4x255xf32>, vector<4x1xf32> -> vector<4x256xf32>
    %74 = vector.extract_strided_slice %2 {offsets = [4, 0], sizes = [1, 256], strides = [1, 1]} : vector<8x256xf32> to vector<1x256xf32>
    %75 = vector.broadcast %74 : vector<1x256xf32> to vector<4x256xf32>
    %76 = arith.mulf %73, %75 : vector<4x256xf32>
    %77 = vector.extract_strided_slice %27 {offsets = [0, 5], sizes = [4, 1], strides = [1, 1]} : vector<4x9xf32> to vector<4x1xf32>
    %78 = vector.broadcast %77 : vector<4x1xf32> to vector<4x256xf32>
    %79 = arith.mulf %76, %78 : vector<4x256xf32>
    %80 = arith.addf %70, %79 : vector<4x256xf32>
    %81 = vector.extract_strided_slice %26 {offsets = [0, 15], sizes = [4, 241], strides = [1, 1]} : vector<4x256xf32> to vector<4x241xf32>
    %82 = vector.extract_strided_slice %26 {offsets = [0, 0], sizes = [4, 15], strides = [1, 1]} : vector<4x256xf32> to vector<4x15xf32>
    %83 = tpu.concatenate %81, %82 in 1 : vector<4x241xf32>, vector<4x15xf32> -> vector<4x256xf32>
    %84 = vector.extract_strided_slice %2 {offsets = [5, 0], sizes = [1, 256], strides = [1, 1]} : vector<8x256xf32> to vector<1x256xf32>
    %85 = vector.broadcast %84 : vector<1x256xf32> to vector<4x256xf32>
    %86 = arith.mulf %83, %85 : vector<4x256xf32>
    %87 = vector.extract_strided_slice %27 {offsets = [0, 6], sizes = [4, 1], strides = [1, 1]} : vector<4x9xf32> to vector<4x1xf32>
    %88 = vector.broadcast %87 : vector<4x1xf32> to vector<4x256xf32>
    %89 = arith.mulf %86, %88 : vector<4x256xf32>
    %90 = arith.addf %80, %89 : vector<4x256xf32>
    %91 = vector.extract_strided_slice %26 {offsets = [0, 16], sizes = [4, 240], strides = [1, 1]} : vector<4x256xf32> to vector<4x240xf32>
    %92 = vector.extract_strided_slice %26 {offsets = [0, 0], sizes = [4, 16], strides = [1, 1]} : vector<4x256xf32> to vector<4x16xf32>
    %93 = tpu.concatenate %91, %92 in 1 : vector<4x240xf32>, vector<4x16xf32> -> vector<4x256xf32>
    %94 = vector.extract_strided_slice %2 {offsets = [6, 0], sizes = [1, 256], strides = [1, 1]} : vector<8x256xf32> to vector<1x256xf32>
    %95 = vector.broadcast %94 : vector<1x256xf32> to vector<4x256xf32>
    %96 = arith.mulf %93, %95 : vector<4x256xf32>
    %97 = vector.extract_strided_slice %27 {offsets = [0, 7], sizes = [4, 1], strides = [1, 1]} : vector<4x9xf32> to vector<4x1xf32>
    %98 = vector.broadcast %97 : vector<4x1xf32> to vector<4x256xf32>
    %99 = arith.mulf %96, %98 : vector<4x256xf32>
    %100 = arith.addf %90, %99 : vector<4x256xf32>
    %101 = vector.extract_strided_slice %26 {offsets = [0, 17], sizes = [4, 239], strides = [1, 1]} : vector<4x256xf32> to vector<4x239xf32>
    %102 = vector.extract_strided_slice %26 {offsets = [0, 0], sizes = [4, 17], strides = [1, 1]} : vector<4x256xf32> to vector<4x17xf32>
    %103 = tpu.concatenate %101, %102 in 1 : vector<4x239xf32>, vector<4x17xf32> -> vector<4x256xf32>
    %104 = vector.extract_strided_slice %2 {offsets = [7, 0], sizes = [1, 256], strides = [1, 1]} : vector<8x256xf32> to vector<1x256xf32>
    %105 = vector.broadcast %104 : vector<1x256xf32> to vector<4x256xf32>
    %106 = arith.mulf %103, %105 : vector<4x256xf32>
    %107 = vector.extract_strided_slice %27 {offsets = [0, 8], sizes = [4, 1], strides = [1, 1]} : vector<4x9xf32> to vector<4x1xf32>
    %108 = vector.broadcast %107 : vector<4x1xf32> to vector<4x256xf32>
    %109 = arith.mulf %106, %108 : vector<4x256xf32>
    %110 = arith.addf %100, %109 : vector<4x256xf32>
    %c0_17 = arith.constant 0 : index
    %c0_18 = arith.constant 0 : index
    %111 = vector.load %arg5[%c0_17, %c0_18] : memref<4x4xf32, #tpu.memory_space<vmem>>, vector<4x4xf32>
    %cst_19 = arith.constant dense<0.000000e+00> : vector<4x256xf32>
    %112 = tpu.matmul %111, %24, %cst_19 {dimension_numbers = #tpu.dot_dimension_numbers<[1], [0], [0], [1], [0, 0, 1, 1], [], []>, precision = #tpu.contract_precision<fp32>} : vector<4x4xf32>, vector<4x256xf32>, vector<4x256xf32> -> vector<4x256xf32>
    %c0_20 = arith.constant 0 : index
    %c0_21 = arith.constant 0 : index
    %113 = vector.load %arg8[%c0_20, %c0_21] : memref<4x9xf32, #tpu.memory_space<vmem>>, vector<4x9xf32>
    %114 = vector.extract_strided_slice %113 {offsets = [0, 4], sizes = [4, 1], strides = [1, 1]} : vector<4x9xf32> to vector<4x1xf32>
    %115 = vector.broadcast %114 : vector<4x1xf32> to vector<4x256xf32>
    %116 = arith.mulf %112, %115 : vector<4x256xf32>
    %117 = vector.extract_strided_slice %112 {offsets = [0, 239], sizes = [4, 17], strides = [1, 1]} : vector<4x256xf32> to vector<4x17xf32>
    %118 = vector.extract_strided_slice %112 {offsets = [0, 0], sizes = [4, 239], strides = [1, 1]} : vector<4x256xf32> to vector<4x239xf32>
    %119 = tpu.concatenate %117, %118 in 1 : vector<4x17xf32>, vector<4x239xf32> -> vector<4x256xf32>
    %120 = vector.extract_strided_slice %2 {offsets = [0, 0], sizes = [1, 256], strides = [1, 1]} : vector<8x256xf32> to vector<1x256xf32>
    %121 = vector.broadcast %120 : vector<1x256xf32> to vector<4x256xf32>
    %122 = arith.mulf %119, %121 : vector<4x256xf32>
    %123 = vector.extract_strided_slice %113 {offsets = [0, 0], sizes = [4, 1], strides = [1, 1]} : vector<4x9xf32> to vector<4x1xf32>
    %124 = vector.broadcast %123 : vector<4x1xf32> to vector<4x256xf32>
    %125 = arith.mulf %122, %124 : vector<4x256xf32>
    %126 = arith.addf %116, %125 : vector<4x256xf32>
    %127 = vector.extract_strided_slice %112 {offsets = [0, 240], sizes = [4, 16], strides = [1, 1]} : vector<4x256xf32> to vector<4x16xf32>
    %128 = vector.extract_strided_slice %112 {offsets = [0, 0], sizes = [4, 240], strides = [1, 1]} : vector<4x256xf32> to vector<4x240xf32>
    %129 = tpu.concatenate %127, %128 in 1 : vector<4x16xf32>, vector<4x240xf32> -> vector<4x256xf32>
    %130 = vector.extract_strided_slice %2 {offsets = [1, 0], sizes = [1, 256], strides = [1, 1]} : vector<8x256xf32> to vector<1x256xf32>
    %131 = vector.broadcast %130 : vector<1x256xf32> to vector<4x256xf32>
    %132 = arith.mulf %129, %131 : vector<4x256xf32>
    %133 = vector.extract_strided_slice %113 {offsets = [0, 1], sizes = [4, 1], strides = [1, 1]} : vector<4x9xf32> to vector<4x1xf32>
    %134 = vector.broadcast %133 : vector<4x1xf32> to vector<4x256xf32>
    %135 = arith.mulf %132, %134 : vector<4x256xf32>
    %136 = arith.addf %126, %135 : vector<4x256xf32>
    %137 = vector.extract_strided_slice %112 {offsets = [0, 241], sizes = [4, 15], strides = [1, 1]} : vector<4x256xf32> to vector<4x15xf32>
    %138 = vector.extract_strided_slice %112 {offsets = [0, 0], sizes = [4, 241], strides = [1, 1]} : vector<4x256xf32> to vector<4x241xf32>
    %139 = tpu.concatenate %137, %138 in 1 : vector<4x15xf32>, vector<4x241xf32> -> vector<4x256xf32>
    %140 = vector.extract_strided_slice %2 {offsets = [2, 0], sizes = [1, 256], strides = [1, 1]} : vector<8x256xf32> to vector<1x256xf32>
    %141 = vector.broadcast %140 : vector<1x256xf32> to vector<4x256xf32>
    %142 = arith.mulf %139, %141 : vector<4x256xf32>
    %143 = vector.extract_strided_slice %113 {offsets = [0, 2], sizes = [4, 1], strides = [1, 1]} : vector<4x9xf32> to vector<4x1xf32>
    %144 = vector.broadcast %143 : vector<4x1xf32> to vector<4x256xf32>
    %145 = arith.mulf %142, %144 : vector<4x256xf32>
    %146 = arith.addf %136, %145 : vector<4x256xf32>
    %147 = vector.extract_strided_slice %112 {offsets = [0, 255], sizes = [4, 1], strides = [1, 1]} : vector<4x256xf32> to vector<4x1xf32>
    %148 = vector.extract_strided_slice %112 {offsets = [0, 0], sizes = [4, 255], strides = [1, 1]} : vector<4x256xf32> to vector<4x255xf32>
    %149 = tpu.concatenate %147, %148 in 1 : vector<4x1xf32>, vector<4x255xf32> -> vector<4x256xf32>
    %150 = vector.extract_strided_slice %2 {offsets = [3, 0], sizes = [1, 256], strides = [1, 1]} : vector<8x256xf32> to vector<1x256xf32>
    %151 = vector.broadcast %150 : vector<1x256xf32> to vector<4x256xf32>
    %152 = arith.mulf %149, %151 : vector<4x256xf32>
    %153 = vector.extract_strided_slice %113 {offsets = [0, 3], sizes = [4, 1], strides = [1, 1]} : vector<4x9xf32> to vector<4x1xf32>
    %154 = vector.broadcast %153 : vector<4x1xf32> to vector<4x256xf32>
    %155 = arith.mulf %152, %154 : vector<4x256xf32>
    %156 = arith.addf %146, %155 : vector<4x256xf32>
    %157 = vector.extract_strided_slice %112 {offsets = [0, 1], sizes = [4, 255], strides = [1, 1]} : vector<4x256xf32> to vector<4x255xf32>
    %158 = vector.extract_strided_slice %112 {offsets = [0, 0], sizes = [4, 1], strides = [1, 1]} : vector<4x256xf32> to vector<4x1xf32>
    %159 = tpu.concatenate %157, %158 in 1 : vector<4x255xf32>, vector<4x1xf32> -> vector<4x256xf32>
    %160 = vector.extract_strided_slice %2 {offsets = [4, 0], sizes = [1, 256], strides = [1, 1]} : vector<8x256xf32> to vector<1x256xf32>
    %161 = vector.broadcast %160 : vector<1x256xf32> to vector<4x256xf32>
    %162 = arith.mulf %159, %161 : vector<4x256xf32>
    %163 = vector.extract_strided_slice %113 {offsets = [0, 5], sizes = [4, 1], strides = [1, 1]} : vector<4x9xf32> to vector<4x1xf32>
    %164 = vector.broadcast %163 : vector<4x1xf32> to vector<4x256xf32>
    %165 = arith.mulf %162, %164 : vector<4x256xf32>
    %166 = arith.addf %156, %165 : vector<4x256xf32>
    %167 = vector.extract_strided_slice %112 {offsets = [0, 15], sizes = [4, 241], strides = [1, 1]} : vector<4x256xf32> to vector<4x241xf32>
    %168 = vector.extract_strided_slice %112 {offsets = [0, 0], sizes = [4, 15], strides = [1, 1]} : vector<4x256xf32> to vector<4x15xf32>
    %169 = tpu.concatenate %167, %168 in 1 : vector<4x241xf32>, vector<4x15xf32> -> vector<4x256xf32>
    %170 = vector.extract_strided_slice %2 {offsets = [5, 0], sizes = [1, 256], strides = [1, 1]} : vector<8x256xf32> to vector<1x256xf32>
    %171 = vector.broadcast %170 : vector<1x256xf32> to vector<4x256xf32>
    %172 = arith.mulf %169, %171 : vector<4x256xf32>
    %173 = vector.extract_strided_slice %113 {offsets = [0, 6], sizes = [4, 1], strides = [1, 1]} : vector<4x9xf32> to vector<4x1xf32>
    %174 = vector.broadcast %173 : vector<4x1xf32> to vector<4x256xf32>
    %175 = arith.mulf %172, %174 : vector<4x256xf32>
    %176 = arith.addf %166, %175 : vector<4x256xf32>
    %177 = vector.extract_strided_slice %112 {offsets = [0, 16], sizes = [4, 240], strides = [1, 1]} : vector<4x256xf32> to vector<4x240xf32>
    %178 = vector.extract_strided_slice %112 {offsets = [0, 0], sizes = [4, 16], strides = [1, 1]} : vector<4x256xf32> to vector<4x16xf32>
    %179 = tpu.concatenate %177, %178 in 1 : vector<4x240xf32>, vector<4x16xf32> -> vector<4x256xf32>
    %180 = vector.extract_strided_slice %2 {offsets = [6, 0], sizes = [1, 256], strides = [1, 1]} : vector<8x256xf32> to vector<1x256xf32>
    %181 = vector.broadcast %180 : vector<1x256xf32> to vector<4x256xf32>
    %182 = arith.mulf %179, %181 : vector<4x256xf32>
    %183 = vector.extract_strided_slice %113 {offsets = [0, 7], sizes = [4, 1], strides = [1, 1]} : vector<4x9xf32> to vector<4x1xf32>
    %184 = vector.broadcast %183 : vector<4x1xf32> to vector<4x256xf32>
    %185 = arith.mulf %182, %184 : vector<4x256xf32>
    %186 = arith.addf %176, %185 : vector<4x256xf32>
    %187 = vector.extract_strided_slice %112 {offsets = [0, 17], sizes = [4, 239], strides = [1, 1]} : vector<4x256xf32> to vector<4x239xf32>
    %188 = vector.extract_strided_slice %112 {offsets = [0, 0], sizes = [4, 17], strides = [1, 1]} : vector<4x256xf32> to vector<4x17xf32>
    %189 = tpu.concatenate %187, %188 in 1 : vector<4x239xf32>, vector<4x17xf32> -> vector<4x256xf32>
    %190 = vector.extract_strided_slice %2 {offsets = [7, 0], sizes = [1, 256], strides = [1, 1]} : vector<8x256xf32> to vector<1x256xf32>
    %191 = vector.broadcast %190 : vector<1x256xf32> to vector<4x256xf32>
    %192 = arith.mulf %189, %191 : vector<4x256xf32>
    %193 = vector.extract_strided_slice %113 {offsets = [0, 8], sizes = [4, 1], strides = [1, 1]} : vector<4x9xf32> to vector<4x1xf32>
    %194 = vector.broadcast %193 : vector<4x1xf32> to vector<4x256xf32>
    %195 = arith.mulf %192, %194 : vector<4x256xf32>
    %196 = arith.addf %186, %195 : vector<4x256xf32>
    %c0_22 = arith.constant 0 : index
    %c0_23 = arith.constant 0 : index
    %197 = vector.load %arg6[%c0_22, %c0_23] : memref<4x4xf32, #tpu.memory_space<vmem>>, vector<4x4xf32>
    %cst_24 = arith.constant dense<0.000000e+00> : vector<4x256xf32>
    %198 = tpu.matmul %197, %24, %cst_24 {dimension_numbers = #tpu.dot_dimension_numbers<[1], [0], [0], [1], [0, 0, 1, 1], [], []>, precision = #tpu.contract_precision<fp32>} : vector<4x4xf32>, vector<4x256xf32>, vector<4x256xf32> -> vector<4x256xf32>
    %c0_25 = arith.constant 0 : index
    %c0_26 = arith.constant 0 : index
    %199 = vector.load %arg9[%c0_25, %c0_26] : memref<4x9xf32, #tpu.memory_space<vmem>>, vector<4x9xf32>
    %200 = vector.extract_strided_slice %199 {offsets = [0, 4], sizes = [4, 1], strides = [1, 1]} : vector<4x9xf32> to vector<4x1xf32>
    %201 = vector.broadcast %200 : vector<4x1xf32> to vector<4x256xf32>
    %202 = arith.mulf %198, %201 : vector<4x256xf32>
    %203 = vector.extract_strided_slice %198 {offsets = [0, 239], sizes = [4, 17], strides = [1, 1]} : vector<4x256xf32> to vector<4x17xf32>
    %204 = vector.extract_strided_slice %198 {offsets = [0, 0], sizes = [4, 239], strides = [1, 1]} : vector<4x256xf32> to vector<4x239xf32>
    %205 = tpu.concatenate %203, %204 in 1 : vector<4x17xf32>, vector<4x239xf32> -> vector<4x256xf32>
    %206 = vector.extract_strided_slice %2 {offsets = [0, 0], sizes = [1, 256], strides = [1, 1]} : vector<8x256xf32> to vector<1x256xf32>
    %207 = vector.broadcast %206 : vector<1x256xf32> to vector<4x256xf32>
    %208 = arith.mulf %205, %207 : vector<4x256xf32>
    %209 = vector.extract_strided_slice %199 {offsets = [0, 0], sizes = [4, 1], strides = [1, 1]} : vector<4x9xf32> to vector<4x1xf32>
    %210 = vector.broadcast %209 : vector<4x1xf32> to vector<4x256xf32>
    %211 = arith.mulf %208, %210 : vector<4x256xf32>
    %212 = arith.addf %202, %211 : vector<4x256xf32>
    %213 = vector.extract_strided_slice %198 {offsets = [0, 240], sizes = [4, 16], strides = [1, 1]} : vector<4x256xf32> to vector<4x16xf32>
    %214 = vector.extract_strided_slice %198 {offsets = [0, 0], sizes = [4, 240], strides = [1, 1]} : vector<4x256xf32> to vector<4x240xf32>
    %215 = tpu.concatenate %213, %214 in 1 : vector<4x16xf32>, vector<4x240xf32> -> vector<4x256xf32>
    %216 = vector.extract_strided_slice %2 {offsets = [1, 0], sizes = [1, 256], strides = [1, 1]} : vector<8x256xf32> to vector<1x256xf32>
    %217 = vector.broadcast %216 : vector<1x256xf32> to vector<4x256xf32>
    %218 = arith.mulf %215, %217 : vector<4x256xf32>
    %219 = vector.extract_strided_slice %199 {offsets = [0, 1], sizes = [4, 1], strides = [1, 1]} : vector<4x9xf32> to vector<4x1xf32>
    %220 = vector.broadcast %219 : vector<4x1xf32> to vector<4x256xf32>
    %221 = arith.mulf %218, %220 : vector<4x256xf32>
    %222 = arith.addf %212, %221 : vector<4x256xf32>
    %223 = vector.extract_strided_slice %198 {offsets = [0, 241], sizes = [4, 15], strides = [1, 1]} : vector<4x256xf32> to vector<4x15xf32>
    %224 = vector.extract_strided_slice %198 {offsets = [0, 0], sizes = [4, 241], strides = [1, 1]} : vector<4x256xf32> to vector<4x241xf32>
    %225 = tpu.concatenate %223, %224 in 1 : vector<4x15xf32>, vector<4x241xf32> -> vector<4x256xf32>
    %226 = vector.extract_strided_slice %2 {offsets = [2, 0], sizes = [1, 256], strides = [1, 1]} : vector<8x256xf32> to vector<1x256xf32>
    %227 = vector.broadcast %226 : vector<1x256xf32> to vector<4x256xf32>
    %228 = arith.mulf %225, %227 : vector<4x256xf32>
    %229 = vector.extract_strided_slice %199 {offsets = [0, 2], sizes = [4, 1], strides = [1, 1]} : vector<4x9xf32> to vector<4x1xf32>
    %230 = vector.broadcast %229 : vector<4x1xf32> to vector<4x256xf32>
    %231 = arith.mulf %228, %230 : vector<4x256xf32>
    %232 = arith.addf %222, %231 : vector<4x256xf32>
    %233 = vector.extract_strided_slice %198 {offsets = [0, 255], sizes = [4, 1], strides = [1, 1]} : vector<4x256xf32> to vector<4x1xf32>
    %234 = vector.extract_strided_slice %198 {offsets = [0, 0], sizes = [4, 255], strides = [1, 1]} : vector<4x256xf32> to vector<4x255xf32>
    %235 = tpu.concatenate %233, %234 in 1 : vector<4x1xf32>, vector<4x255xf32> -> vector<4x256xf32>
    %236 = vector.extract_strided_slice %2 {offsets = [3, 0], sizes = [1, 256], strides = [1, 1]} : vector<8x256xf32> to vector<1x256xf32>
    %237 = vector.broadcast %236 : vector<1x256xf32> to vector<4x256xf32>
    %238 = arith.mulf %235, %237 : vector<4x256xf32>
    %239 = vector.extract_strided_slice %199 {offsets = [0, 3], sizes = [4, 1], strides = [1, 1]} : vector<4x9xf32> to vector<4x1xf32>
    %240 = vector.broadcast %239 : vector<4x1xf32> to vector<4x256xf32>
    %241 = arith.mulf %238, %240 : vector<4x256xf32>
    %242 = arith.addf %232, %241 : vector<4x256xf32>
    %243 = vector.extract_strided_slice %198 {offsets = [0, 1], sizes = [4, 255], strides = [1, 1]} : vector<4x256xf32> to vector<4x255xf32>
    %244 = vector.extract_strided_slice %198 {offsets = [0, 0], sizes = [4, 1], strides = [1, 1]} : vector<4x256xf32> to vector<4x1xf32>
    %245 = tpu.concatenate %243, %244 in 1 : vector<4x255xf32>, vector<4x1xf32> -> vector<4x256xf32>
    %246 = vector.extract_strided_slice %2 {offsets = [4, 0], sizes = [1, 256], strides = [1, 1]} : vector<8x256xf32> to vector<1x256xf32>
    %247 = vector.broadcast %246 : vector<1x256xf32> to vector<4x256xf32>
    %248 = arith.mulf %245, %247 : vector<4x256xf32>
    %249 = vector.extract_strided_slice %199 {offsets = [0, 5], sizes = [4, 1], strides = [1, 1]} : vector<4x9xf32> to vector<4x1xf32>
    %250 = vector.broadcast %249 : vector<4x1xf32> to vector<4x256xf32>
    %251 = arith.mulf %248, %250 : vector<4x256xf32>
    %252 = arith.addf %242, %251 : vector<4x256xf32>
    %253 = vector.extract_strided_slice %198 {offsets = [0, 15], sizes = [4, 241], strides = [1, 1]} : vector<4x256xf32> to vector<4x241xf32>
    %254 = vector.extract_strided_slice %198 {offsets = [0, 0], sizes = [4, 15], strides = [1, 1]} : vector<4x256xf32> to vector<4x15xf32>
    %255 = tpu.concatenate %253, %254 in 1 : vector<4x241xf32>, vector<4x15xf32> -> vector<4x256xf32>
    %256 = vector.extract_strided_slice %2 {offsets = [5, 0], sizes = [1, 256], strides = [1, 1]} : vector<8x256xf32> to vector<1x256xf32>
    %257 = vector.broadcast %256 : vector<1x256xf32> to vector<4x256xf32>
    %258 = arith.mulf %255, %257 : vector<4x256xf32>
    %259 = vector.extract_strided_slice %199 {offsets = [0, 6], sizes = [4, 1], strides = [1, 1]} : vector<4x9xf32> to vector<4x1xf32>
    %260 = vector.broadcast %259 : vector<4x1xf32> to vector<4x256xf32>
    %261 = arith.mulf %258, %260 : vector<4x256xf32>
    %262 = arith.addf %252, %261 : vector<4x256xf32>
    %263 = vector.extract_strided_slice %198 {offsets = [0, 16], sizes = [4, 240], strides = [1, 1]} : vector<4x256xf32> to vector<4x240xf32>
    %264 = vector.extract_strided_slice %198 {offsets = [0, 0], sizes = [4, 16], strides = [1, 1]} : vector<4x256xf32> to vector<4x16xf32>
    %265 = tpu.concatenate %263, %264 in 1 : vector<4x240xf32>, vector<4x16xf32> -> vector<4x256xf32>
    %266 = vector.extract_strided_slice %2 {offsets = [6, 0], sizes = [1, 256], strides = [1, 1]} : vector<8x256xf32> to vector<1x256xf32>
    %267 = vector.broadcast %266 : vector<1x256xf32> to vector<4x256xf32>
    %268 = arith.mulf %265, %267 : vector<4x256xf32>
    %269 = vector.extract_strided_slice %199 {offsets = [0, 7], sizes = [4, 1], strides = [1, 1]} : vector<4x9xf32> to vector<4x1xf32>
    %270 = vector.broadcast %269 : vector<4x1xf32> to vector<4x256xf32>
    %271 = arith.mulf %268, %270 : vector<4x256xf32>
    %272 = arith.addf %262, %271 : vector<4x256xf32>
    %273 = vector.extract_strided_slice %198 {offsets = [0, 17], sizes = [4, 239], strides = [1, 1]} : vector<4x256xf32> to vector<4x239xf32>
    %274 = vector.extract_strided_slice %198 {offsets = [0, 0], sizes = [4, 17], strides = [1, 1]} : vector<4x256xf32> to vector<4x17xf32>
    %275 = tpu.concatenate %273, %274 in 1 : vector<4x239xf32>, vector<4x17xf32> -> vector<4x256xf32>
    %276 = vector.extract_strided_slice %2 {offsets = [7, 0], sizes = [1, 256], strides = [1, 1]} : vector<8x256xf32> to vector<1x256xf32>
    %277 = vector.broadcast %276 : vector<1x256xf32> to vector<4x256xf32>
    %278 = arith.mulf %275, %277 : vector<4x256xf32>
    %279 = vector.extract_strided_slice %199 {offsets = [0, 8], sizes = [4, 1], strides = [1, 1]} : vector<4x9xf32> to vector<4x1xf32>
    %280 = vector.broadcast %279 : vector<4x1xf32> to vector<4x256xf32>
    %281 = arith.mulf %278, %280 : vector<4x256xf32>
    %282 = arith.addf %272, %281 : vector<4x256xf32>
    %283 = arith.mulf %110, %110 : vector<4x256xf32>
    %cst_27 = arith.constant dense<0.000000e+00> : vector<4xf32>
    %284 = vector.multi_reduction <add>, %283, %cst_27 [1] : vector<4x256xf32> to vector<4xf32>
    %285 = vector.shape_cast %284 : vector<4xf32> to vector<4x1xf32>
    %cst_28 = arith.constant 1.000000e-24 : f32
    %286 = vector.broadcast %cst_28 : f32 to vector<4x1xf32>
    %287 = arith.maximumf %285, %286 : vector<4x1xf32>
    %288 = math.rsqrt %287 : vector<4x1xf32>
    %289 = vector.broadcast %288 : vector<4x1xf32> to vector<4x256xf32>
    %290 = arith.mulf %110, %289 : vector<4x256xf32>
    %291 = arith.mulf %196, %196 : vector<4x256xf32>
    %cst_29 = arith.constant dense<0.000000e+00> : vector<4xf32>
    %292 = vector.multi_reduction <add>, %291, %cst_29 [1] : vector<4x256xf32> to vector<4xf32>
    %293 = vector.shape_cast %292 : vector<4xf32> to vector<4x1xf32>
    %cst_30 = arith.constant 1.000000e-24 : f32
    %294 = vector.broadcast %cst_30 : f32 to vector<4x1xf32>
    %295 = arith.maximumf %293, %294 : vector<4x1xf32>
    %296 = math.rsqrt %295 : vector<4x1xf32>
    %297 = vector.broadcast %296 : vector<4x1xf32> to vector<4x256xf32>
    %298 = arith.mulf %196, %297 : vector<4x256xf32>
    %cst_31 = arith.constant dense<0.000000e+00> : vector<4x4xf32>
    %299 = tpu.matmul %290, %298, %cst_31 {dimension_numbers = #tpu.dot_dimension_numbers<[1], [1], [0], [0], [0, 0, 1, 0], [], []>, precision = #tpu.contract_precision<fp32>} : vector<4x256xf32>, vector<4x256xf32>, vector<4x4xf32> -> vector<4x4xf32>
    %c0_32 = arith.constant 0 : index
    %c0_33 = arith.constant 0 : index
    %300 = vector.load %arg10[%c0_32, %c0_33] : memref<4x1xf32, #tpu.memory_space<vmem>>, vector<4x1xf32>
    %301 = vector.broadcast %300 : vector<4x1xf32> to vector<4x4xf32>
    %302 = arith.mulf %299, %301 : vector<4x4xf32>
    %cst_34 = arith.constant dense<0xFF800000> : vector<4xf32>
    %303 = vector.multi_reduction <maximumf>, %302, %cst_34 [1] : vector<4x4xf32> to vector<4xf32>
    %304 = vector.shape_cast %303 : vector<4xf32> to vector<4x1xf32>
    %305 = vector.broadcast %304 : vector<4x1xf32> to vector<4x4xf32>
    %306 = arith.subf %302, %305 : vector<4x4xf32>
    %307 = math.exp %306 : vector<4x4xf32>
    %c0_35 = arith.constant 0 : index
    %c0_36 = arith.constant 0 : index
    %308 = vector.load %arg12[%c0_35, %c0_36] : memref<4x4xf32, #tpu.memory_space<vmem>>, vector<4x4xf32>
    %309 = arith.mulf %307, %308 : vector<4x4xf32>
    %cst_37 = arith.constant dense<0.000000e+00> : vector<4xf32>
    %310 = vector.multi_reduction <add>, %309, %cst_37 [1] : vector<4x4xf32> to vector<4xf32>
    %311 = vector.shape_cast %310 : vector<4xf32> to vector<4x1xf32>
    %312 = vector.broadcast %311 : vector<4x1xf32> to vector<4x4xf32>
    %313 = arith.divf %309, %312 : vector<4x4xf32>
    %cst_38 = arith.constant dense<0.000000e+00> : vector<4x256xf32>
    %314 = tpu.matmul %313, %282, %cst_38 {dimension_numbers = #tpu.dot_dimension_numbers<[1], [0], [0], [1], [0, 0, 1, 1], [], []>, precision = #tpu.contract_precision<fp32>} : vector<4x4xf32>, vector<4x256xf32>, vector<4x256xf32> -> vector<4x256xf32>
    %c0_39 = arith.constant 0 : index
    %c0_40 = arith.constant 0 : index
    %315 = vector.load %arg11[%c0_39, %c0_40] : memref<4x4xf32, #tpu.memory_space<vmem>>, vector<4x4xf32>
    %cst_41 = arith.constant dense<0.000000e+00> : vector<4x256xf32>
    %316 = tpu.matmul %315, %314, %cst_41 {dimension_numbers = #tpu.dot_dimension_numbers<[1], [0], [0], [1], [0, 0, 1, 1], [], []>, precision = #tpu.contract_precision<fp32>} : vector<4x4xf32>, vector<4x256xf32>, vector<4x256xf32> -> vector<4x256xf32>
    %317 = arith.addf %1, %316 : vector<4x256xf32>
    %c0_42 = arith.constant 0 : index
    %c0_43 = arith.constant 0 : index
    %c0_44 = arith.constant 0 : index
    %318 = vector.load %arg14[%c0_42, %c0_43, %c0_44] : memref<1x4x256xf32, #tpu.memory_space<vmem>>, vector<1x4x256xf32>
    %319 = vector.shape_cast %318 : vector<1x4x256xf32> to vector<4x256xf32>
    %320 = vector.shape_cast %317 : vector<4x256xf32> to vector<1x4x256xf32>
    tpu.vector_store %arg14[%c0_42, %c0_43, %c0_44], %320 {strides = array<i32>} : memref<1x4x256xf32, #tpu.memory_space<vmem>>, vector<1x4x256xf32>,
    return
  }
  func.func @transform_0(%arg0: i32) -> (i32, i32, i32) {
    %c0_i32 = arith.constant 0 : i32
    %c0_i32_0 = arith.constant 0 : i32
    %c0_i32_1 = arith.constant 0 : i32
    return %arg0, %c0_i32, %c0_i32_0 : i32, i32, i32
  }
  func.func @transform_1(%arg0: i32) -> (i32, i32) {
    %c0_i32 = arith.constant 0 : i32
    %c0_i32_0 = arith.constant 0 : i32
    %c0_i32_1 = arith.constant 0 : i32
    return %c0_i32, %c0_i32_0 : i32, i32
  }
  func.func @transform_2(%arg0: i32) -> (i32, i32) {
    %c0_i32 = arith.constant 0 : i32
    %c0_i32_0 = arith.constant 0 : i32
    %c0_i32_1 = arith.constant 0 : i32
    return %c0_i32, %c0_i32_0 : i32, i32
  }
  func.func @transform_3(%arg0: i32) -> (i32, i32) {
    %c0_i32 = arith.constant 0 : i32
    %c0_i32_0 = arith.constant 0 : i32
    %c0_i32_1 = arith.constant 0 : i32
    return %c0_i32, %c0_i32_0 : i32, i32
  }
  func.func @transform_4(%arg0: i32) -> (i32, i32) {
    %c0_i32 = arith.constant 0 : i32
    %c0_i32_0 = arith.constant 0 : i32
    %c0_i32_1 = arith.constant 0 : i32
    return %c0_i32, %c0_i32_0 : i32, i32
  }
  func.func @transform_5(%arg0: i32) -> (i32, i32) {
    %c0_i32 = arith.constant 0 : i32
    %c0_i32_0 = arith.constant 0 : i32
    %c0_i32_1 = arith.constant 0 : i32
    return %c0_i32, %c0_i32_0 : i32, i32
  }
  func.func @transform_6(%arg0: i32) -> (i32, i32) {
    %c0_i32 = arith.constant 0 : i32
    %c0_i32_0 = arith.constant 0 : i32
    %c0_i32_1 = arith.constant 0 : i32
    return %c0_i32, %c0_i32_0 : i32, i32
  }
  func.func @transform_7(%arg0: i32) -> (i32, i32) {
    %c0_i32 = arith.constant 0 : i32
    %c0_i32_0 = arith.constant 0 : i32
    %c0_i32_1 = arith.constant 0 : i32
    return %c0_i32, %c0_i32_0 : i32, i32
  }
  func.func @transform_8(%arg0: i32) -> (i32, i32) {
    %c0_i32 = arith.constant 0 : i32
    %c0_i32_0 = arith.constant 0 : i32
    %c0_i32_1 = arith.constant 0 : i32
    return %c0_i32, %c0_i32_0 : i32, i32
  }
  func.func @transform_9(%arg0: i32) -> (i32, i32) {
    %c0_i32 = arith.constant 0 : i32
    %c0_i32_0 = arith.constant 0 : i32
    %c0_i32_1 = arith.constant 0 : i32
    return %c0_i32, %c0_i32_0 : i32, i32
  }
  func.func @transform_10(%arg0: i32) -> (i32, i32) {
    %c0_i32 = arith.constant 0 : i32
    %c0_i32_0 = arith.constant 0 : i32
    %c0_i32_1 = arith.constant 0 : i32
    return %c0_i32, %c0_i32_0 : i32, i32
  }
  func.func @transform_11(%arg0: i32) -> (i32, i32) {
    %c0_i32 = arith.constant 0 : i32
    %c0_i32_0 = arith.constant 0 : i32
    %c0_i32_1 = arith.constant 0 : i32
    return %c0_i32, %c0_i32_0 : i32, i32
  }
  func.func @transform_12(%arg0: i32) -> (i32, i32) {
    %c0_i32 = arith.constant 0 : i32
    %c0_i32_0 = arith.constant 0 : i32
    %c0_i32_1 = arith.constant 0 : i32
    return %c0_i32, %c0_i32_0 : i32, i32
  }
  func.func @transform_13(%arg0: i32) -> (i32, i32, i32) {
    %c0_i32 = arith.constant 0 : i32
    %c0_i32_0 = arith.constant 0 : i32
    %c0_i32_1 = arith.constant 0 : i32
    return %arg0, %c0_i32, %c0_i32_0 : i32, i32, i32
  }
}

module attributes {stable_mosaic.version = 11 : i64} {
  func.func @_ffn_kernel(%arg0: i32, %arg1: i32, %arg2: memref<1x1x4x160xf32, #tpu.memory_space<vmem>>, %arg3: memref<1x8x160xf32, #tpu.memory_space<vmem>>, %arg4: memref<4x1xf32, #tpu.memory_space<vmem>>, %arg5: memref<4x1xf32, #tpu.memory_space<vmem>>, %arg6: memref<8x4xf32, #tpu.memory_space<vmem>>, %arg7: memref<8x4xf32, #tpu.memory_space<vmem>>, %arg8: memref<8x9xf32, #tpu.memory_space<vmem>>, %arg9: memref<8x9xf32, #tpu.memory_space<vmem>>, %arg10: memref<4x8xf32, #tpu.memory_space<vmem>>, %arg11: memref<1x4x128xf32, #tpu.memory_space<vmem>>) attributes {dimension_semantics = [#tpu.dimension_semantics<parallel>, #tpu.dimension_semantics<parallel>], iteration_bounds = array<i64: 2, 2>, scalar_prefetch = 0 : i64, scratch_operands = 0 : i64, tpu.core_type = #tpu.core_type<tc>, window_params = [{transform_indices = @transform_0, window_bounds = array<i64: 1, 1, 4, 160>}, {transform_indices = @transform_1, window_bounds = array<i64: 1, 8, 160>}, {pipeline_mode = #tpu.pipeline_mode<synchronous>, transform_indices = @transform_2, window_bounds = array<i64: 4, 1>}, {pipeline_mode = #tpu.pipeline_mode<synchronous>, transform_indices = @transform_3, window_bounds = array<i64: 4, 1>}, {pipeline_mode = #tpu.pipeline_mode<synchronous>, transform_indices = @transform_4, window_bounds = array<i64: 8, 4>}, {pipeline_mode = #tpu.pipeline_mode<synchronous>, transform_indices = @transform_5, window_bounds = array<i64: 8, 4>}, {pipeline_mode = #tpu.pipeline_mode<synchronous>, transform_indices = @transform_6, window_bounds = array<i64: 8, 9>}, {pipeline_mode = #tpu.pipeline_mode<synchronous>, transform_indices = @transform_7, window_bounds = array<i64: 8, 9>}, {pipeline_mode = #tpu.pipeline_mode<synchronous>, transform_indices = @transform_8, window_bounds = array<i64: 4, 8>}, {transform_indices = @transform_9, window_bounds = array<i64: 1, 4, 128>}]} {
    %c0 = arith.constant 0 : index
    %c0_0 = arith.constant 0 : index
    %c0_1 = arith.constant 0 : index
    %c0_2 = arith.constant 0 : index
    %0 = vector.load %arg2[%c0, %c0_0, %c0_1, %c0_2] : memref<1x1x4x160xf32, #tpu.memory_space<vmem>>, vector<1x1x4x160xf32>
    %1 = vector.shape_cast %0 : vector<1x1x4x160xf32> to vector<4x160xf32>
    %c0_3 = arith.constant 0 : index
    %c0_4 = arith.constant 0 : index
    %c0_5 = arith.constant 0 : index
    %2 = vector.load %arg3[%c0_3, %c0_4, %c0_5] : memref<1x8x160xf32, #tpu.memory_space<vmem>>, vector<1x8x160xf32>
    %3 = vector.shape_cast %2 : vector<1x8x160xf32> to vector<8x160xf32>
    %c0_6 = arith.constant 0 : index
    %c0_7 = arith.constant 0 : index
    %4 = vector.load %arg4[%c0_6, %c0_7] : memref<4x1xf32, #tpu.memory_space<vmem>>, vector<4x1xf32>
    %c0_8 = arith.constant 0 : index
    %c0_9 = arith.constant 0 : index
    %5 = vector.load %arg5[%c0_8, %c0_9] : memref<4x1xf32, #tpu.memory_space<vmem>>, vector<4x1xf32>
    %cst = arith.constant dense<0.000000e+00> : vector<160xf32>
    %6 = vector.multi_reduction <add>, %1, %cst [0] : vector<4x160xf32> to vector<160xf32>
    %7 = vector.shape_cast %6 : vector<160xf32> to vector<1x160xf32>
    %cst_10 = arith.constant 4.000000e+00 : f32
    %8 = vector.broadcast %cst_10 : f32 to vector<1x160xf32>
    %9 = arith.divf %7, %8 : vector<1x160xf32>
    %10 = vector.broadcast %9 : vector<1x160xf32> to vector<4x160xf32>
    %11 = arith.subf %1, %10 : vector<4x160xf32>
    %12 = arith.mulf %11, %11 : vector<4x160xf32>
    %cst_11 = arith.constant dense<0.000000e+00> : vector<160xf32>
    %13 = vector.multi_reduction <add>, %12, %cst_11 [0] : vector<4x160xf32> to vector<160xf32>
    %14 = vector.shape_cast %13 : vector<160xf32> to vector<1x160xf32>
    %cst_12 = arith.constant 4.000000e+00 : f32
    %15 = vector.broadcast %cst_12 : f32 to vector<1x160xf32>
    %16 = arith.divf %14, %15 : vector<1x160xf32>
    %cst_13 = arith.constant 9.99999974E-6 : f32
    %17 = vector.broadcast %cst_13 : f32 to vector<1x160xf32>
    %18 = arith.addf %16, %17 : vector<1x160xf32>
    %19 = math.rsqrt %18 : vector<1x160xf32>
    %20 = vector.broadcast %19 : vector<1x160xf32> to vector<4x160xf32>
    %21 = arith.mulf %11, %20 : vector<4x160xf32>
    %22 = vector.broadcast %4 : vector<4x1xf32> to vector<4x160xf32>
    %23 = arith.mulf %21, %22 : vector<4x160xf32>
    %24 = vector.broadcast %5 : vector<4x1xf32> to vector<4x160xf32>
    %25 = arith.addf %23, %24 : vector<4x160xf32>
    %c0_14 = arith.constant 0 : index
    %c0_15 = arith.constant 0 : index
    %26 = vector.load %arg6[%c0_14, %c0_15] : memref<8x4xf32, #tpu.memory_space<vmem>>, vector<8x4xf32>
    %cst_16 = arith.constant dense<0.000000e+00> : vector<8x160xf32>
    %27 = tpu.matmul %26, %25, %cst_16 {dimension_numbers = #tpu.dot_dimension_numbers<[1], [0], [0], [1], [0, 0, 1, 1], [], []>, precision = #tpu.contract_precision<fp32>} : vector<8x4xf32>, vector<4x160xf32>, vector<8x160xf32> -> vector<8x160xf32>
    %c0_17 = arith.constant 0 : index
    %c0_18 = arith.constant 0 : index
    %28 = vector.load %arg8[%c0_17, %c0_18] : memref<8x9xf32, #tpu.memory_space<vmem>>, vector<8x9xf32>
    %29 = vector.extract_strided_slice %28 {offsets = [0, 4], sizes = [8, 1], strides = [1, 1]} : vector<8x9xf32> to vector<8x1xf32>
    %30 = vector.broadcast %29 : vector<8x1xf32> to vector<8x160xf32>
    %31 = arith.mulf %27, %30 : vector<8x160xf32>
    %32 = vector.extract_strided_slice %27 {offsets = [0, 143], sizes = [8, 17], strides = [1, 1]} : vector<8x160xf32> to vector<8x17xf32>
    %33 = vector.extract_strided_slice %27 {offsets = [0, 0], sizes = [8, 143], strides = [1, 1]} : vector<8x160xf32> to vector<8x143xf32>
    %34 = tpu.concatenate %32, %33 in 1 : vector<8x17xf32>, vector<8x143xf32> -> vector<8x160xf32>
    %35 = vector.extract_strided_slice %3 {offsets = [0, 0], sizes = [1, 160], strides = [1, 1]} : vector<8x160xf32> to vector<1x160xf32>
    %36 = vector.broadcast %35 : vector<1x160xf32> to vector<8x160xf32>
    %37 = arith.mulf %34, %36 : vector<8x160xf32>
    %38 = vector.extract_strided_slice %28 {offsets = [0, 0], sizes = [8, 1], strides = [1, 1]} : vector<8x9xf32> to vector<8x1xf32>
    %39 = vector.broadcast %38 : vector<8x1xf32> to vector<8x160xf32>
    %40 = arith.mulf %37, %39 : vector<8x160xf32>
    %41 = arith.addf %31, %40 : vector<8x160xf32>
    %42 = vector.extract_strided_slice %27 {offsets = [0, 144], sizes = [8, 16], strides = [1, 1]} : vector<8x160xf32> to vector<8x16xf32>
    %43 = vector.extract_strided_slice %27 {offsets = [0, 0], sizes = [8, 144], strides = [1, 1]} : vector<8x160xf32> to vector<8x144xf32>
    %44 = tpu.concatenate %42, %43 in 1 : vector<8x16xf32>, vector<8x144xf32> -> vector<8x160xf32>
    %45 = vector.extract_strided_slice %3 {offsets = [1, 0], sizes = [1, 160], strides = [1, 1]} : vector<8x160xf32> to vector<1x160xf32>
    %46 = vector.broadcast %45 : vector<1x160xf32> to vector<8x160xf32>
    %47 = arith.mulf %44, %46 : vector<8x160xf32>
    %48 = vector.extract_strided_slice %28 {offsets = [0, 1], sizes = [8, 1], strides = [1, 1]} : vector<8x9xf32> to vector<8x1xf32>
    %49 = vector.broadcast %48 : vector<8x1xf32> to vector<8x160xf32>
    %50 = arith.mulf %47, %49 : vector<8x160xf32>
    %51 = arith.addf %41, %50 : vector<8x160xf32>
    %52 = vector.extract_strided_slice %27 {offsets = [0, 145], sizes = [8, 15], strides = [1, 1]} : vector<8x160xf32> to vector<8x15xf32>
    %53 = vector.extract_strided_slice %27 {offsets = [0, 0], sizes = [8, 145], strides = [1, 1]} : vector<8x160xf32> to vector<8x145xf32>
    %54 = tpu.concatenate %52, %53 in 1 : vector<8x15xf32>, vector<8x145xf32> -> vector<8x160xf32>
    %55 = vector.extract_strided_slice %3 {offsets = [2, 0], sizes = [1, 160], strides = [1, 1]} : vector<8x160xf32> to vector<1x160xf32>
    %56 = vector.broadcast %55 : vector<1x160xf32> to vector<8x160xf32>
    %57 = arith.mulf %54, %56 : vector<8x160xf32>
    %58 = vector.extract_strided_slice %28 {offsets = [0, 2], sizes = [8, 1], strides = [1, 1]} : vector<8x9xf32> to vector<8x1xf32>
    %59 = vector.broadcast %58 : vector<8x1xf32> to vector<8x160xf32>
    %60 = arith.mulf %57, %59 : vector<8x160xf32>
    %61 = arith.addf %51, %60 : vector<8x160xf32>
    %62 = vector.extract_strided_slice %27 {offsets = [0, 159], sizes = [8, 1], strides = [1, 1]} : vector<8x160xf32> to vector<8x1xf32>
    %63 = vector.extract_strided_slice %27 {offsets = [0, 0], sizes = [8, 159], strides = [1, 1]} : vector<8x160xf32> to vector<8x159xf32>
    %64 = tpu.concatenate %62, %63 in 1 : vector<8x1xf32>, vector<8x159xf32> -> vector<8x160xf32>
    %65 = vector.extract_strided_slice %3 {offsets = [3, 0], sizes = [1, 160], strides = [1, 1]} : vector<8x160xf32> to vector<1x160xf32>
    %66 = vector.broadcast %65 : vector<1x160xf32> to vector<8x160xf32>
    %67 = arith.mulf %64, %66 : vector<8x160xf32>
    %68 = vector.extract_strided_slice %28 {offsets = [0, 3], sizes = [8, 1], strides = [1, 1]} : vector<8x9xf32> to vector<8x1xf32>
    %69 = vector.broadcast %68 : vector<8x1xf32> to vector<8x160xf32>
    %70 = arith.mulf %67, %69 : vector<8x160xf32>
    %71 = arith.addf %61, %70 : vector<8x160xf32>
    %72 = vector.extract_strided_slice %27 {offsets = [0, 1], sizes = [8, 159], strides = [1, 1]} : vector<8x160xf32> to vector<8x159xf32>
    %73 = vector.extract_strided_slice %27 {offsets = [0, 0], sizes = [8, 1], strides = [1, 1]} : vector<8x160xf32> to vector<8x1xf32>
    %74 = tpu.concatenate %72, %73 in 1 : vector<8x159xf32>, vector<8x1xf32> -> vector<8x160xf32>
    %75 = vector.extract_strided_slice %3 {offsets = [4, 0], sizes = [1, 160], strides = [1, 1]} : vector<8x160xf32> to vector<1x160xf32>
    %76 = vector.broadcast %75 : vector<1x160xf32> to vector<8x160xf32>
    %77 = arith.mulf %74, %76 : vector<8x160xf32>
    %78 = vector.extract_strided_slice %28 {offsets = [0, 5], sizes = [8, 1], strides = [1, 1]} : vector<8x9xf32> to vector<8x1xf32>
    %79 = vector.broadcast %78 : vector<8x1xf32> to vector<8x160xf32>
    %80 = arith.mulf %77, %79 : vector<8x160xf32>
    %81 = arith.addf %71, %80 : vector<8x160xf32>
    %82 = vector.extract_strided_slice %27 {offsets = [0, 15], sizes = [8, 145], strides = [1, 1]} : vector<8x160xf32> to vector<8x145xf32>
    %83 = vector.extract_strided_slice %27 {offsets = [0, 0], sizes = [8, 15], strides = [1, 1]} : vector<8x160xf32> to vector<8x15xf32>
    %84 = tpu.concatenate %82, %83 in 1 : vector<8x145xf32>, vector<8x15xf32> -> vector<8x160xf32>
    %85 = vector.extract_strided_slice %3 {offsets = [5, 0], sizes = [1, 160], strides = [1, 1]} : vector<8x160xf32> to vector<1x160xf32>
    %86 = vector.broadcast %85 : vector<1x160xf32> to vector<8x160xf32>
    %87 = arith.mulf %84, %86 : vector<8x160xf32>
    %88 = vector.extract_strided_slice %28 {offsets = [0, 6], sizes = [8, 1], strides = [1, 1]} : vector<8x9xf32> to vector<8x1xf32>
    %89 = vector.broadcast %88 : vector<8x1xf32> to vector<8x160xf32>
    %90 = arith.mulf %87, %89 : vector<8x160xf32>
    %91 = arith.addf %81, %90 : vector<8x160xf32>
    %92 = vector.extract_strided_slice %27 {offsets = [0, 16], sizes = [8, 144], strides = [1, 1]} : vector<8x160xf32> to vector<8x144xf32>
    %93 = vector.extract_strided_slice %27 {offsets = [0, 0], sizes = [8, 16], strides = [1, 1]} : vector<8x160xf32> to vector<8x16xf32>
    %94 = tpu.concatenate %92, %93 in 1 : vector<8x144xf32>, vector<8x16xf32> -> vector<8x160xf32>
    %95 = vector.extract_strided_slice %3 {offsets = [6, 0], sizes = [1, 160], strides = [1, 1]} : vector<8x160xf32> to vector<1x160xf32>
    %96 = vector.broadcast %95 : vector<1x160xf32> to vector<8x160xf32>
    %97 = arith.mulf %94, %96 : vector<8x160xf32>
    %98 = vector.extract_strided_slice %28 {offsets = [0, 7], sizes = [8, 1], strides = [1, 1]} : vector<8x9xf32> to vector<8x1xf32>
    %99 = vector.broadcast %98 : vector<8x1xf32> to vector<8x160xf32>
    %100 = arith.mulf %97, %99 : vector<8x160xf32>
    %101 = arith.addf %91, %100 : vector<8x160xf32>
    %102 = vector.extract_strided_slice %27 {offsets = [0, 17], sizes = [8, 143], strides = [1, 1]} : vector<8x160xf32> to vector<8x143xf32>
    %103 = vector.extract_strided_slice %27 {offsets = [0, 0], sizes = [8, 17], strides = [1, 1]} : vector<8x160xf32> to vector<8x17xf32>
    %104 = tpu.concatenate %102, %103 in 1 : vector<8x143xf32>, vector<8x17xf32> -> vector<8x160xf32>
    %105 = vector.extract_strided_slice %3 {offsets = [7, 0], sizes = [1, 160], strides = [1, 1]} : vector<8x160xf32> to vector<1x160xf32>
    %106 = vector.broadcast %105 : vector<1x160xf32> to vector<8x160xf32>
    %107 = arith.mulf %104, %106 : vector<8x160xf32>
    %108 = vector.extract_strided_slice %28 {offsets = [0, 8], sizes = [8, 1], strides = [1, 1]} : vector<8x9xf32> to vector<8x1xf32>
    %109 = vector.broadcast %108 : vector<8x1xf32> to vector<8x160xf32>
    %110 = arith.mulf %107, %109 : vector<8x160xf32>
    %111 = arith.addf %101, %110 : vector<8x160xf32>
    %c0_19 = arith.constant 0 : index
    %c0_20 = arith.constant 0 : index
    %112 = vector.load %arg7[%c0_19, %c0_20] : memref<8x4xf32, #tpu.memory_space<vmem>>, vector<8x4xf32>
    %cst_21 = arith.constant dense<0.000000e+00> : vector<8x160xf32>
    %113 = tpu.matmul %112, %25, %cst_21 {dimension_numbers = #tpu.dot_dimension_numbers<[1], [0], [0], [1], [0, 0, 1, 1], [], []>, precision = #tpu.contract_precision<fp32>} : vector<8x4xf32>, vector<4x160xf32>, vector<8x160xf32> -> vector<8x160xf32>
    %c0_22 = arith.constant 0 : index
    %c0_23 = arith.constant 0 : index
    %114 = vector.load %arg9[%c0_22, %c0_23] : memref<8x9xf32, #tpu.memory_space<vmem>>, vector<8x9xf32>
    %115 = vector.extract_strided_slice %114 {offsets = [0, 4], sizes = [8, 1], strides = [1, 1]} : vector<8x9xf32> to vector<8x1xf32>
    %116 = vector.broadcast %115 : vector<8x1xf32> to vector<8x160xf32>
    %117 = arith.mulf %113, %116 : vector<8x160xf32>
    %118 = vector.extract_strided_slice %113 {offsets = [0, 143], sizes = [8, 17], strides = [1, 1]} : vector<8x160xf32> to vector<8x17xf32>
    %119 = vector.extract_strided_slice %113 {offsets = [0, 0], sizes = [8, 143], strides = [1, 1]} : vector<8x160xf32> to vector<8x143xf32>
    %120 = tpu.concatenate %118, %119 in 1 : vector<8x17xf32>, vector<8x143xf32> -> vector<8x160xf32>
    %121 = vector.extract_strided_slice %3 {offsets = [0, 0], sizes = [1, 160], strides = [1, 1]} : vector<8x160xf32> to vector<1x160xf32>
    %122 = vector.broadcast %121 : vector<1x160xf32> to vector<8x160xf32>
    %123 = arith.mulf %120, %122 : vector<8x160xf32>
    %124 = vector.extract_strided_slice %114 {offsets = [0, 0], sizes = [8, 1], strides = [1, 1]} : vector<8x9xf32> to vector<8x1xf32>
    %125 = vector.broadcast %124 : vector<8x1xf32> to vector<8x160xf32>
    %126 = arith.mulf %123, %125 : vector<8x160xf32>
    %127 = arith.addf %117, %126 : vector<8x160xf32>
    %128 = vector.extract_strided_slice %113 {offsets = [0, 144], sizes = [8, 16], strides = [1, 1]} : vector<8x160xf32> to vector<8x16xf32>
    %129 = vector.extract_strided_slice %113 {offsets = [0, 0], sizes = [8, 144], strides = [1, 1]} : vector<8x160xf32> to vector<8x144xf32>
    %130 = tpu.concatenate %128, %129 in 1 : vector<8x16xf32>, vector<8x144xf32> -> vector<8x160xf32>
    %131 = vector.extract_strided_slice %3 {offsets = [1, 0], sizes = [1, 160], strides = [1, 1]} : vector<8x160xf32> to vector<1x160xf32>
    %132 = vector.broadcast %131 : vector<1x160xf32> to vector<8x160xf32>
    %133 = arith.mulf %130, %132 : vector<8x160xf32>
    %134 = vector.extract_strided_slice %114 {offsets = [0, 1], sizes = [8, 1], strides = [1, 1]} : vector<8x9xf32> to vector<8x1xf32>
    %135 = vector.broadcast %134 : vector<8x1xf32> to vector<8x160xf32>
    %136 = arith.mulf %133, %135 : vector<8x160xf32>
    %137 = arith.addf %127, %136 : vector<8x160xf32>
    %138 = vector.extract_strided_slice %113 {offsets = [0, 145], sizes = [8, 15], strides = [1, 1]} : vector<8x160xf32> to vector<8x15xf32>
    %139 = vector.extract_strided_slice %113 {offsets = [0, 0], sizes = [8, 145], strides = [1, 1]} : vector<8x160xf32> to vector<8x145xf32>
    %140 = tpu.concatenate %138, %139 in 1 : vector<8x15xf32>, vector<8x145xf32> -> vector<8x160xf32>
    %141 = vector.extract_strided_slice %3 {offsets = [2, 0], sizes = [1, 160], strides = [1, 1]} : vector<8x160xf32> to vector<1x160xf32>
    %142 = vector.broadcast %141 : vector<1x160xf32> to vector<8x160xf32>
    %143 = arith.mulf %140, %142 : vector<8x160xf32>
    %144 = vector.extract_strided_slice %114 {offsets = [0, 2], sizes = [8, 1], strides = [1, 1]} : vector<8x9xf32> to vector<8x1xf32>
    %145 = vector.broadcast %144 : vector<8x1xf32> to vector<8x160xf32>
    %146 = arith.mulf %143, %145 : vector<8x160xf32>
    %147 = arith.addf %137, %146 : vector<8x160xf32>
    %148 = vector.extract_strided_slice %113 {offsets = [0, 159], sizes = [8, 1], strides = [1, 1]} : vector<8x160xf32> to vector<8x1xf32>
    %149 = vector.extract_strided_slice %113 {offsets = [0, 0], sizes = [8, 159], strides = [1, 1]} : vector<8x160xf32> to vector<8x159xf32>
    %150 = tpu.concatenate %148, %149 in 1 : vector<8x1xf32>, vector<8x159xf32> -> vector<8x160xf32>
    %151 = vector.extract_strided_slice %3 {offsets = [3, 0], sizes = [1, 160], strides = [1, 1]} : vector<8x160xf32> to vector<1x160xf32>
    %152 = vector.broadcast %151 : vector<1x160xf32> to vector<8x160xf32>
    %153 = arith.mulf %150, %152 : vector<8x160xf32>
    %154 = vector.extract_strided_slice %114 {offsets = [0, 3], sizes = [8, 1], strides = [1, 1]} : vector<8x9xf32> to vector<8x1xf32>
    %155 = vector.broadcast %154 : vector<8x1xf32> to vector<8x160xf32>
    %156 = arith.mulf %153, %155 : vector<8x160xf32>
    %157 = arith.addf %147, %156 : vector<8x160xf32>
    %158 = vector.extract_strided_slice %113 {offsets = [0, 1], sizes = [8, 159], strides = [1, 1]} : vector<8x160xf32> to vector<8x159xf32>
    %159 = vector.extract_strided_slice %113 {offsets = [0, 0], sizes = [8, 1], strides = [1, 1]} : vector<8x160xf32> to vector<8x1xf32>
    %160 = tpu.concatenate %158, %159 in 1 : vector<8x159xf32>, vector<8x1xf32> -> vector<8x160xf32>
    %161 = vector.extract_strided_slice %3 {offsets = [4, 0], sizes = [1, 160], strides = [1, 1]} : vector<8x160xf32> to vector<1x160xf32>
    %162 = vector.broadcast %161 : vector<1x160xf32> to vector<8x160xf32>
    %163 = arith.mulf %160, %162 : vector<8x160xf32>
    %164 = vector.extract_strided_slice %114 {offsets = [0, 5], sizes = [8, 1], strides = [1, 1]} : vector<8x9xf32> to vector<8x1xf32>
    %165 = vector.broadcast %164 : vector<8x1xf32> to vector<8x160xf32>
    %166 = arith.mulf %163, %165 : vector<8x160xf32>
    %167 = arith.addf %157, %166 : vector<8x160xf32>
    %168 = vector.extract_strided_slice %113 {offsets = [0, 15], sizes = [8, 145], strides = [1, 1]} : vector<8x160xf32> to vector<8x145xf32>
    %169 = vector.extract_strided_slice %113 {offsets = [0, 0], sizes = [8, 15], strides = [1, 1]} : vector<8x160xf32> to vector<8x15xf32>
    %170 = tpu.concatenate %168, %169 in 1 : vector<8x145xf32>, vector<8x15xf32> -> vector<8x160xf32>
    %171 = vector.extract_strided_slice %3 {offsets = [5, 0], sizes = [1, 160], strides = [1, 1]} : vector<8x160xf32> to vector<1x160xf32>
    %172 = vector.broadcast %171 : vector<1x160xf32> to vector<8x160xf32>
    %173 = arith.mulf %170, %172 : vector<8x160xf32>
    %174 = vector.extract_strided_slice %114 {offsets = [0, 6], sizes = [8, 1], strides = [1, 1]} : vector<8x9xf32> to vector<8x1xf32>
    %175 = vector.broadcast %174 : vector<8x1xf32> to vector<8x160xf32>
    %176 = arith.mulf %173, %175 : vector<8x160xf32>
    %177 = arith.addf %167, %176 : vector<8x160xf32>
    %178 = vector.extract_strided_slice %113 {offsets = [0, 16], sizes = [8, 144], strides = [1, 1]} : vector<8x160xf32> to vector<8x144xf32>
    %179 = vector.extract_strided_slice %113 {offsets = [0, 0], sizes = [8, 16], strides = [1, 1]} : vector<8x160xf32> to vector<8x16xf32>
    %180 = tpu.concatenate %178, %179 in 1 : vector<8x144xf32>, vector<8x16xf32> -> vector<8x160xf32>
    %181 = vector.extract_strided_slice %3 {offsets = [6, 0], sizes = [1, 160], strides = [1, 1]} : vector<8x160xf32> to vector<1x160xf32>
    %182 = vector.broadcast %181 : vector<1x160xf32> to vector<8x160xf32>
    %183 = arith.mulf %180, %182 : vector<8x160xf32>
    %184 = vector.extract_strided_slice %114 {offsets = [0, 7], sizes = [8, 1], strides = [1, 1]} : vector<8x9xf32> to vector<8x1xf32>
    %185 = vector.broadcast %184 : vector<8x1xf32> to vector<8x160xf32>
    %186 = arith.mulf %183, %185 : vector<8x160xf32>
    %187 = arith.addf %177, %186 : vector<8x160xf32>
    %188 = vector.extract_strided_slice %113 {offsets = [0, 17], sizes = [8, 143], strides = [1, 1]} : vector<8x160xf32> to vector<8x143xf32>
    %189 = vector.extract_strided_slice %113 {offsets = [0, 0], sizes = [8, 17], strides = [1, 1]} : vector<8x160xf32> to vector<8x17xf32>
    %190 = tpu.concatenate %188, %189 in 1 : vector<8x143xf32>, vector<8x17xf32> -> vector<8x160xf32>
    %191 = vector.extract_strided_slice %3 {offsets = [7, 0], sizes = [1, 160], strides = [1, 1]} : vector<8x160xf32> to vector<1x160xf32>
    %192 = vector.broadcast %191 : vector<1x160xf32> to vector<8x160xf32>
    %193 = arith.mulf %190, %192 : vector<8x160xf32>
    %194 = vector.extract_strided_slice %114 {offsets = [0, 8], sizes = [8, 1], strides = [1, 1]} : vector<8x9xf32> to vector<8x1xf32>
    %195 = vector.broadcast %194 : vector<8x1xf32> to vector<8x160xf32>
    %196 = arith.mulf %193, %195 : vector<8x160xf32>
    %197 = arith.addf %187, %196 : vector<8x160xf32>
    %198 = arith.mulf %111, %111 : vector<8x160xf32>
    %199 = arith.mulf %111, %198 : vector<8x160xf32>
    %cst_24 = arith.constant 4.471500e-02 : f32
    %200 = vector.broadcast %cst_24 : f32 to vector<8x160xf32>
    %201 = arith.mulf %200, %199 : vector<8x160xf32>
    %202 = arith.addf %111, %201 : vector<8x160xf32>
    %cst_25 = arith.constant 0.797884583 : f32
    %203 = vector.broadcast %cst_25 : f32 to vector<8x160xf32>
    %204 = arith.mulf %203, %202 : vector<8x160xf32>
    %205 = math.tanh %204 : vector<8x160xf32>
    %cst_26 = arith.constant 1.000000e+00 : f32
    %206 = vector.broadcast %cst_26 : f32 to vector<8x160xf32>
    %207 = arith.addf %206, %205 : vector<8x160xf32>
    %cst_27 = arith.constant 5.000000e-01 : f32
    %208 = vector.broadcast %cst_27 : f32 to vector<8x160xf32>
    %209 = arith.mulf %208, %207 : vector<8x160xf32>
    %210 = arith.mulf %111, %209 : vector<8x160xf32>
    %211 = arith.mulf %210, %197 : vector<8x160xf32>
    %c0_28 = arith.constant 0 : index
    %c0_29 = arith.constant 0 : index
    %212 = vector.load %arg10[%c0_28, %c0_29] : memref<4x8xf32, #tpu.memory_space<vmem>>, vector<4x8xf32>
    %cst_30 = arith.constant dense<0.000000e+00> : vector<4x160xf32>
    %213 = tpu.matmul %212, %211, %cst_30 {dimension_numbers = #tpu.dot_dimension_numbers<[1], [0], [0], [1], [0, 0, 1, 1], [], []>, precision = #tpu.contract_precision<fp32>} : vector<4x8xf32>, vector<8x160xf32>, vector<4x160xf32> -> vector<4x160xf32>
    %214 = arith.addf %1, %213 : vector<4x160xf32>
    %215 = vector.extract_strided_slice %214 {offsets = [0, 16], sizes = [4, 128], strides = [1, 1]} : vector<4x160xf32> to vector<4x128xf32>
    %c0_31 = arith.constant 0 : index
    %c0_32 = arith.constant 0 : index
    %c0_33 = arith.constant 0 : index
    %216 = vector.load %arg11[%c0_31, %c0_32, %c0_33] : memref<1x4x128xf32, #tpu.memory_space<vmem>>, vector<1x4x128xf32>
    %217 = vector.shape_cast %216 : vector<1x4x128xf32> to vector<4x128xf32>
    %218 = vector.shape_cast %215 : vector<4x128xf32> to vector<1x4x128xf32>
    tpu.vector_store %arg11[%c0_31, %c0_32, %c0_33], %218 {strides = array<i32>} : memref<1x4x128xf32, #tpu.memory_space<vmem>>, vector<1x4x128xf32>,
    return
  }
  func.func @transform_0(%arg0: i32, %arg1: i32) -> (i32, i32, i32, i32) {
    %c0_i32 = arith.constant 0 : i32
    %c0_i32_0 = arith.constant 0 : i32
    %c0_i32_1 = arith.constant 0 : i32
    return %arg0, %arg1, %c0_i32, %c0_i32_0 : i32, i32, i32, i32
  }
  func.func @transform_1(%arg0: i32, %arg1: i32) -> (i32, i32, i32) {
    %c0_i32 = arith.constant 0 : i32
    %c0_i32_0 = arith.constant 0 : i32
    %c0_i32_1 = arith.constant 0 : i32
    return %arg1, %c0_i32, %c0_i32_0 : i32, i32, i32
  }
  func.func @transform_2(%arg0: i32, %arg1: i32) -> (i32, i32) {
    %c0_i32 = arith.constant 0 : i32
    %c0_i32_0 = arith.constant 0 : i32
    %c0_i32_1 = arith.constant 0 : i32
    return %c0_i32, %c0_i32_0 : i32, i32
  }
  func.func @transform_3(%arg0: i32, %arg1: i32) -> (i32, i32) {
    %c0_i32 = arith.constant 0 : i32
    %c0_i32_0 = arith.constant 0 : i32
    %c0_i32_1 = arith.constant 0 : i32
    return %c0_i32, %c0_i32_0 : i32, i32
  }
  func.func @transform_4(%arg0: i32, %arg1: i32) -> (i32, i32) {
    %c0_i32 = arith.constant 0 : i32
    %c0_i32_0 = arith.constant 0 : i32
    %c0_i32_1 = arith.constant 0 : i32
    return %c0_i32, %c0_i32_0 : i32, i32
  }
  func.func @transform_5(%arg0: i32, %arg1: i32) -> (i32, i32) {
    %c0_i32 = arith.constant 0 : i32
    %c0_i32_0 = arith.constant 0 : i32
    %c0_i32_1 = arith.constant 0 : i32
    return %c0_i32, %c0_i32_0 : i32, i32
  }
  func.func @transform_6(%arg0: i32, %arg1: i32) -> (i32, i32) {
    %c0_i32 = arith.constant 0 : i32
    %c0_i32_0 = arith.constant 0 : i32
    %c0_i32_1 = arith.constant 0 : i32
    return %c0_i32, %c0_i32_0 : i32, i32
  }
  func.func @transform_7(%arg0: i32, %arg1: i32) -> (i32, i32) {
    %c0_i32 = arith.constant 0 : i32
    %c0_i32_0 = arith.constant 0 : i32
    %c0_i32_1 = arith.constant 0 : i32
    return %c0_i32, %c0_i32_0 : i32, i32
  }
  func.func @transform_8(%arg0: i32, %arg1: i32) -> (i32, i32) {
    %c0_i32 = arith.constant 0 : i32
    %c0_i32_0 = arith.constant 0 : i32
    %c0_i32_1 = arith.constant 0 : i32
    return %c0_i32, %c0_i32_0 : i32, i32
  }
  func.func @transform_9(%arg0: i32, %arg1: i32) -> (i32, i32, i32) {
    %c0_i32 = arith.constant 0 : i32
    %c0_i32_0 = arith.constant 0 : i32
    return %arg0, %c0_i32, %arg1 : i32, i32, i32
  }
}

</mosaic_0001>

<bundles_post_ra>
// kernel: transformer_block.3
= control target key start
LH: loop header
LB: loop body
LE: loop exit
PB: predicated region body
PF: predicated region fallthrough
CT: control target
= control target key end

     0   :  { %s2094_s30 = smov 0   ;;  %s2096_s10 = smov 0   ;;  %s2523_s0 = inlined_call_operand.vmem [shape: f32[2,2,4,160], index: 0, kind: input, shape index: {}]   ;;  %s2524_s1 = inlined_call_operand.vmem [shape: f32[2,8,160], index: 1, kind: input, shape index: {}]   ;;  %s2525_s2 = inlined_call_operand.vmem [shape: f32[4,1], index: 2, kind: input, shape index: {}]   ;;  %s2526_s3 = inlined_call_operand.vmem [shape: f32[4,1], index: 3, kind: input, shape index: {}]   ;;  %s2527_s4 = inlined_call_operand.vmem [shape: f32[8,4], index: 4, kind: input, shape index: {}]   ;;  %s2528_s5 = inlined_call_operand.vmem [shape: f32[8,4], index: 5, kind: input, shape index: {}]   ;;  %s2529_s6 = inlined_call_operand.vmem [shape: f32[8,9], index: 6, kind: input, shape index: {}]   ;;  %s2530_s7 = inlined_call_operand.vmem [shape: f32[8,9], index: 7, kind: input, shape index: {}]   ;;  %s2531_s8 = inlined_call_operand.vmem [shape: f32[4,8], index: 8, kind: input, shape index: {}]   ;;  %s2532_s9 = inlined_call_operand.vmem [shape: f32[2,4,256], index: 9, kind: output, shape index: {}]  }
   0x1   :  { %s2098_s11 = smov 0   ;;  %s2100_s12 = smov 0  }
   0x2   :  { %s2102_s13 = smov 0  }
   0x3 LB: > { %s28_s14 = sadd.s32 1, %s2013_s11  ;;  %s31_s15 = sadd.s32 1, %s2017_s12  ;;  %s2021_s13 = sphi %s2102_s13, %s19_s13   ;;  %s2017_s12 = sphi %s2100_s12, %s2536_s12   ;;  %s2013_s11 = sphi %s2098_s11, %s2535_s11   ;;  %s2009_s10 = sphi %s2096_s10, %s2534_s10   ;;  %s2005_s30 = sphi %s2094_s30, %s2533_s30  }
   0x4   : > { %p29_p0 = scmp.ge.s32.totalorder %s28_s14, 2  ;;  %p1886_p1 = scmp.ge.s32.totalorder %s2021_s13, 1 }
   0x5   : > { %p317_p2 = scmp.lt.s32.totalorder %s2021_s13, 5 }
   0x6   : > { %s2538_s14 = smov (%p29_p0, %s28_s14), 0  ;;  %s2540_s15 = smov (!%p29_p0, %s31_s15), %s2017_s12 }
   0x7   : > { %p318_p3 = pnand %p1886_p1, %p317_p2  ;;  %p33_p4 = scmp.ge.s32.totalorder %s2540_s15, 2 }
   0x8   : > { %p365_p5 = scmp.lt.s32.totalorder (!%p318_p3), %s2009_s10, 1  ;;  %p367_p6 = scmp.lt.s32.totalorder (!%p318_p3), %s2005_s30, 1 }
   0x9   : > { %s2542_s15 = smov (%p33_p4, %s2540_s15), 0  ;;  %321 = sbr.rel (%p318_p3) target bundleno = 849 (0x351), region = 56 }
   0xa   : > { %s2034_s21 = smov (!%p318_p3), 31   ;;  %s2037_s24 = smov (!%p318_p3), 1  }
   0xb   : > { %s2038_s25 = smov (!%p318_p3), 15   ;;  %s2040_s27 = smov (!%p318_p3), 113  }
   0xc   : > { %s2041_s28 = smov (!%p318_p3), 112   ;;  %s2042_s29 = smov (!%p318_p3), 111  }
   0xd   : > { %s2043_s16 = smov (!%p318_p3), 97  }
   0xe   : > { %v390_v0 = vld [vmem:[%s2525_s2] sm:$0xf]  ;;  %v2023_v1 = vmov 0   ;;  %s2544_s10 = smov (!%p365_p5, %s2009_s10), 1  ;;  %v2024_v2 = vmov 4.0   ;;  %s2546_s30 = smov (!%p367_p6, %s2005_s30), 1 }
   0xf   : > { %1958 = vset.pattern.permute.xlu0 %v2023_v1  ;;  %1960 = vset.pattern.permute.xlu1 %v2023_v1  ;;  %1973 = vrcp.f32 %v2024_v2  ;;  %s1888_s18 = sshll.u32 %s2544_s10, 2  ;;  %s1887_s19 = sshll.u32 %s2546_s30, 1  ;;  %v391_v3 = vld [vmem:[%s2526_s3] sm:$0xf]  ;;  %vm398_vm0 = vcmask 1043456   ;;  %vm406_vm1 = vcmask 257024  }
  0x10   : > { %482 = vperm.xlu0 %1958, %v390_v0   ;;  %s371_s22 = sadd.s32 %s1888_s18, %s1887_s19  ;;  %vm505_vm9 = vcmask 31744   ;;  %s1896_s17 = sshll.u32 %s2546_s30, 4  ;;  %vm822_vm10 = vcmask 138240   ;;  %vm846_vm11 = vcmask 130048   ;;  %vm870_vm12 = vcmask 121856  }
  0x11   : > { %s1889_s23 = sshll.u32 %s371_s22, 2  ;;  %s2035_s22 = smov 16   ;;  %vm938_vm13 = vcmask 924672   ;;  %vm894_vm14 = vcmask 7168   ;;  %vm955_vm15 = vcmask 916480  }
  0x12   : > { %s373_s26 = scalar_lea.vmem %s2523_s0, %s1889_s23  ;;  %s2036_s23 = smov 17  }
  0x13   : > { %v2139_v5 = vld [vmem:[%s373_s26] sm:$0xff]  ;;  %s2039_s26 = smov 127   ;;  %s378_s20 = scalar_lea.vmem %s2524_s1, %s1896_s17 }
  0x14   : > { %393 = vst [vmem:[#allocation1] ss:$2 sm:$0xff] %v2139_v5 }
  0x15   : > { %v1974_v4 = vpop.eup %1973 }
  0x16   : > { %v415_v6 = vmul.f32 4.0, %v1974_v4  ;;  %vm419_vm2 = vweird.f32 %v1974_v4 }
  0x18   : > { %492 = vperm.xlu0 %1958, %v391_v3   ;;  %v416_v7 = vsub.f32 1.0, %v415_v6 }
  0x1a   : > { %v417_v14 = vmul.f32 %v1974_v4, %v416_v7  ;;  %v2025_v7 = vmov 839922192  }
  0x1b   : > { %v394_v8 = vld.sshfl [vmem:[#allocation1] sm:$0xff pattern:$0x75316420]  ;;  %v395_v9 = vld.sshfl [vmem:[#allocation1 + $0x8] sm:$0xff pattern:$0x75316420] }
  0x1c   : > { %v399_v10 = vsel %vm398_vm0, %v394_v8, 0.0  ;;  %v407_v11 = vsel %vm406_vm1, %v395_v9, 0.0  ;;  %v418_v19 = vadd.f32 %v1974_v4, %v417_v14  ;;  %v485_v8 = vunpack.c.l.s4 %v2025_v7  ;;  %v500_v9 = vld [vmem:[%s2527_s4] sm:$0xff] }
  0x1d   : > { %v400_v12 = vrot.slane %v399_v10, 4  ;;  %v408_v13 = vrot.slane %v407_v11, 4 }
  0x1e   : > { %v420_v24 = vsel %vm419_vm2, %v1974_v4, %v418_v19  ;;  %vm915_vm2 = vcmask 1039360  }
  0x1f   : > { %v401_v15 = vadd.f32 %v400_v12, %v399_v10  ;;  %v409_v16 = vadd.f32 %v408_v13, %v407_v11  ;;  %v486_v11 = vunpack.c.0.s8 %v485_v8  ;;  %v507_v12 = vsel %vm505_vm9, %v500_v9, 0 }
  0x20   : > { %v2153_v14 = vand.u32 4294901760, %v507_v12 }
  0x21   : > { %v402_v17 = vrot.slane %v401_v15, 2  ;;  %v410_v18 = vrot.slane %v409_v16, 2 }
  0x23   : > { %v403_v20 = vadd.f32 %v402_v17, %v401_v15  ;;  %v411_v21 = vadd.f32 %v410_v18, %v409_v16  ;;  %v2156_v18 = vsub.f32 %v507_v12, %v2153_v14 }
  0x25   : > { %v404_v22 = vrot.slane %v403_v20, 1  ;;  %v412_v23 = vrot.slane %v411_v21, 1 }
  0x27   : > { %v405_v25 = vadd.f32 %v404_v22, %v403_v20  ;;  %v413_v26 = vadd.f32 %v412_v23, %v411_v21  ;;  %v2159_v20 = vand.u32 4294901760, %v2156_v18 }
  0x29   : > { %v421_v27 = vmul.f32 %v420_v24, %v405_v25  ;;  %v422_v28 = vmul.f32 %v420_v24, %v413_v26  ;;  %v533_v21 = vsub.f32 %v2156_v18, %v2159_v20 }
  0x2b   : > { %v425_v29 = vrot.slane %v422_v28, 4  ;;  %v534_v25 = vand.u32 4294901760, %v533_v21 }
  0x2d   : > { %v426_v30 = vsel %vm398_vm0, %v421_v27, %v425_v29  ;;  %v2168_v29 = vld [vmem:[%s2529_s6] sm:$0xff] }
  0x2e   : > { %v428_v31 = vsub.f32 %v2139_v5, %v426_v30  ;;  %v987_v30 = vld [vmem:[%s2528_s5] sm:$0xff]  ;;  %832 = vperm.xlu1 %1960, %v2168_v29  }
  0x30   : > { %v429_v32 = vmul.f32 %v428_v31, %v428_v31 }
  0x32   : > { %431 = vst [vmem:[#allocation1] ss:$2 sm:$0xff] %v429_v32 }
  0x39   : > { %v432_v33 = vld.sshfl [vmem:[#allocation1] sm:$0xff pattern:$0x75316420]  ;;  %v433_v34 = vld.sshfl [vmem:[#allocation1 + $0x8] sm:$0xff pattern:$0x75316420] }
  0x3a   : > { %v436_v35 = vsel %vm398_vm0, %v432_v33, 0.0  ;;  %v443_v36 = vsel %vm406_vm1, %v433_v34, 0.0  ;;  %v992_v34 = vsel %vm505_vm9, %v987_v30, 0  ;;  %vm972_vm1 = vcmask 908288  }
  0x3b   : > { %v437_v37 = vrot.slane %v436_v35, 4  ;;  %v444_v38 = vrot.slane %v443_v36, 4 }
  0x3d   : > { %v438_v39 = vadd.f32 %v437_v37, %v436_v35  ;;  %v445_v40 = vadd.f32 %v444_v38, %v443_v36 }
  0x3f   : > { %v439_v41 = vrot.slane %v438_v39, 2  ;;  %v446_v42 = vrot.slane %v445_v40, 2 }
  0x41   : > { %v440_v43 = vadd.f32 %v439_v41, %v438_v39  ;;  %v447_v44 = vadd.f32 %v446_v42, %v445_v40  ;;  %v2178_v41 = vand.u32 4294901760, %v992_v34 }
  0x43   : > { %v441_v45 = vrot.slane %v440_v43, 1  ;;  %v448_v46 = vrot.slane %v447_v44, 1 }
  0x45   : > { %v442_v47 = vadd.f32 %v441_v45, %v440_v43  ;;  %v449_v48 = vadd.f32 %v448_v46, %v447_v44 }
  0x47   : > { %v450_v49 = vmul.f32 %v442_v47, %v420_v24  ;;  %v451_v50 = vmul.f32 %v449_v48, %v420_v24 }
  0x49   : > { %v452_v51 = vadd.f32 1e-05, %v450_v49  ;;  %v453_v52 = vadd.f32 1e-05, %v451_v50  ;;  %v1016_v50 = vsub.f32 %v992_v34, %v2178_v41 }
  0x4b   : > { %1975 = vrsqrt.f32 %v452_v51  ;;  %vm470_vm3 = vweird.f32 %v453_v52  ;;  %vm460_vm5 = vweird.f32 %v452_v51 }
  0x4c   : > { %1977 = vrsqrt.f32 %v453_v52 }
  0x51   : > { %v1976_v53 = vpop.eup %1975 }
  0x52   : > { %v1978_v54 = vpop.eup %1977  ;;  %v455_v55 = vmul.f32 %v1976_v53, %v452_v51  ;;  %vm461_vm6 = vweird.f32 %v1976_v53 }
  0x53   : > { %v465_v56 = vmul.f32 %v1978_v54, %v453_v52  ;;  %vm471_vm4 = vweird.f32 %v1978_v54  ;;  %vm462_vm8 = vmor %vm460_vm5, %vm461_vm6 }
  0x54   : > { %v456_v57 = vmul.f32 %v1976_v53, %v455_v55  ;;  %vm472_vm7 = vmor %vm470_vm3, %vm471_vm4  ;;  %v1017_v55 = vand.u32 4294901760, %v1016_v50  ;;  %vm922_vm3 = vcmask 252928   ;;  %vm1468_vm4 = vcmask 64512  }
  0x55   : > { %v466_v58 = vmul.f32 %v1978_v54, %v465_v56 }
  0x56   : > { %v457_v59 = vmul.f32 0.5, %v456_v57 }
  0x57   : > { %v467_v60 = vmul.f32 0.5, %v466_v58  ;;  %v1018_v58 = vsub.f32 %v1016_v50, %v1017_v55 }
  0x58   : > { %v458_v61 = vsub.f32 1.5, %v457_v59  ;;  %v2191_v59 = vld [vmem:[%s2530_s7] sm:$0xff] }
  0x59   : > { %v468_v62 = vsub.f32 1.5, %v467_v60  ;;  %v2027_v60 = vmov 1   ;;  %1314 = vperm.xlu1 %1960, %v2191_v59  }
  0x5a   : > { %v459_v63 = vmul.f32 %v1976_v53, %v458_v61  ;;  %1961 = vset.pattern.permute.xlu2 %v2027_v60  ;;  %v1019_v61 = vand.u32 4294901760, %v1018_v58 }
  0x5b   : > { %v469_v0 = vmul.f32 %v1978_v54, %v468_v62  ;;  %856 = vperm.xlu2 %1961, %v2168_v29   ;;  %v2028_v62 = vmov 3  }
  0x5c   : > { %v463_v1 = vsel %vm462_vm8, %v1976_v53, %v459_v63  ;;  %v2029_v63 = vmov 2  }
  0x5d   : > { %v473_v2 = vsel %vm472_vm7, %v1978_v54, %v469_v0  ;;  %v2030_v0 = vmov 5  }
  0x5e   : > { %v476_v3 = vrot.slane %v473_v2, 4  ;;  %v2032_v2 = vmov 7  }
  0x60   : > { %v477_v4 = vsel %vm398_vm0, %v463_v1, %v476_v3  ;;  %v2031_v1 = vmov 6   ;;  %v2033_v3 = vmov 8  }
  0x61   : > { %v479_v6 = vmul.f32 %v477_v4, %v428_v31  ;;  %v2026_v31 = vmov 4  }
  0x62   : > { %1959 = vset.pattern.permute.xlu0 %v2026_v31 }
  0x63   : > { %808 = vperm.xlu0 %1959, %v2168_v29   ;;  %1962 = vset.pattern.permute.xlu2 %v2028_v62 }
  0x64   : > { %904 = vperm.xlu2 %1962, %v2168_v29  }
  0x6b   : > { %1293 = vperm.xlu0 %1959, %v2191_v59  }
  0x6c   : > { %1963 = vset.pattern.permute.xlu2 %v2030_v0 }
  0x6d   : > { %929 = vperm.xlu2 %1963, %v2168_v29  }
  0x73   : > { %1966 = vset.pattern.permute.xlu0 %v2029_v63 }
  0x74   : > { %880 = vperm.xlu0 %1966, %v2168_v29  }
  0x75   : > { %1964 = vset.pattern.permute.xlu2 %v2031_v1 }
  0x76   : > { %946 = vperm.xlu2 %1964, %v2168_v29  }
  0x7c   : > { %1356 = vperm.xlu0 %1966, %v2191_v59  }
  0x7e   : > { %1965 = vset.pattern.permute.xlu2 %v2032_v2 }
  0x7f   : > { %963 = vperm.xlu2 %1965, %v2168_v29  }
  0x82   : > { %v483_v10 = vpop.permute.xlu0 %482 }
  0x83   : > { %v487_v13 = vperm.slane %v483_v10, %v486_v11 }
  0x84   : > { %1968 = vset.pattern.permute.xlu0 %v2033_v3 }
  0x85   : > { %v489_v16 = vmul.f32 %v487_v13, %v479_v6  ;;  %980 = vperm.xlu0 %1968, %v2168_v29  }
  0x87   : > { %1967 = vset.pattern.permute.xlu2 %v2027_v60 }
  0x88   : > { %1335 = vperm.xlu2 %1967, %v2191_v59  }
  0x8a   : > { %v493_v15 = vpop.permute.xlu0 %492 }
  0x8b   : > { %v497_v17 = vperm.slane %v493_v15, %v486_v11 }
  0x8d   : > { %v499_v19 = vadd.f32 %v497_v17, %v489_v16 }
  0x8f   : > { %502 = vst [vmem:[#allocation1] ss:$2 sm:$0xff] %v499_v19 }
  0x90   : > { %1969 = vset.pattern.permute.xlu2 %v2028_v62 }
  0x91   : > { %1377 = vperm.xlu2 %1969, %v2191_v59  }
  0x96   : > { %v503_v22 = vld.sshfl [vmem:[#allocation1] sm:$0xff pattern:$0x75316420]  ;;  %v504_v23 = vld.sshfl [vmem:[#allocation1 + $0x8] sm:$0xff pattern:$0x75316420] }
  0x97   : > { %v509_v24 = vsel %vm398_vm0, %v503_v22, 0  ;;  %v511_v26 = vsel %vm398_vm0, %v504_v23, 0  ;;  %988 = vst [vmem:[#allocation1] ss:$2 sm:$0xff] %v499_v19 }
  0x98   : > { %v528_v27 = vand.u32 4294901760, %v509_v24  ;;  %v674_v28 = vand.u32 4294901760, %v511_v26 }
  0x99   : > { %1970 = vset.pattern.permute.xlu2 %v2030_v0 }
  0x9a   : > { %529 = vmatpush.msra.mxu0 %v528_v27  ;;  %605 = vmatpush.msra.mxu3 %v528_v27  ;;  %v555_v32 = vsub.f32 %v509_v24, %v528_v27  ;;  %v701_v33 = vsub.f32 %v511_v26, %v674_v28 }
  0x9b   : > { %535 = vmatmul.f32.vlgmr.msra.gmra.mxu0 %v534_v25  ;;  %609 = vmatmul.f32.vlgmr.msra.gmra.mxu3 %v2159_v20 }
  0x9c   : > { %582 = vmatpush.msra.mxu2 %v555_v32  ;;  %v556_v35 = vand.u32 4294901760, %v555_v32  ;;  %v702_v36 = vand.u32 4294901760, %v701_v33  ;;  %1398 = vperm.xlu2 %1970, %v2191_v59  }
  0x9d   : > { %585 = vmatmul.f32.vlgmr.msra.gmra.mxu2 %v2156_v18 }
  0x9e   : > { %675 = vmatpush.msrb.mxu2 %v674_v28  ;;  %631 = vmatpush.msrb.mxu0 %v556_v35  ;;  %v557_v37 = vsub.f32 %v555_v32, %v556_v35  ;;  %v703_v38 = vsub.f32 %v701_v33, %v702_v36  ;;  %v989_v39 = vld.sshfl [vmem:[#allocation1] sm:$0xff pattern:$0x75316420]  ;;  %v990_v40 = vld.sshfl [vmem:[#allocation1 + $0x8] sm:$0xff pattern:$0x75316420] }
  0x9f   : > { %v994_v42 = vsel %vm398_vm0, %v989_v39, 0  ;;  %v996_v43 = vsel %vm398_vm0, %v990_v40, 0 }
  0xa0   : > { %777 = vmatpush.msra.mxu2 %v702_v36  ;;  %728 = vmatpush.msra.mxu0 %v701_v33  ;;  %v558_v44 = vand.u32 4294901760, %v557_v37  ;;  %v704_v45 = vand.u32 4294901760, %v703_v38  ;;  %v1013_v46 = vand.u32 4294901760, %v994_v42  ;;  %v1159_v47 = vand.u32 4294901760, %v996_v43  ;;  %v833_v62 = vpop.permute.xlu1 %832 }
  0xa2   : > { %559 = vmatpush.msra.mxu1 %v558_v44  ;;  %705 = vmatpush.msrb.mxu3 %v704_v45  ;;  %v1040_v48 = vsub.f32 %v994_v42, %v1013_v46  ;;  %v1186_v49 = vsub.f32 %v996_v43, %v1159_v47 }
  0xa3   : > { %561 = vmatmul.f32.vlgmr.msra.gmra.mxu1 %v2153_v14  ;;  %633 = vmatmul.f32.vlgmr.msrb.gmra.mxu0 %v2153_v14 }
  0xa4   : > { %653 = vmatpush.msrb.mxu1 %v528_v27  ;;  %707 = vmatmul.f32.vlgmr.msrb.gmra.mxu3 %v2153_v14  ;;  %v1041_v51 = vand.u32 4294901760, %v1040_v48  ;;  %v1187_v52 = vand.u32 4294901760, %v1186_v49 }
  0xa5   : > { %799 = vmatpush.msra.mxu3 %v674_v28  ;;  %1014 = vmatpush.msrb.mxu0 %v1013_v46 }
  0xa6   : > { %751 = vmatpush.msra.mxu1 %v674_v28  ;;  %v1042_v53 = vsub.f32 %v1040_v48, %v1041_v51  ;;  %v1188_v54 = vsub.f32 %v1186_v49, %v1187_v52  ;;  %681 = vmatmul.f32.vlgmr.msrb.gmra.mxu2 %v534_v25 }
  0xa7   : > { %1090 = vmatpush.msrb.mxu3 %v1013_v46  ;;  %1067 = vmatpush.msrb.mxu2 %v1040_v48 }
  0xa8   : > { %v1043_v56 = vand.u32 4294901760, %v1042_v53  ;;  %v1189_v57 = vand.u32 4294901760, %v1188_v54  ;;  %1971 = vset.pattern.permute.xlu2 %v2031_v1 }
  0xab   : > { %655 = vmatmul.f32.vlgmr.msrb.gmra.mxu1 %v2153_v14  ;;  %731 = vmatmul.f32.vlgmr.msra.gmra.mxu0 %v2156_v18 }
  0xac   : > { %801 = vmatmul.f32.vlgmr.msra.gmra.mxu3 %v2153_v14  ;;  %1044 = vmatpush.msrb.mxu1 %v1043_v56 }
  0xad   : > { %1116 = vmatpush.msra.mxu0 %v1041_v51  ;;  %1190 = vmatpush.msra.mxu3 %v1189_v57 }
  0xae   : > { %779 = vmatmul.f32.vlgmr.msra.gmra.mxu2 %v2153_v14 }
  0xaf   : > { %1160 = vmatpush.msra.mxu2 %v1159_v47 }
  0xb3   : > { %755 = vmatmul.f32.vlgmr.msra.gmra.mxu1 %v2159_v20  ;;  %1020 = vmatmul.f32.vlgmr.msrb.gmra.mxu0 %v1019_v61 }
  0xb4   : > { %1094 = vmatmul.f32.vlgmr.msrb.gmra.mxu3 %v1017_v55  ;;  %1138 = vmatpush.msra.mxu1 %v1013_v46 }
  0xb5   : > { %1213 = vmatpush.msrb.mxu0 %v1186_v49  ;;  %1284 = vmatpush.msrb.mxu3 %v1159_v47  ;;  %v2235_v48 = vpop.permute.xlu2 %856 }
  0xb6   : > { %1070 = vmatmul.f32.vlgmr.msrb.gmra.mxu2 %v1016_v50 }
  0xb7   : > { %1262 = vmatpush.msrb.mxu2 %v1187_v52 }
  0xbb   : > { %1046 = vmatmul.f32.vlgmr.msrb.gmra.mxu1 %v2178_v41  ;;  %1118 = vmatmul.f32.vlgmr.msra.gmra.mxu0 %v2178_v41 }
  0xbc   : > { %1236 = vmatpush.msrb.mxu1 %v1159_v47  ;;  %1192 = vmatmul.f32.vlgmr.msra.gmra.mxu3 %v2178_v41 }
  0xbe   : > { %1166 = vmatmul.f32.vlgmr.msra.gmra.mxu2 %v1019_v61  ;;  %v2245_v53 = vpop.permute.xlu2 %904 }
  0xc3   : > { %1140 = vmatmul.f32.vlgmr.msra.gmra.mxu1 %v2178_v41  ;;  %1216 = vmatmul.f32.vlgmr.msrb.gmra.mxu0 %v1016_v50 }
  0xc4   : > { %1286 = vmatmul.f32.vlgmr.msrb.gmra.mxu3 %v2178_v41 }
  0xc6   : > { %1264 = vmatmul.f32.vlgmr.msrb.gmra.mxu2 %v2178_v41 }
  0xc7   : > { %v2254_v54 = vpop.permute.xlu2 %929 }
  0xcb   : > { %1240 = vmatmul.f32.vlgmr.msrb.gmra.mxu1 %v1017_v55  ;;  %v2296_v1 = vpop.permute.xlu1 %1314 }
  0xd0   : > { %v2261_v55 = vpop.permute.xlu2 %946 }
  0xd5   : > { %v809_v16 = vpop.permute.xlu0 %808 }
  0xd9   : > { %v2269_v56 = vpop.permute.xlu2 %963 }
  0xdd   : > { %v2273_v57 = vpop.permute.xlu0 %1293 }
  0xe2   : > { %v2278_v58 = vpop.permute.xlu2 %1335 }
  0xe6   : > { %v2280_v60 = vpop.permute.xlu0 %880 }
  0xeb   : > { %v2286_v61 = vpop.permute.xlu2 %1377 }
  0xee   : > { %v2290_v63 = vpop.permute.xlu0 %1356 }
  0xf6   : > { %v2292_v0 = vpop.permute.xlu2 %1398 }
 0x118   : > { %v536_v4 = vpop.f32.mrf.mxu0 }
 0x11e   : > { %v610_v6 = vpop.f32.mrf.mxu3 }
 0x120   : > { %v562_v7 = vpop.f32.mrf.mxu1  ;;  %v586_v8 = vpop.f32.mrf.mxu2 }
 0x121   : > { %v563_v9 = vadd.f32 %v562_v7, %v536_v4  ;;  %v634_v10 = vpop.f32.mrf.mxu0  ;;  %v2310_v7 = vld [vmem:[%s378_s20 + $0x8] sm:$0xff] }
 0x123   : > { %v587_v11 = vadd.f32 %v586_v8, %v563_v9  ;;  %v828_v9 = vperm.slane %v2310_v7, 0 }
 0x125   : > { %v611_v12 = vadd.f32 %v610_v6, %v587_v11 }
 0x127   : > { %v635_v13 = vadd.f32 %v634_v10, %v611_v12  ;;  %v708_v14 = vpop.f32.mrf.mxu3 }
 0x128   : > { %v656_v15 = vpop.f32.mrf.mxu1 }
 0x129   : > { %v657_v17 = vadd.f32 %v656_v15, %v635_v13  ;;  %v732_v18 = vpop.f32.mrf.mxu0  ;;  %v682_v19 = vpop.f32.mrf.mxu2 }
 0x12a   : > { %v709_v21 = vadd.f32 %v708_v14, %v682_v19 }
 0x12b   : > { %v2216_v20 = vmul.f32 %v809_v16, %v657_v17  ;;  %919 = vrot.lane.b32.xlu0 %v657_v17, %s2034_s21  ;;  %842 = vrot.lane.b32.xlu2 %v657_v17, %s2035_s22 }
 0x12c   : > { %818 = vrot.lane.b32.xlu1 %v657_v17, %s2036_s23  ;;  %v733_v22 = vadd.f32 %v732_v18, %v709_v21  ;;  %v2323_v21 = vld [vmem:[%s378_s20] sm:$0xff] }
 0x12f   : > { %v802_v23 = vpop.f32.mrf.mxu3 }
 0x130   : > { %v756_v24 = vpop.f32.mrf.mxu1 }
 0x131   : > { %v757_v25 = vadd.f32 %v756_v24, %v733_v22  ;;  %v1021_v26 = vpop.f32.mrf.mxu0  ;;  %v780_v27 = vpop.f32.mrf.mxu2  ;;  %v851_v22 = vperm.slane %v2323_v21, 1  ;;  %v827_v24 = vperm.slane %v2323_v21, 0 }
 0x133   : > { %v781_v28 = vadd.f32 %v780_v27, %v757_v25  ;;  %890 = vrot.lane.b32.xlu2 %v657_v17, %s2037_s24 }
 0x134   : > { %866 = vrot.lane.b32.xlu1 %v657_v17, %s2038_s25 }
 0x135   : > { %v803_v29 = vadd.f32 %v802_v23, %v781_v28 }
 0x137   : > { %820 = vrot.lane.b32.xlu0 %v803_v29, %s2036_s23  ;;  %v1095_v30 = vpop.f32.mrf.mxu3  ;;  %v2224_v31 = vmul.f32 %v809_v16, %v803_v29 }
 0x138   : > { %v1047_v32 = vpop.f32.mrf.mxu1 }
 0x139   : > { %v1071_v33 = vpop.f32.mrf.mxu2  ;;  %v1119_v34 = vpop.f32.mrf.mxu0  ;;  %v1048_v35 = vadd.f32 %v1047_v32, %v1021_v26  ;;  %v875_v26 = vperm.slane %v2323_v21, 2 }
 0x13b   : > { %911 = vrot.lane.b32.xlu2 %v657_v17, %s2039_s26  ;;  %v1072_v36 = vadd.f32 %v1071_v33, %v1048_v35 }
 0x13c   : > { %936 = vrot.lane.b32.xlu1 %v657_v17, %s2040_s27 }
 0x13d   : > { %v1096_v40 = vadd.f32 %v1095_v30, %v1072_v36 }
 0x13f   : > { %868 = vrot.lane.b32.xlu0 %v803_v29, %s2038_s25  ;;  %v1193_v38 = vpop.f32.mrf.mxu3  ;;  %v1120_v43 = vadd.f32 %v1119_v34, %v1096_v40 }
 0x140   : > { %v1141_v37 = vpop.f32.mrf.mxu1 }
 0x141   : > { %v1167_v39 = vpop.f32.mrf.mxu2  ;;  %v1217_v42 = vpop.f32.mrf.mxu0  ;;  %v2232_v46 = vadd.f32 %v1141_v37, %v1120_v43 }
 0x142   : > { %v1194_v41 = vadd.f32 %v1193_v38, %v1167_v39 }
 0x143   : > { %839 = vrot.lane.b32.xlu2 %v803_v29, %s2041_s28 }
 0x144   : > { %953 = vrot.lane.b32.xlu1 %v657_v17, %s2041_s28  ;;  %v1218_v44 = vadd.f32 %v1217_v42, %v1194_v41  ;;  %v876_v42 = vperm.slane %v2310_v7, 2 }
 0x147   : > { %892 = vrot.lane.b32.xlu0 %v803_v29, %s2037_s24  ;;  %v1287_v51 = vpop.f32.mrf.mxu3 }
 0x148   : > { %v1241_v45 = vpop.f32.mrf.mxu1 }
 0x149   : > { %v1242_v47 = vadd.f32 %v1241_v45, %v1218_v44  ;;  %v1265_v49 = vpop.f32.mrf.mxu2  ;;  %v852_v44 = vperm.slane %v2310_v7, 1 }
 0x14b   : > { %863 = vrot.lane.b32.xlu2 %v803_v29, %s2042_s29  ;;  %v1266_v50 = vadd.f32 %v1265_v49, %v1242_v47  ;;  %v899_v47 = vperm.slane %v2323_v21, 3 }
 0x14c   : > { %970 = vrot.lane.b32.xlu1 %v657_v17, %s2042_s29 }
 0x14d   : > { %v2240_v52 = vadd.f32 %v1287_v51, %v1266_v50 }
 0x14f   : > { %1391 = vrot.lane.b32.xlu0 %v2232_v46, %s2034_s21 }
 0x153   : > { %1303 = vrot.lane.b32.xlu2 %v2232_v46, %s2036_s23 }
 0x154   : > { %814 = vrot.lane.b32.xlu1 %v803_v29, %s2040_s27 }
 0x157   : > { %1305 = vrot.lane.b32.xlu0 %v2240_v52, %s2036_s23  ;;  %s1892_s23 = sshll.u32 %s2544_s10, 1 }
 0x15b   : > { %1324 = vrot.lane.b32.xlu2 %v2232_v46, %s2035_s22 }
 0x15c   : > { %887 = vrot.lane.b32.xlu1 %v803_v29, %s2043_s16 }
 0x15f   : > { %1347 = vrot.lane.b32.xlu0 %v2240_v52, %s2038_s25 }
 0x163   : > { %1366 = vrot.lane.b32.xlu2 %v2232_v46, %s2037_s24 }
 0x164   : > { %844 = vrot.lane.b32.xlu1 %v803_v29, %s2035_s22 }
 0x167   : > { %1368 = vrot.lane.b32.xlu0 %v2240_v52, %s2037_s24  ;;  %s384_s24 = sadd.s32 %s1892_s23, %s2546_s30 }
 0x16b   : > { %1384 = vrot.lane.b32.xlu2 %v2232_v46, %s2039_s26 }
 0x16c   : > { %913 = vrot.lane.b32.xlu1 %v803_v29, %s2039_s26 }
 0x16f   : > { %1440 = vperm.xlu0 %1968, %v2191_v59  }
 0x173   : > { %1342 = vrot.lane.b32.xlu2 %v2240_v52, %s2042_s29 }
 0x174   : > { %1345 = vrot.lane.b32.xlu1 %v2232_v46, %s2038_s25  ;;  %s1893_s25 = sshll.u32 %s384_s24, 2 }
 0x17b   : > { %1412 = vperm.xlu2 %1971, %v2191_v59  }
 0x17c   : > { %1405 = vrot.lane.b32.xlu1 %v2232_v46, %s2040_s27 }
 0x183   : > { %1972 = vset.pattern.permute.xlu2 %v2032_v2  ;;  %v2298_v2 = vpop.permute.xlu0 %980 }
 0x184   : > { %1419 = vrot.lane.b32.xlu1 %v2232_v46, %s2041_s28  ;;  %1426 = vperm.xlu2 %1972, %v2191_v59  }
 0x185   : > { %v843_v3 = vpop.permute.xlu2 %842 }
 0x18c   : > { %1299 = vrot.lane.b32.xlu1 %v2240_v52, %s2040_s27 }
 0x18d   : > { %v891_v6 = vpop.permute.xlu2 %890 }
 0x194   : > { %1321 = vrot.lane.b32.xlu1 %v2240_v52, %s2041_s28 }
 0x195   : > { %v2319_v16 = vpop.permute.xlu2 %911 }
 0x19c   : > { %1363 = vrot.lane.b32.xlu1 %v2240_v52, %s2043_s16 }
 0x19d   : > { %v2303_v4 = vpop.permute.xlu0 %919  ;;  %v840_v18 = vpop.permute.xlu2 %839 }
 0x19e   : > { %v819_v59 = vpop.permute.xlu1 %818  ;;  %v850_v25 = vsel %vm846_vm11, %v840_v18, %v843_v3 }
 0x1a4   : > { %1326 = vrot.lane.b32.xlu1 %v2240_v52, %s2035_s22 }
 0x1a5   : > { %v864_v23 = vpop.permute.xlu2 %863 }
 0x1a6   : > { %v867_v8 = vpop.permute.xlu1 %866 }
 0x1a7   : > { %v874_v28 = vsel %vm870_vm12, %v864_v23, %v867_v8 }
 0x1a8   : > { %v877_v33 = vmul.f32 %v875_v26, %v874_v28 }
 0x1a9   : > { %v821_v10 = vpop.permute.xlu0 %820 }
 0x1aa   : > { %v823_v11 = vsel %vm822_vm10, %v819_v59, %v821_v10  ;;  %v883_v38 = vmul.f32 %v2280_v60, %v877_v33  ;;  %v941_v10 = vperm.slane %v2323_v21, 5  ;;  %v976_v33 = vperm.slane %v2310_v7, 7 }
 0x1ab   : > { %v830_v12 = vmul.f32 %v828_v9, %v823_v11 }
 0x1ac   : > { %1386 = vrot.lane.b32.xlu1 %v2240_v52, %s2039_s26 }
 0x1ad   : > { %v836_v13 = vmul.f32 %v833_v62, %v830_v12 }
 0x1ae   : > { %v937_v14 = vpop.permute.xlu1 %936 }
 0x1af   : > { %v838_v15 = vadd.f32 %v836_v13, %v2224_v31  ;;  %v853_v31 = vmul.f32 %v851_v22, %v850_v25 }
 0x1b1   : > { %v869_v35 = vpop.permute.xlu0 %868  ;;  %v859_v36 = vmul.f32 %v2235_v48, %v853_v31  ;;  %v925_v31 = vperm.slane %v2310_v7, 4 }
 0x1b2   : > { %v871_v43 = vsel %vm870_vm12, %v867_v8, %v869_v35 }
 0x1b3   : > { %v878_v50 = vmul.f32 %v876_v42, %v871_v43 }
 0x1b4   : > { %1433 = vrot.lane.b32.xlu1 %v2232_v46, %s2042_s29  ;;  %s386_s29 = scalar_lea.vmem %s2532_s9, %s1893_s25 }
 0x1b5   : > { %v884_v13 = vmul.f32 %v2280_v60, %v878_v50 }
 0x1b6   : > { %v954_v17 = vpop.permute.xlu1 %953 }
 0x1b7   : > { %v956_v60 = vsel %vm955_vm15, %v954_v17, %v840_v18 }
 0x1b9   : > { %v893_v45 = vpop.permute.xlu0 %892 }
 0x1be   : > { %v971_v19 = vpop.permute.xlu1 %970 }
 0x1c6   : > { %v815_v27 = vpop.permute.xlu1 %814 }
 0x1c7   : > { %v826_v29 = vsel %vm822_vm10, %v815_v27, %v819_v59  ;;  %v939_v30 = vsel %vm938_vm13, %v937_v14, %v815_v27  ;;  %v895_v59 = vsel %vm894_vm14, %v891_v6, %v893_v45  ;;  %v924_v27 = vperm.slane %v2323_v21, 4 }
 0x1c8   : > { %v829_v32 = vmul.f32 %v827_v24, %v826_v29  ;;  %v943_v43 = vmul.f32 %v941_v10, %v939_v30 }
 0x1ca   : > { %v835_v34 = vmul.f32 %v833_v62, %v829_v32  ;;  %v959_v32 = vperm.slane %v2310_v7, 6  ;;  %v949_v50 = vmul.f32 %v2261_v55, %v943_v43 }
 0x1cc   : > { %v837_v37 = vadd.f32 %v835_v34, %v2216_v20  ;;  %v900_v20 = vperm.slane %v2310_v7, 3  ;;  %v975_v34 = vperm.slane %v2323_v21, 7 }
 0x1ce   : > { %v861_v39 = vadd.f32 %v859_v36, %v837_v37  ;;  %v888_v40 = vpop.permute.xlu1 %887  ;;  %v902_v14 = vmul.f32 %v900_v20, %v895_v59 }
 0x1cf   : > { %v898_v51 = vsel %vm894_vm14, %v888_v40, %v891_v6 }
 0x1d0   : > { %v885_v41 = vadd.f32 %v883_v38, %v861_v39  ;;  %v901_v11 = vmul.f32 %v899_v47, %v898_v51  ;;  %v973_v38 = vsel %vm972_vm1, %v971_v19, %v864_v23  ;;  %v961_v19 = vmul.f32 %v959_v32, %v850_v25 }
 0x1d2   : > { %v907_v35 = vmul.f32 %v2245_v53, %v901_v11  ;;  %v967_v59 = vmul.f32 %v2269_v56, %v961_v19 }
 0x1d4   : > { %v909_v23 = vadd.f32 %v907_v35, %v885_v41 }
 0x1d6   : > { %v845_v49 = vpop.permute.xlu1 %844 }
 0x1d7   : > { %v847_v62 = vsel %vm846_vm11, %v843_v3, %v845_v49  ;;  %v942_v3 = vperm.slane %v2310_v7, 5  ;;  %v977_v49 = vmul.f32 %v975_v34, %v973_v38 }
 0x1d8   : > { %v854_v8 = vmul.f32 %v852_v44, %v847_v62 }
 0x1d9   : > { %v944_v17 = vmul.f32 %v942_v3, %v826_v29  ;;  %v978_v29 = vmul.f32 %v976_v33, %v874_v28  ;;  %v983_v28 = vmul.f32 %v2298_v2, %v977_v49 }
 0x1da   : > { %v860_v12 = vmul.f32 %v2235_v48, %v854_v8  ;;  %v958_v48 = vperm.slane %v2323_v21, 6 }
 0x1db   : > { %v950_v51 = vmul.f32 %v2261_v55, %v944_v17  ;;  %v1304_v55 = vpop.permute.xlu2 %1303 }
 0x1dc   : > { %v862_v6 = vadd.f32 %v860_v12, %v838_v15  ;;  %v908_v15 = vmul.f32 %v2245_v53, %v902_v14 }
 0x1de   : > { %v886_v36 = vadd.f32 %v884_v13, %v862_v6  ;;  %v914_v37 = vpop.permute.xlu1 %913 }
 0x1df   : > { %v916_v39 = vsel %vm915_vm2, %v2319_v16, %v914_v37  ;;  %v923_v40 = vsel %vm922_vm3, %v914_v37, %v2303_v4  ;;  %v960_v16 = vmul.f32 %v958_v48, %v956_v60  ;;  %v2403_v37 = vpop.permute.xlu0 %1391 }
 0x1e0   : > { %v926_v18 = vmul.f32 %v924_v27, %v916_v39  ;;  %v927_v53 = vmul.f32 %v925_v31, %v923_v40  ;;  %v910_v4 = vadd.f32 %v908_v15, %v886_v36 }
 0x1e1   : > { %v966_v41 = vmul.f32 %v2269_v56, %v960_v16 }
 0x1e2   : > { %v932_v45 = vmul.f32 %v2254_v54, %v926_v18  ;;  %v933_v30 = vmul.f32 %v2254_v54, %v927_v53  ;;  %v984_v54 = vmul.f32 %v2298_v2, %v978_v29 }
 0x1e3   : > { %v1325_v36 = vpop.permute.xlu2 %1324 }
 0x1e4   : > { %v934_v25 = vadd.f32 %v932_v45, %v909_v23  ;;  %v935_v62 = vadd.f32 %v933_v30, %v910_v4 }
 0x1e6   : > { %v951_v8 = vadd.f32 %v949_v50, %v934_v25  ;;  %v952_v11 = vadd.f32 %v950_v51, %v935_v62  ;;  %v1346_v12 = vpop.permute.xlu1 %1345 }
 0x1e7   : > { %v1306_v39 = vpop.permute.xlu0 %1305 }
 0x1e8   : > { %v968_v13 = vadd.f32 %v966_v41, %v951_v8  ;;  %v969_v14 = vadd.f32 %v967_v59, %v952_v11  ;;  %v1307_v23 = vsel %vm822_vm10, %v1304_v55, %v1306_v39 }
 0x1e9   : > { %v1312_v49 = vmul.f32 %v1307_v23, %v828_v9 }
 0x1ea   : > { %v2399_v6 = vadd.f32 %v983_v28, %v968_v13  ;;  %v2401_v60 = vadd.f32 %v984_v54, %v969_v14 }
 0x1eb   : > { %v1367_v38 = vpop.permute.xlu2 %1366  ;;  %v1318_v54 = vmul.f32 %v2296_v1, %v1312_v49 }
 0x1ec   : > { %v1448_v40 = vmul.f32 %v2401_v60, %v2401_v60  ;;  %v1447_v43 = vmul.f32 %v2399_v6, %v2399_v6 }
 0x1ee   : > { %v1406_v35 = vpop.permute.xlu1 %1405  ;;  %v1450_v17 = vmul.f32 %v1448_v40, %v2401_v60  ;;  %v1449_v19 = vmul.f32 %v1447_v43, %v2399_v6  ;;  %v1296_v43 = vmul.f32 %v2273_v57, %v2232_v46 }
 0x1ef   : > { %v1348_v53 = vpop.permute.xlu0 %1347 }
 0x1f0   : > { %v1452_v16 = vmul.f32 0.044715, %v1450_v17  ;;  %v1451_v45 = vmul.f32 0.044715, %v1449_v19  ;;  %v1349_v41 = vsel %vm870_vm12, %v1346_v12, %v1348_v53 }
 0x1f1   : > { %v1354_v39 = vmul.f32 %v1349_v41, %v876_v42 }
 0x1f2   : > { %v1454_v29 = vadd.f32 %v1452_v16, %v2401_v60  ;;  %v1453_v62 = vadd.f32 %v1451_v45, %v2399_v6 }
 0x1f3   : > { %v1385_v18 = vpop.permute.xlu2 %1384 }
 0x1f4   : > { %v1456_v11 = vmul.f32 0.7978846, %v1454_v29 }
 0x1f6   : > { %v2405_v15 = vpop.permute.xlu1 %1419  ;;  %1979 = vtanh.f32 %v1456_v11 }
 0x1f7   : > { %v1369_v59 = vpop.permute.xlu0 %1368 }
 0x1f8   : > { %v1370_v9 = vsel %vm894_vm14, %v1367_v38, %v1369_v59 }
 0x1fb   : > { %v2420_v50 = vpop.permute.xlu2 %1342 }
 0x1fc   : > { %v1352_v28 = vsel %vm870_vm12, %v2420_v50, %v1346_v12  ;;  %v1980_v23 = vpop.eup %1979 }
 0x1fd   : > { %v1353_v42 = vmul.f32 %v1352_v28, %v875_v26 }
 0x1fe   : > { %v1300_v56 = vpop.permute.xlu1 %1299 }
 0x1ff   : > { %v1310_v30 = vsel %vm822_vm10, %v1300_v56, %v1304_v55  ;;  %v1297_v55 = vmul.f32 %v2273_v57, %v2240_v52  ;;  %v1375_v52 = vmul.f32 %v1370_v9, %v900_v20  ;;  %v1407_v20 = vsel %vm938_vm13, %v1406_v35, %v1300_v56 }
 0x200   : > { %v1311_v25 = vmul.f32 %v1310_v30, %v827_v24  ;;  %v1455_v24 = vmul.f32 0.7978846, %v1453_v62  ;;  %v1359_v45 = vmul.f32 %v2290_v63, %v1353_v42  ;;  %v1410_v59 = vmul.f32 %v1310_v30, %v942_v3 }
 0x201   : > { %v1320_v12 = vadd.f32 %v1318_v54, %v1297_v55 }
 0x202   : > { %v1317_v13 = vmul.f32 %v2296_v1, %v1311_v25  ;;  %1981 = vtanh.f32 %v1455_v24 }
 0x203   : > { %v1413_v53 = vpop.permute.xlu2 %1412 }
 0x204   : > { %v1319_v46 = vadd.f32 %v1317_v13, %v1296_v43 }
 0x206   : > { %v2409_v2 = vpop.permute.xlu1 %1321 }
 0x207   : > { %v1331_v51 = vsel %vm846_vm11, %v2409_v2, %v1325_v36 }
 0x208   : > { %v1332_v8 = vmul.f32 %v1331_v51, %v851_v22  ;;  %v1982_v62 = vpop.eup %1981 }
 0x20a   : > { %v1338_v17 = vmul.f32 %v2278_v58, %v1332_v8 }
 0x20b   : > { %v1427_v9 = vpop.permute.xlu2 %1426 }
 0x20c   : > { %v1340_v19 = vadd.f32 %v1338_v17, %v1319_v46 }
 0x20e   : > { %v1364_v4 = vpop.permute.xlu1 %1363  ;;  %v1361_v41 = vadd.f32 %v1359_v45, %v1340_v19 }
 0x20f   : > { %v1373_v22 = vsel %vm894_vm14, %v1364_v4, %v1367_v38  ;;  %v1360_v38 = vmul.f32 %v2290_v63, %v1354_v39  ;;  %v1381_v4 = vmul.f32 %v2286_v61, %v1375_v52 }
 0x210   : > { %v1374_v57 = vmul.f32 %v1373_v22, %v899_v47 }
 0x212   : > { %v1380_v29 = vmul.f32 %v2286_v61, %v1374_v57 }
 0x214   : > { %v1382_v8 = vadd.f32 %v1380_v29, %v1361_v41 }
 0x216   : > { %v1327_v14 = vpop.permute.xlu1 %1326 }
 0x217   : > { %v1328_v40 = vsel %vm846_vm11, %v1325_v36, %v1327_v14  ;;  %v1467_v36 = vld [vmem:[%s2531_s8] sm:$0xf]  ;;  %v1416_v14 = vmul.f32 %v1413_v53, %v1410_v59 }
 0x218   : > { %v1333_v1 = vmul.f32 %v1328_v40, %v852_v44  ;;  %v1470_v26 = vsel %vm1468_vm4, %v1467_v36, 0 }
 0x219   : > { %v2466_v56 = vand.u32 4294901760, %v1470_v26 }
 0x21a   : > { %v1339_v44 = vmul.f32 %v2278_v58, %v1333_v1  ;;  %v1409_v58 = vmul.f32 %v1407_v20, %v941_v10  ;;  %v1421_v10 = vsel %vm955_vm15, %v2405_v15, %v2409_v2 }
 0x21b   : > { %v1490_v13 = vsub.f32 %v1470_v26, %v2466_v56  ;;  %v1423_v15 = vmul.f32 %v1421_v10, %v958_v48 }
 0x21c   : > { %v1341_v16 = vadd.f32 %v1339_v44, %v1320_v12  ;;  %v1415_v30 = vmul.f32 %v1413_v53, %v1409_v58 }
 0x21e   : > { %v1362_v49 = vadd.f32 %v1360_v38, %v1341_v16  ;;  %v1387_v25 = vpop.permute.xlu1 %1386 }
 0x21f   : > { %v1388_v47 = vsel %vm915_vm2, %v1385_v18, %v1387_v25  ;;  %v1394_v35 = vsel %vm922_vm3, %v1387_v25, %v2403_v37  ;;  %v1424_v37 = vmul.f32 %v1331_v51, %v959_v32  ;;  %v1460_v18 = vadd.f32 1.0, %v1980_v23  ;;  %v1441_v51 = vpop.permute.xlu0 %1440 }
 0x220   : > { %v1395_v61 = vmul.f32 %v1388_v47, %v924_v27  ;;  %v1396_v63 = vmul.f32 %v1394_v35, %v925_v31  ;;  %v1383_v11 = vadd.f32 %v1381_v4, %v1362_v49  ;;  %v1438_v27 = vmul.f32 %v1352_v28, %v976_v33 }
 0x221   : > { %v1459_v31 = vadd.f32 1.0, %v1982_v62  ;;  %v1430_v24 = vmul.f32 %v1427_v9, %v1424_v37  ;;  %v1491_v33 = vand.u32 4294901760, %v1490_v13  ;;  %v1429_v28 = vmul.f32 %v1427_v9, %v1423_v15 }
 0x222   : > { %v1401_v54 = vmul.f32 %v2292_v0, %v1395_v61  ;;  %v1402_v3 = vmul.f32 %v2292_v0, %v1396_v63  ;;  %v1462_v0 = vmul.f32 0.5, %v1460_v18  ;;  %v1444_v40 = vmul.f32 %v1441_v51, %v1438_v27 }
 0x223   : > { %v1461_v1 = vmul.f32 0.5, %v1459_v31  ;;  %v1492_v53 = vsub.f32 %v1490_v13, %v1491_v33 }
 0x224   : > { %v1403_v32 = vadd.f32 %v1401_v54, %v1382_v8  ;;  %v1404_v2 = vadd.f32 %v1402_v3, %v1383_v11  ;;  %v1464_v42 = vmul.f32 %v1462_v0, %v2401_v60 }
 0x225   : > { %v1463_v46 = vmul.f32 %v1461_v1, %v2399_v6 }
 0x226   : > { %v1417_v55 = vadd.f32 %v1415_v30, %v1403_v32  ;;  %v1418_v39 = vadd.f32 %v1416_v14, %v1404_v2  ;;  %v1434_v22 = vpop.permute.xlu1 %1433 }
 0x227   : > { %v1435_v7 = vsel %vm972_vm1, %v1434_v22, %v2420_v50  ;;  %v1493_v50 = vand.u32 4294901760, %v1492_v53 }
 0x228   : > { %v1432_v43 = vadd.f32 %v1430_v24, %v1418_v39  ;;  %v1437_v17 = vmul.f32 %v1435_v7, %v975_v34  ;;  %v1431_v48 = vadd.f32 %v1429_v28, %v1417_v55 }
 0x22a   : > { %v1443_v12 = vmul.f32 %v1441_v51, %v1437_v17  ;;  %v1446_v52 = vadd.f32 %v1444_v40, %v1432_v43 }
 0x22c   : > { %v1445_v36 = vadd.f32 %v1443_v12, %v1431_v48  ;;  %v1466_v57 = vmul.f32 %v1464_v42, %v1446_v52 }
 0x22e   : > { %v1465_v44 = vmul.f32 %v1463_v46, %v1445_v36  ;;  %v1633_v38 = vand.u32 4294901760, %v1466_v57 }
 0x230   : > { %v1487_v20 = vand.u32 4294901760, %v1465_v44  ;;  %v1660_v19 = vsub.f32 %v1466_v57, %v1633_v38 }
 0x232   : > { %1488 = vmatpush.msra.mxu0 %v1487_v20  ;;  %1564 = vmatpush.msra.mxu3 %v1487_v20  ;;  %v1514_v21 = vsub.f32 %v1465_v44, %v1487_v20  ;;  %v1661_v34 = vand.u32 4294901760, %v1660_v19 }
 0x233   : > { %1494 = vmatmul.f32.vlgmr.msra.gmra.mxu0 %v1493_v50  ;;  %1568 = vmatmul.f32.vlgmr.msra.gmra.mxu3 %v1491_v33 }
 0x234   : > { %1541 = vmatpush.msra.mxu2 %v1514_v21  ;;  %v1515_v16 = vand.u32 4294901760, %v1514_v21  ;;  %v1662_v26 = vsub.f32 %v1660_v19, %v1661_v34 }
 0x235   : > { %1544 = vmatmul.f32.vlgmr.msra.gmra.mxu2 %v1490_v13 }
 0x236   : > { %1634 = vmatpush.msrb.mxu2 %v1633_v38  ;;  %1590 = vmatpush.msrb.mxu0 %v1515_v16  ;;  %v1663_v60 = vand.u32 4294901760, %v1662_v26  ;;  %v1516_v6 = vsub.f32 %v1514_v21, %v1515_v16 }
 0x238   : > { %1736 = vmatpush.msra.mxu2 %v1661_v34  ;;  %1687 = vmatpush.msra.mxu0 %v1660_v19  ;;  %v1517_v23 = vand.u32 4294901760, %v1516_v6 }
 0x239   : > { %1664 = vmatpush.msrb.mxu3 %v1663_v60 }
 0x23a   : > { %1518 = vmatpush.msra.mxu1 %v1517_v23 }
 0x23b   : > { %1758 = vmatpush.msra.mxu3 %v1633_v38  ;;  %1520 = vmatmul.f32.vlgmr.msra.gmra.mxu1 %v2466_v56 }
 0x23c   : > { %1592 = vmatmul.f32.vlgmr.msrb.gmra.mxu0 %v2466_v56  ;;  %1612 = vmatpush.msrb.mxu1 %v1487_v20 }
 0x23d   : > { %1666 = vmatmul.f32.vlgmr.msrb.gmra.mxu3 %v2466_v56  ;;  %1640 = vmatmul.f32.vlgmr.msrb.gmra.mxu2 %v1493_v50 }
 0x23e   : > { %1710 = vmatpush.msra.mxu1 %v1633_v38 }
 0x243   : > { %1614 = vmatmul.f32.vlgmr.msrb.gmra.mxu1 %v2466_v56 }
 0x244   : > { %1690 = vmatmul.f32.vlgmr.msra.gmra.mxu0 %v1490_v13 }
 0x245   : > { %1760 = vmatmul.f32.vlgmr.msra.gmra.mxu3 %v2466_v56  ;;  %1738 = vmatmul.f32.vlgmr.msra.gmra.mxu2 %v2466_v56 }
 0x24b   : > { %1714 = vmatmul.f32.vlgmr.msra.gmra.mxu1 %v1491_v33 }
 0x2b0   : > { %v1495_v4 = vpop.f32.mrf.mxu0 }
 0x2b6   : > { %v1569_v45 = vpop.f32.mrf.mxu3 }
 0x2b8   : > { %v1521_v29 = vpop.f32.mrf.mxu1  ;;  %v1545_v49 = vpop.f32.mrf.mxu2 }
 0x2b9   : > { %v1593_v25 = vpop.f32.mrf.mxu0  ;;  %v1522_v58 = vadd.f32 %v1521_v29, %v1495_v4 }
 0x2bb   : > { %v1546_v59 = vadd.f32 %v1545_v49, %v1522_v58 }
 0x2bd   : > { %v1570_v63 = vadd.f32 %v1569_v45, %v1546_v59 }
 0x2bf   : > { %v1594_v11 = vadd.f32 %v1593_v25, %v1570_v63 }
 0x2c0   : > { %v1615_v47 = vpop.f32.mrf.mxu1  ;;  %v1667_v35 = vpop.f32.mrf.mxu3 }
 0x2c1   : > { %v1641_v62 = vpop.f32.mrf.mxu2  ;;  %v1691_v61 = vpop.f32.mrf.mxu0  ;;  %v1616_v27 = vadd.f32 %v1615_v47, %v1594_v11 }
 0x2c2   : > { %v1668_v41 = vadd.f32 %v1667_v35, %v1641_v62 }
 0x2c4   : > { %v1692_v10 = vadd.f32 %v1691_v61, %v1668_v41 }
 0x2c8   : > { %v1715_v37 = vpop.f32.mrf.mxu1  ;;  %v1761_v8 = vpop.f32.mrf.mxu3 }
 0x2c9   : > { %v1716_v18 = vadd.f32 %v1715_v37, %v1692_v10  ;;  %v1739_v56 = vpop.f32.mrf.mxu2 }
 0x2cb   : > { %v1740_v54 = vadd.f32 %v1739_v56, %v1716_v18 }
 0x2cd   : > { %v1762_v3 = vadd.f32 %v1761_v8, %v1740_v54 }
 0x2cf   : > { %v1766_v30 = vrot.slane %v1762_v3, 4 }
 0x2d1   : > { %v1767_v9 = vsel %vm398_vm0, %v1616_v27, %v1766_v30 }
 0x2d2   : > { %v1769_v31 = vadd.f32 %v1767_v9, %v2139_v5 }
 0x2d4   : > { %1771 = vst [vmem:[#allocation1] ss:$2 sm:$0xff] %v1769_v31 }
 0x2db   : > { %v1773_v13 = vld.sshfl [vmem:[#allocation1 + $0x8] sm:$0xff pattern:$0x75316420]  ;;  %v1772_v14 = vld.sshfl [vmem:[#allocation1] sm:$0xff pattern:$0x75316420] }
 0x2dc   : > { %1776 = vrot.lane.b32.xlu2 %v1773_v13, %s2041_s28  ;;  %1774 = vrot.lane.b32.xlu1 %v1772_v14, %s2041_s28 }
 0x336   : > { %v1777_v15 = vpop.permute.xlu2 %1776 }
 0x34e   : > { %v1775_v32 = vpop.permute.xlu1 %1774 }
 0x34f   : > { %v1778_v2 = vsel %vm955_vm15, %v1775_v32, %v1777_v15 }
 0x350   : > { %1780 = vst [vmem:[%s386_s29] sm:$0xf] %v1778_v2 }
 0x351 PF: > { %s19_s13 = sadd.s32 1, %s2021_s13   ;;  %s2533_s30 = smov %s2013_s11 }
 0x352   : > { %p16_p7 = scmp.ge.s32.totalorder %s19_s13, 6   ;;  %s2534_s10 = smov %s2017_s12 }
 0x353   : > { %s2535_s11 = smov %s2538_s14  ;;  %s2536_s12 = smov %s2542_s15 }
 0x354   :  { %18 = sbr.rel (!%p16_p7) target bundleno = 3 (0x3), region = 89 }

// kernel: transformer_block.2
= control target key start
LH: loop header
LB: loop body
LE: loop exit
PB: predicated region body
PF: predicated region fallthrough
CT: control target
= control target key end

     0   :  { %s3186_s25 = smov 0   ;;  %s3749_s0 = inlined_call_operand.vmem [shape: f32[2,4,256], index: 0, kind: input, shape index: {}]   ;;  %s3750_s1 = inlined_call_operand.vmem [shape: f32[4,1], index: 1, kind: input, shape index: {}]   ;;  %s3751_s2 = inlined_call_operand.vmem [shape: f32[4,1], index: 2, kind: input, shape index: {}]   ;;  %s3752_s3 = inlined_call_operand.vmem [shape: f32[4,4], index: 3, kind: input, shape index: {}]   ;;  %s3753_s4 = inlined_call_operand.vmem [shape: f32[4,4], index: 4, kind: input, shape index: {}]   ;;  %s3754_s5 = inlined_call_operand.vmem [shape: f32[4,4], index: 5, kind: input, shape index: {}]   ;;  %s3755_s6 = inlined_call_operand.vmem [shape: f32[4,9], index: 6, kind: input, shape index: {}]   ;;  %s3756_s7 = inlined_call_operand.vmem [shape: f32[4,9], index: 7, kind: input, shape index: {}]   ;;  %s3757_s8 = inlined_call_operand.vmem [shape: f32[4,9], index: 8, kind: input, shape index: {}]   ;;  %s3758_s9 = inlined_call_operand.vmem [shape: f32[4,1], index: 9, kind: input, shape index: {}]   ;;  %s3759_s10 = inlined_call_operand.vmem [shape: f32[4,4], index: 10, kind: input, shape index: {}]   ;;  %s3760_s11 = inlined_call_operand.vmem [shape: f32[4,4], index: 11, kind: input, shape index: {}]   ;;  %s3761_s12 = inlined_call_operand.vmem [shape: f32[8,256], index: 12, kind: input, shape index: {}]   ;;  %s3762_s13 = inlined_call_operand.vmem [shape: f32[2,4,256], index: 13, kind: output, shape index: {}]  }
   0x1 LB: > { %s3005_s26 = sadd.s32 4294967295, %s3095_s25   ;;  %p3009_p0 = scmp.ge.s32.totalorder %s3095_s25, 1  ;;  %s3095_s25 = sphi %s3186_s25, %s23_s25  }
   0x2   : > { %p387_p1 = scmp.lt.s32.totalorder %s3095_s25, 3 }
   0x4   : > { %p388_p2 = pnand %p3009_p0, %p387_p1 }
   0x5   : > { %p431_p3 = scmp.lt.s32.totalorder (!%p388_p2), %s3005_s26, 1  ;;  %s3106_s14 = smov (!%p388_p2), 16  }
   0x6   : > { %391 = sbr.rel (%p388_p2) target bundleno = 1412 (0x584), region = 72  ;;  %s3108_s16 = smov (!%p388_p2), 15  }
   0x7   : > { %s3109_s17 = smov (!%p388_p2), 127   ;;  %s3110_s18 = smov (!%p388_p2), 1  }
   0x8   : > { %s3111_s19 = smov (!%p388_p2), 113   ;;  %s3112_s20 = smov (!%p388_p2), 112  }
   0x9   : > { %s3115_s21 = smov (!%p388_p2), 111  }
   0xb   : > { %v444_v0 = vld [vmem:[%s3750_s1] sm:$0xf]  ;;  %v3097_v1 = vmov 0   ;;  %v3098_v2 = vmov 4.0   ;;  %s3764_s26 = smov (!%p431_p3, %s3005_s26), 1  ;;  %vm452_vm0 = vcmask 1043456  }
   0xc   : > { %3045 = vset.pattern.permute.xlu0 %v3097_v1  ;;  %3047 = vset.pattern.permute.xlu2 %v3097_v1  ;;  %3075 = vrcp.f32 %v3098_v2  ;;  %s3016_s29 = sshll.u32 %s3764_s26, 3  ;;  %v445_v3 = vld [vmem:[%s3751_s2] sm:$0xf]  ;;  %vm558_vm8 = vcmask 31744   ;;  %vm873_vm9 = vcmask 138240   ;;  %vm895_vm10 = vcmask 130048  }
   0xd   : > { %535 = vperm.xlu0 %3045, %v444_v0   ;;  %s435_s15 = scalar_lea.vmem %s3749_s0, %s3016_s29  ;;  %vm960_vm11 = vcmask 1039360   ;;  %vm917_vm12 = vcmask 121856   ;;  %vm982_vm13 = vcmask 924672   ;;  %vm939_vm14 = vcmask 7168  }
   0xe   : > { %v3210_v5 = vld [vmem:[%s435_s15] sm:$0xff]  ;;  %s3107_s15 = smov 17   ;;  %vm1004_vm15 = vcmask 916480  }
   0xf   : > { %447 = vst [vmem:[#allocation1] ss:$2 sm:$0xff] %v3210_v5 }
  0x12   : > { %v3076_v4 = vpop.eup %3075 }
  0x13   : > { %v468_v6 = vmul.f32 4.0, %v3076_v4  ;;  %vm472_vm1 = vweird.f32 %v3076_v4 }
  0x15   : > { %545 = vperm.xlu0 %3045, %v445_v3   ;;  %v469_v7 = vsub.f32 1.0, %v468_v6 }
  0x16   : > { %v449_v8 = vld.sshfl [vmem:[#allocation1 + $0x8] sm:$0xff pattern:$0x75316420]  ;;  %v448_v10 = vld.sshfl [vmem:[#allocation1] sm:$0xff pattern:$0x75316420] }
  0x17   : > { %v460_v9 = vsel %vm452_vm0, %v449_v8, 0.0  ;;  %v470_v12 = vmul.f32 %v3076_v4, %v469_v7  ;;  %v453_v13 = vsel %vm452_vm0, %v448_v10, 0.0  ;;  %v3099_v8 = vmov 839922192   ;;  %v553_v10 = vld [vmem:[%s3752_s3] sm:$0xf] }
  0x18   : > { %v461_v11 = vrot.slane %v460_v9, 4  ;;  %v454_v14 = vrot.slane %v453_v13, 4 }
  0x19   : > { %v471_v18 = vadd.f32 %v3076_v4, %v470_v12 }
  0x1a   : > { %v462_v15 = vadd.f32 %v461_v11, %v460_v9  ;;  %v455_v16 = vadd.f32 %v454_v14, %v453_v13  ;;  %v538_v9 = vunpack.c.l.s4 %v3099_v8  ;;  %v560_v13 = vsel %vm558_vm8, %v553_v10, 0 }
  0x1b   : > { %v473_v23 = vsel %vm472_vm1, %v3076_v4, %v471_v18  ;;  %vm1026_vm1 = vcmask 908288  }
  0x1c   : > { %v463_v17 = vrot.slane %v462_v15, 2  ;;  %v456_v19 = vrot.slane %v455_v16, 2  ;;  %v539_v12 = vunpack.c.0.s8 %v538_v9 }
  0x1e   : > { %v464_v20 = vadd.f32 %v463_v17, %v462_v15  ;;  %v457_v21 = vadd.f32 %v456_v19, %v455_v16  ;;  %v3224_v15 = vand.u32 4294901760, %v560_v13 }
  0x20   : > { %v465_v22 = vrot.slane %v464_v20, 1  ;;  %v458_v24 = vrot.slane %v457_v21, 1  ;;  %v3227_v19 = vsub.f32 %v560_v13, %v3224_v15 }
  0x22   : > { %v466_v25 = vadd.f32 %v465_v22, %v464_v20  ;;  %v459_v26 = vadd.f32 %v458_v24, %v457_v21  ;;  %v3230_v21 = vand.u32 4294901760, %v3227_v19 }
  0x24   : > { %v475_v27 = vmul.f32 %v473_v23, %v466_v25  ;;  %v474_v28 = vmul.f32 %v473_v23, %v459_v26  ;;  %v586_v22 = vsub.f32 %v3227_v19, %v3230_v21 }
  0x26   : > { %v478_v29 = vrot.slane %v475_v27, 4  ;;  %v587_v26 = vand.u32 4294901760, %v586_v22 }
  0x28   : > { %v479_v30 = vsel %vm452_vm0, %v474_v28, %v478_v29 }
  0x29   : > { %v481_v31 = vsub.f32 %v3210_v5, %v479_v30  ;;  %v1044_v30 = vld [vmem:[%s3753_s4] sm:$0xf] }
  0x2b   : > { %v482_v32 = vmul.f32 %v481_v31, %v481_v31 }
  0x2d   : > { %484 = vst [vmem:[#allocation1] ss:$2 sm:$0xff] %v482_v32  ;;  %v3243_v32 = vld [vmem:[%s3755_s6] sm:$0xf] }
  0x34   : > { %v486_v33 = vld.sshfl [vmem:[#allocation1 + $0x8] sm:$0xff pattern:$0x75316420]  ;;  %v485_v35 = vld.sshfl [vmem:[#allocation1] sm:$0xff pattern:$0x75316420] }
  0x35   : > { %v496_v34 = vsel %vm452_vm0, %v486_v33, 0.0  ;;  %v489_v37 = vsel %vm452_vm0, %v485_v35, 0.0 }
  0x36   : > { %v497_v36 = vrot.slane %v496_v34, 4  ;;  %v490_v38 = vrot.slane %v489_v37, 4 }
  0x38   : > { %v498_v39 = vadd.f32 %v497_v36, %v496_v34  ;;  %v491_v40 = vadd.f32 %v490_v38, %v489_v37  ;;  %v1049_v37 = vsel %vm558_vm8, %v1044_v30, 0 }
  0x3a   : > { %v499_v41 = vrot.slane %v498_v39, 2  ;;  %v492_v42 = vrot.slane %v491_v40, 2 }
  0x3c   : > { %v500_v43 = vadd.f32 %v499_v41, %v498_v39  ;;  %v493_v44 = vadd.f32 %v492_v42, %v491_v40 }
  0x3e   : > { %v501_v45 = vrot.slane %v500_v43, 1  ;;  %v494_v46 = vrot.slane %v493_v44, 1 }
  0x40   : > { %v502_v47 = vadd.f32 %v501_v45, %v500_v43  ;;  %v495_v48 = vadd.f32 %v494_v46, %v493_v44  ;;  %v3252_v44 = vand.u32 4294901760, %v1049_v37 }
  0x42   : > { %v504_v49 = vmul.f32 %v502_v47, %v473_v23  ;;  %v503_v50 = vmul.f32 %v495_v48, %v473_v23 }
  0x44   : > { %v506_v51 = vadd.f32 1e-05, %v504_v49  ;;  %v505_v52 = vadd.f32 1e-05, %v503_v50 }
  0x46   : > { %3077 = vrsqrt.f32 %v506_v51  ;;  %vm523_vm2 = vweird.f32 %v506_v51  ;;  %vm513_vm5 = vweird.f32 %v505_v52 }
  0x47   : > { %3079 = vrsqrt.f32 %v505_v52 }
  0x4c   : > { %v3078_v53 = vpop.eup %3077 }
  0x4d   : > { %v518_v54 = vmul.f32 %v3078_v53, %v506_v51  ;;  %v3080_v55 = vpop.eup %3079  ;;  %vm524_vm3 = vweird.f32 %v3078_v53  ;;  %v3260_v51 = vsub.f32 %v1049_v37, %v3252_v44 }
  0x4e   : > { %v508_v56 = vmul.f32 %v3080_v55, %v505_v52  ;;  %vm525_vm4 = vmor %vm523_vm2, %vm524_vm3  ;;  %vm514_vm6 = vweird.f32 %v3080_v55 }
  0x4f   : > { %v519_v57 = vmul.f32 %v3078_v53, %v518_v54  ;;  %vm515_vm7 = vmor %vm513_vm5, %vm514_vm6 }
  0x50   : > { %v509_v58 = vmul.f32 %v3080_v55, %v508_v56  ;;  %v3264_v56 = vand.u32 4294901760, %v3260_v51 }
  0x51   : > { %v520_v59 = vmul.f32 0.5, %v519_v57 }
  0x52   : > { %v510_v60 = vmul.f32 0.5, %v509_v58 }
  0x53   : > { %v521_v61 = vsub.f32 1.5, %v520_v59  ;;  %v1075_v59 = vsub.f32 %v3260_v51, %v3264_v56 }
  0x54   : > { %v511_v62 = vsub.f32 1.5, %v510_v60 }
  0x55   : > { %v522_v63 = vmul.f32 %v3078_v53, %v521_v61 }
  0x56   : > { %v512_v0 = vmul.f32 %v3080_v55, %v511_v62  ;;  %v1076_v62 = vand.u32 4294901760, %v1075_v59 }
  0x57   : > { %v526_v2 = vsel %vm525_vm4, %v3078_v53, %v522_v63 }
  0x58   : > { %v529_v3 = vrot.slane %v526_v2, 4  ;;  %v516_v4 = vsel %vm515_vm7, %v3080_v55, %v512_v0  ;;  %v3278_v2 = vld [vmem:[%s3756_s7] sm:$0xf] }
  0x59   : > { %1369 = vperm.xlu2 %3047, %v3278_v2  }
  0x5a   : > { %v530_v6 = vsel %vm452_vm0, %v516_v4, %v529_v3  ;;  %v1509_v3 = vld [vmem:[%s3754_s5] sm:$0xf] }
  0x5b   : > { %v532_v7 = vmul.f32 %v530_v6, %v481_v31  ;;  %v3100_v31 = vmov 4  }
  0x5c   : > { %3048 = vset.pattern.permute.xlu0 %v3100_v31  ;;  %3046 = vset.pattern.permute.xlu1 %v3100_v31 }
  0x5d   : > { %861 = vperm.xlu0 %3048, %v3243_v32   ;;  %1350 = vperm.xlu1 %3046, %v3278_v2  }
  0x65   : > { %3049 = vset.pattern.permute.xlu1 %v3097_v1 }
  0x66   : > { %883 = vperm.xlu1 %3049, %v3243_v32  }
  0x7f   : > { %v536_v11 = vpop.permute.xlu0 %535 }
  0x80   : > { %v540_v14 = vperm.slane %v536_v11, %v539_v12  ;;  %v3101_v11 = vmov 1  }
  0x81   : > { %3051 = vset.pattern.permute.xlu2 %v3101_v11  ;;  %3050 = vset.pattern.permute.xlu1 %v3101_v11 }
  0x82   : > { %v542_v17 = vmul.f32 %v540_v14, %v532_v7  ;;  %v1514_v7 = vsel %vm558_vm8, %v1509_v3, 0  ;;  %905 = vperm.xlu2 %3051, %v3243_v32   ;;  %1388 = vperm.xlu1 %3050, %v3278_v2  }
  0x83   : > { %v3290_v10 = vand.u32 4294901760, %v1514_v7 }
  0x85   : > { %v1538_v14 = vsub.f32 %v1514_v7, %v3290_v10  ;;  %v3113_v7 = vmov 7  }
  0x87   : > { %v546_v16 = vpop.permute.xlu0 %545 }
  0x88   : > { %v550_v18 = vperm.slane %v546_v16, %v539_v12 }
  0x8a   : > { %v552_v20 = vadd.f32 %v550_v18, %v542_v17  ;;  %v1539_v17 = vand.u32 4294901760, %v1538_v14 }
  0x8c   : > { %555 = vst [vmem:[#allocation1] ss:$2 sm:$0xff] %v552_v20 }
  0x93   : > { %v556_v23 = vld.sshfl [vmem:[#allocation1] sm:$0xff pattern:$0x75316420]  ;;  %v557_v24 = vld.sshfl [vmem:[#allocation1 + $0x8] sm:$0xff pattern:$0x75316420] }
  0x94   : > { %v562_v25 = vsel %vm452_vm0, %v556_v23, 0  ;;  %v564_v27 = vsel %vm452_vm0, %v557_v24, 0  ;;  %1045 = vst [vmem:[#allocation1] ss:$2 sm:$0xff] %v552_v20  ;;  %v3103_v23 = vmov 3   ;;  %v3104_v24 = vmov 5  }
  0x95   : > { %v581_v28 = vand.u32 4294901760, %v562_v25  ;;  %v727_v29 = vand.u32 4294901760, %v564_v27 }
  0x97   : > { %582 = vmatpush.msra.mxu0 %v581_v28  ;;  %658 = vmatpush.msra.mxu3 %v581_v28  ;;  %v608_v33 = vsub.f32 %v562_v25, %v581_v28  ;;  %v754_v34 = vsub.f32 %v564_v27, %v727_v29  ;;  %v3105_v25 = vmov 6  }
  0x98   : > { %588 = vmatmul.f32.vlgmr.msra.gmra.mxu0 %v587_v26  ;;  %662 = vmatmul.f32.vlgmr.msra.gmra.mxu3 %v3230_v21 }
  0x99   : > { %635 = vmatpush.msra.mxu2 %v608_v33  ;;  %v609_v35 = vand.u32 4294901760, %v608_v33  ;;  %v755_v36 = vand.u32 4294901760, %v754_v34 }
  0x9a   : > { %638 = vmatmul.f32.vlgmr.msra.gmra.mxu2 %v3227_v19 }
  0x9b   : > { %728 = vmatpush.msrb.mxu2 %v727_v29  ;;  %684 = vmatpush.msrb.mxu0 %v609_v35  ;;  %v610_v38 = vsub.f32 %v608_v33, %v609_v35  ;;  %v756_v39 = vsub.f32 %v754_v34, %v755_v36  ;;  %v1046_v40 = vld.sshfl [vmem:[#allocation1] sm:$0xff pattern:$0x75316420]  ;;  %v1047_v41 = vld.sshfl [vmem:[#allocation1 + $0x8] sm:$0xff pattern:$0x75316420] }
  0x9c   : > { %v1051_v42 = vsel %vm452_vm0, %v1046_v40, 0  ;;  %v1053_v43 = vsel %vm452_vm0, %v1047_v41, 0  ;;  %1510 = vst [vmem:[#allocation1] ss:$2 sm:$0xff] %v552_v20 }
  0x9d   : > { %830 = vmatpush.msra.mxu2 %v755_v36  ;;  %781 = vmatpush.msra.mxu0 %v754_v34  ;;  %v611_v45 = vand.u32 4294901760, %v610_v38  ;;  %v757_v46 = vand.u32 4294901760, %v756_v39  ;;  %v1070_v47 = vand.u32 4294901760, %v1051_v42  ;;  %v3254_v48 = vand.u32 4294901760, %v1053_v43 }
  0x9f   : > { %612 = vmatpush.msra.mxu1 %v611_v45  ;;  %758 = vmatpush.msrb.mxu3 %v757_v46  ;;  %v1097_v49 = vsub.f32 %v1051_v42, %v1070_v47  ;;  %v1243_v50 = vsub.f32 %v1053_v43, %v3254_v48 }
  0xa0   : > { %614 = vmatmul.f32.vlgmr.msra.gmra.mxu1 %v3224_v15  ;;  %686 = vmatmul.f32.vlgmr.msrb.gmra.mxu0 %v3224_v15 }
  0xa1   : > { %706 = vmatpush.msrb.mxu1 %v581_v28  ;;  %760 = vmatmul.f32.vlgmr.msrb.gmra.mxu3 %v3224_v15  ;;  %v1098_v52 = vand.u32 4294901760, %v1097_v49  ;;  %v1244_v53 = vand.u32 4294901760, %v1243_v50 }
  0xa2   : > { %852 = vmatpush.msra.mxu3 %v727_v29  ;;  %1071 = vmatpush.msrb.mxu0 %v1070_v47 }
  0xa3   : > { %804 = vmatpush.msra.mxu1 %v727_v29  ;;  %v1099_v54 = vsub.f32 %v1097_v49, %v1098_v52  ;;  %v1245_v55 = vsub.f32 %v1243_v50, %v1244_v53  ;;  %734 = vmatmul.f32.vlgmr.msrb.gmra.mxu2 %v587_v26  ;;  %v1511_v60 = vld.sshfl [vmem:[#allocation1] sm:$0xff pattern:$0x75316420]  ;;  %v1512_v61 = vld.sshfl [vmem:[#allocation1 + $0x8] sm:$0xff pattern:$0x75316420] }
  0xa4   : > { %1147 = vmatpush.msrb.mxu3 %v1070_v47  ;;  %1124 = vmatpush.msrb.mxu2 %v1097_v49  ;;  %v1516_v63 = vsel %vm452_vm0, %v1511_v60, 0  ;;  %v1518_v0 = vsel %vm452_vm0, %v1512_v61, 0 }
  0xa5   : > { %v1100_v57 = vand.u32 4294901760, %v1099_v54  ;;  %v1246_v58 = vand.u32 4294901760, %v1245_v55  ;;  %v1535_v4 = vand.u32 4294901760, %v1516_v63  ;;  %v1681_v6 = vand.u32 4294901760, %v1518_v0 }
  0xa7   : > { %v1562_v8 = vsub.f32 %v1516_v63, %v1535_v4  ;;  %v1708_v9 = vsub.f32 %v1518_v0, %v1681_v6 }
  0xa8   : > { %708 = vmatmul.f32.vlgmr.msrb.gmra.mxu1 %v3224_v15  ;;  %784 = vmatmul.f32.vlgmr.msra.gmra.mxu0 %v3227_v19  ;;  %v3102_v19 = vmov 2  }
  0xa9   : > { %854 = vmatmul.f32.vlgmr.msra.gmra.mxu3 %v3224_v15  ;;  %1101 = vmatpush.msrb.mxu1 %v1100_v57  ;;  %v1563_v12 = vand.u32 4294901760, %v1562_v8  ;;  %v1709_v13 = vand.u32 4294901760, %v1708_v9 }
  0xaa   : > { %1173 = vmatpush.msra.mxu0 %v1098_v52  ;;  %1247 = vmatpush.msra.mxu3 %v1246_v58 }
  0xab   : > { %832 = vmatmul.f32.vlgmr.msra.gmra.mxu2 %v3224_v15  ;;  %v1564_v15 = vsub.f32 %v1562_v8, %v1563_v12  ;;  %v1710_v16 = vsub.f32 %v1708_v9, %v1709_v13  ;;  %3053 = vset.pattern.permute.xlu2 %v3102_v19 }
  0xac   : > { %1217 = vmatpush.msra.mxu2 %v3254_v48  ;;  %927 = vperm.xlu2 %3053, %v3243_v32  }
  0xad   : > { %v1565_v18 = vand.u32 4294901760, %v1564_v15  ;;  %v1711_v20 = vand.u32 4294901760, %v1710_v16  ;;  %3052 = vset.pattern.permute.xlu1 %v3102_v19 }
  0xae   : > { %1407 = vperm.xlu1 %3052, %v3278_v2  }
  0xb0   : > { %808 = vmatmul.f32.vlgmr.msra.gmra.mxu1 %v3230_v21  ;;  %1077 = vmatmul.f32.vlgmr.msrb.gmra.mxu0 %v1076_v62  ;;  %v1540_v21 = vsub.f32 %v1538_v14, %v1539_v17 }
  0xb1   : > { %1151 = vmatmul.f32.vlgmr.msrb.gmra.mxu3 %v3264_v56  ;;  %1195 = vmatpush.msra.mxu1 %v1070_v47 }
  0xb2   : > { %1270 = vmatpush.msrb.mxu0 %v1243_v50  ;;  %1341 = vmatpush.msrb.mxu3 %v3254_v48  ;;  %v1541_v22 = vand.u32 4294901760, %v1540_v21  ;;  %v3114_v21 = vmov 8  }
  0xb3   : > { %1127 = vmatmul.f32.vlgmr.msrb.gmra.mxu2 %v3260_v51  ;;  %3062 = vset.pattern.permute.xlu0 %v3114_v21 }
  0xb4   : > { %1319 = vmatpush.msrb.mxu2 %v1244_v53  ;;  %3055 = vset.pattern.permute.xlu2 %v3103_v23 }
  0xb5   : > { %949 = vperm.xlu2 %3055, %v3243_v32  }
  0xb6   : > { %3054 = vset.pattern.permute.xlu1 %v3103_v23 }
  0xb7   : > { %1426 = vperm.xlu1 %3054, %v3278_v2  }
  0xb8   : > { %1103 = vmatmul.f32.vlgmr.msrb.gmra.mxu1 %v3252_v44  ;;  %1175 = vmatmul.f32.vlgmr.msra.gmra.mxu0 %v3252_v44 }
  0xb9   : > { %1249 = vmatmul.f32.vlgmr.msra.gmra.mxu3 %v3252_v44  ;;  %1293 = vmatpush.msrb.mxu1 %v3254_v48 }
  0xba   : > { %1536 = vmatpush.msra.mxu0 %v1535_v4  ;;  %1612 = vmatpush.msra.mxu3 %v1535_v4 }
  0xbb   : > { %1223 = vmatmul.f32.vlgmr.msra.gmra.mxu2 %v1076_v62 }
  0xbc   : > { %1589 = vmatpush.msra.mxu2 %v1562_v8 }
  0xbd   : > { %3057 = vset.pattern.permute.xlu2 %v3104_v24 }
  0xbe   : > { %971 = vperm.xlu2 %3057, %v3243_v32  }
  0xbf   : > { %3056 = vset.pattern.permute.xlu1 %v3104_v24 }
  0xc0   : > { %1197 = vmatmul.f32.vlgmr.msra.gmra.mxu1 %v3252_v44  ;;  %1273 = vmatmul.f32.vlgmr.msrb.gmra.mxu0 %v3260_v51 }
  0xc1   : > { %1343 = vmatmul.f32.vlgmr.msrb.gmra.mxu3 %v3252_v44  ;;  %1566 = vmatpush.msra.mxu1 %v1565_v18 }
  0xc2   : > { %1638 = vmatpush.msrb.mxu0 %v1563_v12  ;;  %1712 = vmatpush.msrb.mxu3 %v1711_v20 }
  0xc3   : > { %1321 = vmatmul.f32.vlgmr.msrb.gmra.mxu2 %v3252_v44  ;;  %1445 = vperm.xlu1 %3056, %v3278_v2  }
  0xc4   : > { %1682 = vmatpush.msrb.mxu2 %v1681_v6 }
  0xc6   : > { %3059 = vset.pattern.permute.xlu2 %v3105_v25 }
  0xc7   : > { %993 = vperm.xlu2 %3059, %v3243_v32  }
  0xc8   : > { %1297 = vmatmul.f32.vlgmr.msrb.gmra.mxu1 %v3264_v56  ;;  %1542 = vmatmul.f32.vlgmr.msra.gmra.mxu0 %v1541_v22 }
  0xc9   : > { %1616 = vmatmul.f32.vlgmr.msra.gmra.mxu3 %v1539_v17  ;;  %1660 = vmatpush.msrb.mxu1 %v1535_v4 }
  0xca   : > { %1735 = vmatpush.msra.mxu0 %v1708_v9  ;;  %1806 = vmatpush.msra.mxu3 %v1681_v6  ;;  %v3355_v9 = vpop.permute.xlu2 %1369 }
  0xcb   : > { %1592 = vmatmul.f32.vlgmr.msra.gmra.mxu2 %v1538_v14  ;;  %3058 = vset.pattern.permute.xlu1 %v3105_v25 }
  0xcc   : > { %1784 = vmatpush.msra.mxu2 %v1709_v13  ;;  %1464 = vperm.xlu1 %3058, %v3278_v2  }
  0xcf   : > { %v1351_v58 = vpop.permute.xlu1 %1350  ;;  %3061 = vset.pattern.permute.xlu2 %v3113_v7 }
  0xd0   : > { %1568 = vmatmul.f32.vlgmr.msra.gmra.mxu1 %v3290_v10  ;;  %1640 = vmatmul.f32.vlgmr.msrb.gmra.mxu0 %v3290_v10 }
  0xd1   : > { %1758 = vmatpush.msra.mxu1 %v1681_v6  ;;  %1714 = vmatmul.f32.vlgmr.msrb.gmra.mxu3 %v3290_v10 }
  0xd3   : > { %1688 = vmatmul.f32.vlgmr.msrb.gmra.mxu2 %v1541_v22 }
  0xd4   : > { %3060 = vset.pattern.permute.xlu1 %v3113_v7 }
  0xd8   : > { %1662 = vmatmul.f32.vlgmr.msrb.gmra.mxu1 %v3290_v10  ;;  %1738 = vmatmul.f32.vlgmr.msra.gmra.mxu0 %v1538_v14 }
  0xd9   : > { %1808 = vmatmul.f32.vlgmr.msra.gmra.mxu3 %v3290_v10 }
  0xdb   : > { %1786 = vmatmul.f32.vlgmr.msra.gmra.mxu2 %v3290_v10 }
  0xe0   : > { %1762 = vmatmul.f32.vlgmr.msra.gmra.mxu1 %v1539_v17  ;;  %v3367_v17 = vpop.permute.xlu2 %905 }
 0x106   : > { %v3375_v18 = vpop.permute.xlu2 %927 }
 0x10f   : > { %v3381_v20 = vpop.permute.xlu2 %949 }
 0x115   : > { %v589_v26 = vpop.f32.mrf.mxu0 }
 0x118   : > { %v3387_v22 = vpop.permute.xlu2 %971 }
 0x11b   : > { %v663_v27 = vpop.f32.mrf.mxu3 }
 0x11d   : > { %v615_v28 = vpop.f32.mrf.mxu1  ;;  %v639_v29 = vpop.f32.mrf.mxu2 }
 0x11e   : > { %v616_v30 = vadd.f32 %v615_v28, %v589_v26  ;;  %v687_v33 = vpop.f32.mrf.mxu0  ;;  %v884_v26 = vpop.permute.xlu1 %883 }
 0x120   : > { %v640_v34 = vadd.f32 %v639_v29, %v616_v30 }
 0x122   : > { %v664_v35 = vadd.f32 %v663_v27, %v640_v34  ;;  %v3396_v27 = vpop.permute.xlu2 %993  ;;  %v862_v34 = vpop.permute.xlu0 %861 }
 0x124   : > { %v688_v36 = vadd.f32 %v687_v33, %v664_v35  ;;  %v761_v37 = vpop.f32.mrf.mxu3 }
 0x125   : > { %v709_v38 = vpop.f32.mrf.mxu1 }
 0x126   : > { %v3330_v39 = vadd.f32 %v709_v38, %v688_v36  ;;  %v785_v40 = vpop.f32.mrf.mxu0  ;;  %v735_v41 = vpop.f32.mrf.mxu2 }
 0x127   : > { %v762_v44 = vadd.f32 %v761_v37, %v735_v41  ;;  %v3401_v28 = vpop.permute.xlu1 %1388 }
 0x128   : > { %893 = vrot.lane.b32.xlu0 %v3330_v39, %s3106_s14  ;;  %871 = vrot.lane.b32.xlu2 %v3330_v39, %s3107_s15 }
 0x129   : > { %v786_v47 = vadd.f32 %v785_v40, %v762_v44 }
 0x12c   : > { %v855_v42 = vpop.f32.mrf.mxu3 }
 0x12d   : > { %v809_v43 = vpop.f32.mrf.mxu1 }
 0x12e   : > { %v1078_v45 = vpop.f32.mrf.mxu0  ;;  %v833_v46 = vpop.f32.mrf.mxu2  ;;  %v810_v50 = vadd.f32 %v809_v43, %v786_v47 }
 0x12f   : > { %v3407_v33 = vpop.permute.xlu1 %1407 }
 0x130   : > { %915 = vrot.lane.b32.xlu0 %v3330_v39, %s3108_s16  ;;  %956 = vrot.lane.b32.xlu2 %v3330_v39, %s3109_s17  ;;  %v834_v55 = vadd.f32 %v833_v46, %v810_v50 }
 0x132   : > { %v3344_v61 = vadd.f32 %v855_v42, %v834_v55 }
 0x134   : > { %v1152_v49 = vpop.f32.mrf.mxu3 }
 0x135   : > { %v1104_v48 = vpop.f32.mrf.mxu1 }
 0x136   : > { %v1105_v51 = vadd.f32 %v1104_v48, %v1078_v45  ;;  %v1128_v52 = vpop.f32.mrf.mxu2  ;;  %v1176_v53 = vpop.f32.mrf.mxu0 }
 0x137   : > { %v3413_v36 = vpop.permute.xlu1 %1426 }
 0x138   : > { %v1129_v54 = vadd.f32 %v1128_v52, %v1105_v51  ;;  %937 = vrot.lane.b32.xlu0 %v3330_v39, %s3110_s18  ;;  %978 = vrot.lane.b32.xlu2 %v3330_v39, %s3111_s19 }
 0x13a   : > { %v1153_v56 = vadd.f32 %v1152_v49, %v1129_v54 }
 0x13c   : > { %v1177_v57 = vadd.f32 %v1176_v53, %v1153_v56  ;;  %v1250_v60 = vpop.f32.mrf.mxu3  ;;  %v864_v56 = vmul.f32 %v862_v34, %v3330_v39 }
 0x13d   : > { %v1198_v59 = vpop.f32.mrf.mxu1 }
 0x13e   : > { %v1199_v62 = vadd.f32 %v1198_v59, %v1177_v57  ;;  %v1224_v63 = vpop.f32.mrf.mxu2  ;;  %v1274_v0 = vpop.f32.mrf.mxu0  ;;  %v865_v57 = vmul.f32 %v862_v34, %v3344_v61 }
 0x13f   : > { %v1251_v4 = vadd.f32 %v1250_v60, %v1224_v63  ;;  %v3419_v38 = vpop.permute.xlu1 %1445 }
 0x140   : > { %v3346_v3 = vmul.f32 %v1351_v58, %v1199_v62  ;;  %1360 = vrot.lane.b32.xlu1 %v1199_v62, %s3107_s15  ;;  %958 = vrot.lane.b32.xlu0 %v3344_v61, %s3109_s17 }
 0x141   : > { %1000 = vrot.lane.b32.xlu2 %v3330_v39, %s3112_s20  ;;  %v1275_v6 = vadd.f32 %v1274_v0, %v1251_v4 }
 0x144   : > { %v1344_v13 = vpop.f32.mrf.mxu3 }
 0x145   : > { %v1298_v8 = vpop.f32.mrf.mxu1 }
 0x146   : > { %v1299_v10 = vadd.f32 %v1298_v8, %v1275_v6  ;;  %v1322_v12 = vpop.f32.mrf.mxu2 }
 0x147   : > { %v3441_v47 = vpop.permute.xlu1 %1464 }
 0x148   : > { %1379 = vrot.lane.b32.xlu1 %v1199_v62, %s3106_s14  ;;  %980 = vrot.lane.b32.xlu0 %v3344_v61, %s3111_s19  ;;  %v1323_v14 = vadd.f32 %v1322_v12, %v1299_v10 }
 0x149   : > { %867 = vrot.lane.b32.xlu2 %v3344_v61, %s3107_s15 }
 0x14a   : > { %v1345_v15 = vadd.f32 %v1344_v13, %v1323_v14 }
 0x14c   : > { %v3362_v16 = vmul.f32 %v1351_v58, %v1345_v15 }
 0x150   : > { %1398 = vrot.lane.b32.xlu1 %v1199_v62, %s3108_s16  ;;  %1002 = vrot.lane.b32.xlu0 %v3344_v61, %s3112_s20 }
 0x151   : > { %890 = vrot.lane.b32.xlu2 %v3344_v61, %s3106_s14 }
 0x158   : > { %1417 = vrot.lane.b32.xlu1 %v1199_v62, %s3110_s18  ;;  %1433 = vrot.lane.b32.xlu0 %v1199_v62, %s3109_s17 }
 0x159   : > { %912 = vrot.lane.b32.xlu2 %v3344_v61, %s3108_s16 }
 0x160   : > { %1356 = vrot.lane.b32.xlu1 %v1345_v15, %s3107_s15  ;;  %1452 = vrot.lane.b32.xlu0 %v1199_v62, %s3111_s19 }
 0x161   : > { %934 = vrot.lane.b32.xlu2 %v3344_v61, %s3110_s18 }
 0x168   : > { %1483 = vperm.xlu1 %3060, %v3278_v2   ;;  %1471 = vrot.lane.b32.xlu0 %v1199_v62, %s3112_s20 }
 0x169   : > { %1395 = vrot.lane.b32.xlu2 %v1345_v15, %s3108_s16 }
 0x170   : > { %1435 = vrot.lane.b32.xlu1 %v1345_v15, %s3109_s17  ;;  %1490 = vrot.lane.b32.xlu0 %v1199_v62, %s3115_s21 }
 0x171   : > { %1022 = vrot.lane.b32.xlu2 %v3330_v39, %s3115_s21  ;;  %3063 = vset.pattern.permute.xlu1 %v3114_v21 }
 0x178   : > { %1454 = vrot.lane.b32.xlu1 %v1345_v15, %s3111_s19  ;;  %1376 = vrot.lane.b32.xlu0 %v1345_v15, %s3106_s14 }
 0x179   : > { %1015 = vperm.xlu2 %3061, %v3243_v32  }
 0x180   : > { %1473 = vrot.lane.b32.xlu1 %v1345_v15, %s3112_s20  ;;  %1414 = vrot.lane.b32.xlu0 %v1345_v15, %s3110_s18 }
 0x181   : > { %3070 = vset.pattern.permute.xlu2 %v3104_v24 }
 0x182   : > { %v872_v29 = vpop.permute.xlu2 %871 }
 0x188   : > { %1492 = vrot.lane.b32.xlu1 %v1345_v15, %s3115_s21  ;;  %1024 = vrot.lane.b32.xlu0 %v3344_v61, %s3115_s21 }
 0x18a   : > { %v957_v30 = vpop.permute.xlu2 %956 }
 0x190   : > { %1037 = vperm.xlu1 %3063, %v3243_v32   ;;  %1502 = vperm.xlu0 %3062, %v3278_v2   ;;  %v3424_v32 = vld [vmem:[%s3761_s12] sm:$0xff]  ;;  %v3429_v2 = vld [vmem:[%s3761_s12 + $0x8] sm:$0xff] }
 0x191   : > { %v3435_v41 = vperm.slane %v3429_v2, 0  ;;  %v3444_v48 = vperm.slane %v3424_v32, 1  ;;  %v3447_v49 = vperm.slane %v3429_v2, 1  ;;  %v3458_v8 = vperm.slane %v3424_v32, 2 }
 0x192   : > { %v3411_v35 = vpop.permute.xlu2 %978  ;;  %v3461_v39 = vperm.slane %v3429_v2, 2  ;;  %v3470_v34 = vperm.slane %v3424_v32, 4 }
 0x198   : > { %3065 = vset.pattern.permute.xlu1 %v3100_v31  ;;  %3064 = vset.pattern.permute.xlu0 %v3097_v1  ;;  %v3432_v31 = vperm.slane %v3424_v32, 0 }
 0x19a   : > { %v894_v24 = vpop.permute.xlu0 %893 }
 0x19b   : > { %v3417_v37 = vpop.permute.xlu2 %1000 }
 0x1a2   : > { %v916_v40 = vpop.permute.xlu0 %915 }
 0x1a3   : > { %v868_v42 = vpop.permute.xlu2 %867 }
 0x1a4   : > { %v874_v43 = vsel %vm873_vm9, %v872_v29, %v868_v42  ;;  %v877_v44 = vsel %vm873_vm9, %v868_v42, %v872_v29 }
 0x1a5   : > { %v880_v45 = vmul.f32 %v3432_v31, %v877_v44  ;;  %v881_v46 = vmul.f32 %v3435_v41, %v874_v43 }
 0x1a7   : > { %v886_v51 = vmul.f32 %v884_v26, %v880_v45  ;;  %v887_v52 = vmul.f32 %v884_v26, %v881_v46  ;;  %v3484_v46 = vperm.slane %v3424_v32, 3 }
 0x1a9   : > { %v888_v60 = vadd.f32 %v886_v51, %v864_v56  ;;  %v889_v62 = vadd.f32 %v887_v52, %v865_v57  ;;  %v3487_v51 = vperm.slane %v3429_v2, 3 }
 0x1aa   : > { %v938_v50 = vpop.permute.xlu0 %937 }
 0x1ab   : > { %v891_v53 = vpop.permute.xlu2 %890 }
 0x1ac   : > { %v896_v54 = vsel %vm895_vm10, %v894_v24, %v891_v53  ;;  %v899_v55 = vsel %vm895_vm10, %v891_v53, %v894_v24  ;;  %v3473_v24 = vperm.slane %v3429_v2, 4 }
 0x1ad   : > { %v902_v58 = vmul.f32 %v3444_v48, %v899_v55  ;;  %v903_v59 = vmul.f32 %v3447_v49, %v896_v54 }
 0x1af   : > { %v908_v63 = vmul.f32 %v3367_v17, %v902_v58  ;;  %v909_v0 = vmul.f32 %v3367_v17, %v903_v59 }
 0x1b1   : > { %v910_v4 = vadd.f32 %v908_v63, %v888_v60  ;;  %v911_v6 = vadd.f32 %v909_v0, %v889_v62 }
 0x1b2   : > { %v1361_v61 = vpop.permute.xlu1 %1360  ;;  %v959_v10 = vpop.permute.xlu0 %958 }
 0x1b3   : > { %v961_v12 = vsel %vm960_vm11, %v957_v30, %v959_v10  ;;  %v965_v13 = vsel %vm960_vm11, %v959_v10, %v957_v30  ;;  %v913_v14 = vpop.permute.xlu2 %912  ;;  %v3478_v30 = vperm.slane %v3424_v32, 5 }
 0x1b4   : > { %v918_v15 = vsel %vm917_vm12, %v916_v40, %v913_v14  ;;  %v921_v17 = vsel %vm917_vm12, %v913_v14, %v916_v40  ;;  %v3481_v40 = vperm.slane %v3429_v2, 5  ;;  %v968_v60 = vmul.f32 %v3470_v34, %v961_v12 }
 0x1b5   : > { %v924_v26 = vmul.f32 %v3458_v8, %v921_v17  ;;  %v925_v29 = vmul.f32 %v3461_v39, %v918_v15  ;;  %v969_v62 = vmul.f32 %v3473_v24, %v965_v13 }
 0x1b6   : > { %v974_v14 = vmul.f32 %v3387_v22, %v968_v60 }
 0x1b7   : > { %v930_v42 = vmul.f32 %v3375_v18, %v924_v26  ;;  %v931_v43 = vmul.f32 %v3375_v18, %v925_v29 }
 0x1b9   : > { %v932_v44 = vadd.f32 %v930_v42, %v910_v4  ;;  %v933_v45 = vadd.f32 %v931_v43, %v911_v6 }
 0x1ba   : > { %v1380_v52 = vpop.permute.xlu1 %1379  ;;  %v981_v53 = vpop.permute.xlu0 %980 }
 0x1bb   : > { %v983_v18 = vsel %vm982_vm13, %v3411_v35, %v981_v53  ;;  %v987_v54 = vsel %vm982_vm13, %v981_v53, %v3411_v35  ;;  %v935_v55 = vpop.permute.xlu2 %934 }
 0x1bc   : > { %v990_v56 = vmul.f32 %v3478_v30, %v983_v18  ;;  %v991_v57 = vmul.f32 %v3481_v40, %v987_v54  ;;  %v940_v58 = vsel %vm939_vm14, %v938_v50, %v935_v55  ;;  %v943_v59 = vsel %vm939_vm14, %v935_v55, %v938_v50 }
 0x1bd   : > { %v946_v63 = vmul.f32 %v3484_v46, %v943_v59  ;;  %v947_v0 = vmul.f32 %v3487_v51, %v940_v58  ;;  %v975_v50 = vmul.f32 %v3387_v22, %v969_v62 }
 0x1be   : > { %v996_v4 = vmul.f32 %v3396_v27, %v990_v56  ;;  %v997_v35 = vmul.f32 %v3396_v27, %v991_v57 }
 0x1bf   : > { %v952_v6 = vmul.f32 %v3381_v20, %v946_v63  ;;  %v953_v10 = vmul.f32 %v3381_v20, %v947_v0 }
 0x1c1   : > { %v954_v15 = vadd.f32 %v952_v6, %v932_v44  ;;  %v955_v12 = vadd.f32 %v953_v10, %v933_v45 }
 0x1c2   : > { %v1399_v17 = vpop.permute.xlu1 %1398  ;;  %v1003_v13 = vpop.permute.xlu0 %1002 }
 0x1c3   : > { %v977_v26 = vadd.f32 %v975_v50, %v955_v12  ;;  %v976_v29 = vadd.f32 %v974_v14, %v954_v15  ;;  %v1396_v22 = vpop.permute.xlu2 %1395 }
 0x1c4   : > { %v1400_v63 = vsel %vm917_vm12, %v1399_v17, %v1396_v22  ;;  %v1403_v0 = vsel %vm917_vm12, %v1396_v22, %v1399_v17 }
 0x1c5   : > { %v3507_v42 = vadd.f32 %v997_v35, %v977_v26  ;;  %v3509_v43 = vadd.f32 %v996_v4, %v976_v29  ;;  %v1404_v50 = vmul.f32 %v1403_v0, %v3458_v8  ;;  %v1405_v15 = vmul.f32 %v1400_v63, %v3461_v39 }
 0x1c7   : > { %v1410_v22 = vmul.f32 %v3407_v33, %v1404_v50 }
 0x1ca   : > { %v1418_v53 = vpop.permute.xlu1 %1417  ;;  %v1434_v27 = vpop.permute.xlu0 %1433 }
 0x1cb   : > { %v1023_v26 = vpop.permute.xlu2 %1022 }
 0x1d2   : > { %v1357_v18 = vpop.permute.xlu1 %1356  ;;  %v1453_v54 = vpop.permute.xlu0 %1452 }
 0x1d3   : > { %v1362_v44 = vsel %vm873_vm9, %v1361_v61, %v1357_v18  ;;  %v1365_v45 = vsel %vm873_vm9, %v1357_v18, %v1361_v61 }
 0x1d4   : > { %v1366_v58 = vmul.f32 %v1365_v45, %v3432_v31  ;;  %v1367_v59 = vmul.f32 %v1362_v44, %v3435_v41  ;;  %v1411_v44 = vmul.f32 %v3407_v33, %v1405_v15 }
 0x1d6   : > { %v1372_v6 = vmul.f32 %v3355_v9, %v1366_v58  ;;  %v1373_v10 = vmul.f32 %v3355_v9, %v1367_v59 }
 0x1d8   : > { %v1374_v29 = vadd.f32 %v1372_v6, %v3346_v3 }
 0x1da   : > { %v3511_v55 = vpop.permute.xlu1 %1483  ;;  %v1472_v20 = vpop.permute.xlu0 %1471 }
 0x1e2   : > { %v1436_v56 = vpop.permute.xlu1 %1435  ;;  %v3513_v57 = vpop.permute.xlu0 %1490 }
 0x1e3   : > { %v1437_v18 = vsel %vm960_vm11, %v1434_v27, %v1436_v56  ;;  %v1441_v9 = vsel %vm960_vm11, %v1436_v56, %v1434_v27 }
 0x1e4   : > { %v1443_v63 = vmul.f32 %v1441_v9, %v3473_v24 }
 0x1ea   : > { %v1455_v60 = vpop.permute.xlu1 %1454  ;;  %v1377_v62 = vpop.permute.xlu0 %1376 }
 0x1eb   : > { %v1381_v4 = vsel %vm895_vm10, %v1380_v52, %v1377_v62  ;;  %v1384_v35 = vsel %vm895_vm10, %v1377_v62, %v1380_v52  ;;  %v1375_v52 = vadd.f32 %v1373_v10, %v3362_v16  ;;  %v1456_v0 = vsel %vm982_vm13, %v1453_v54, %v1455_v60 }
 0x1ec   : > { %v1385_v61 = vmul.f32 %v1384_v35, %v3444_v48  ;;  %v1386_v14 = vmul.f32 %v1381_v4, %v3447_v49  ;;  %v1460_v27 = vsel %vm982_vm13, %v1455_v60, %v1453_v54  ;;  %v3546_v4 = vperm.slane %v3424_v32, 6 }
 0x1ed   : > { %v3549_v35 = vperm.slane %v3429_v2, 6  ;;  %v1009_v54 = vsel %vm1004_vm15, %v1003_v13, %v3417_v37  ;;  %v1461_v60 = vmul.f32 %v1456_v0, %v3478_v30  ;;  %v1462_v50 = vmul.f32 %v1460_v27, %v3481_v40 }
 0x1ee   : > { %v1391_v12 = vmul.f32 %v3401_v28, %v1385_v61  ;;  %v1392_v17 = vmul.f32 %v3401_v28, %v1386_v14  ;;  %v1442_v28 = vmul.f32 %v1437_v18, %v3470_v34  ;;  %v1005_v14 = vsel %vm1004_vm15, %v3417_v37, %v1003_v13 }
 0x1ef   : > { %v1012_v9 = vmul.f32 %v3546_v4, %v1005_v14 }
 0x1f0   : > { %v1393_v45 = vadd.f32 %v1391_v12, %v1374_v29  ;;  %v1394_v58 = vadd.f32 %v1392_v17, %v1375_v52  ;;  %v1448_v15 = vmul.f32 %v3419_v38, %v1442_v28  ;;  %v1449_v12 = vmul.f32 %v3419_v38, %v1443_v63  ;;  %v1016_v52 = vpop.permute.xlu2 %1015 }
 0x1f1   : > { %v1018_v38 = vmul.f32 %v1016_v52, %v1012_v9 }
 0x1f2   : > { %v1474_v59 = vpop.permute.xlu1 %1473  ;;  %v1415_v62 = vpop.permute.xlu0 %1414  ;;  %v1412_v6 = vadd.f32 %v1410_v22, %v1393_v45  ;;  %v1413_v10 = vadd.f32 %v1411_v44, %v1394_v58  ;;  %v1013_v22 = vmul.f32 %v3549_v35, %v1009_v54  ;;  %v1467_v58 = vmul.f32 %v3441_v47, %v1461_v60 }
 0x1f3   : > { %v1419_v3 = vsel %vm939_vm14, %v1418_v53, %v1415_v62  ;;  %v1422_v16 = vsel %vm939_vm14, %v1415_v62, %v1418_v53  ;;  %v1475_v18 = vsel %vm1004_vm15, %v1472_v20, %v1474_v59  ;;  %v1468_v62 = vmul.f32 %v3441_v47, %v1462_v50 }
 0x1f4   : > { %v1423_v56 = vmul.f32 %v1422_v16, %v3484_v46  ;;  %v1424_v33 = vmul.f32 %v1419_v3, %v3487_v51  ;;  %v1019_v28 = vmul.f32 %v1016_v52, %v1013_v22  ;;  %v1480_v63 = vmul.f32 %v1475_v18, %v3546_v4 }
 0x1f5   : > { %v1020_v14 = vadd.f32 %v1018_v38, %v3509_v43  ;;  %v1569_v43 = vpop.f32.mrf.mxu1 }
 0x1f6   : > { %v1429_v61 = vmul.f32 %v3413_v36, %v1423_v56  ;;  %v1430_v53 = vmul.f32 %v3413_v36, %v1424_v33  ;;  %v1479_v36 = vsel %vm1004_vm15, %v1474_v59, %v1472_v20  ;;  %v3570_v20 = vperm.slane %v3424_v32, 7 }
 0x1f7   : > { %v1481_v3 = vmul.f32 %v1479_v36, %v3549_v35  ;;  %v3573_v59 = vperm.slane %v3429_v2, 7 }
 0x1f8   : > { %v1431_v17 = vadd.f32 %v1429_v61, %v1412_v6  ;;  %v1432_v29 = vadd.f32 %v1430_v53, %v1413_v10  ;;  %v1486_v6 = vmul.f32 %v3511_v55, %v1480_v63  ;;  %v1593_v63 = vpop.f32.mrf.mxu2 }
 0x1f9   : > { %v1487_v32 = vmul.f32 %v3511_v55, %v1481_v3  ;;  %v1617_v3 = vpop.f32.mrf.mxu3 }
 0x1fa   : > { %v1450_v37 = vadd.f32 %v1448_v15, %v1431_v17  ;;  %v1451_v13 = vadd.f32 %v1449_v12, %v1432_v29  ;;  %v1493_v44 = vpop.permute.xlu1 %1492  ;;  %v1025_v45 = vpop.permute.xlu0 %1024 }
 0x1fb   : > { %v1494_v27 = vsel %vm1026_vm1, %v3513_v57, %v1493_v44  ;;  %v1498_v47 = vsel %vm1026_vm1, %v1493_v44, %v3513_v57  ;;  %v1027_v56 = vsel %vm1026_vm1, %v1023_v26, %v1025_v45  ;;  %v1031_v33 = vsel %vm1026_vm1, %v1025_v45, %v1023_v26  ;;  %v1543_v29 = vpop.f32.mrf.mxu0 }
 0x1fc   : > { %v1469_v16 = vadd.f32 %v1467_v58, %v1450_v37  ;;  %v1470_v0 = vadd.f32 %v1468_v62, %v1451_v13  ;;  %v1499_v10 = vmul.f32 %v1494_v27, %v3570_v20  ;;  %v1500_v2 = vmul.f32 %v1498_v47, %v3573_v59 }
 0x1fd   : > { %v1034_v61 = vmul.f32 %v3570_v20, %v1027_v56  ;;  %v1035_v53 = vmul.f32 %v3573_v59, %v1031_v33  ;;  %v1021_v57 = vadd.f32 %v1019_v28, %v3507_v42  ;;  %v1570_v27 = vadd.f32 %v1569_v43, %v1543_v29 }
 0x1fe   : > { %v1488_v50 = vadd.f32 %v1486_v6, %v1469_v16  ;;  %v1489_v26 = vadd.f32 %v1487_v32, %v1470_v0  ;;  %v1663_v0 = vpop.f32.mrf.mxu1  ;;  %v2306_v6 = vld [vmem:[%s3758_s9] sm:$0xf] }
 0x1ff   : > { %v1594_v47 = vadd.f32 %v1593_v63, %v1570_v27  ;;  %2309 = vperm.xlu0 %3064, %v2306_v6  }
 0x200   : > { %v1689_v56 = vpop.f32.mrf.mxu2 }
 0x201   : > { %v1715_v33 = vpop.f32.mrf.mxu3 }
 0x202   : > { %v1038_v54 = vpop.permute.xlu1 %1037  ;;  %v1503_v60 = vpop.permute.xlu0 %1502  ;;  %v1716_v32 = vadd.f32 %v1715_v33, %v1689_v56 }
 0x203   : > { %v1040_v15 = vmul.f32 %v1038_v54, %v1034_v61  ;;  %v1041_v12 = vmul.f32 %v1038_v54, %v1035_v53  ;;  %v1505_v17 = vmul.f32 %v1503_v60, %v1499_v10  ;;  %v1506_v55 = vmul.f32 %v1503_v60, %v1500_v2  ;;  %v1641_v16 = vpop.f32.mrf.mxu0 }
 0x204   : > { %v1618_v53 = vadd.f32 %v1617_v3, %v1594_v47 }
 0x205   : > { %v3589_v52 = vadd.f32 %v1040_v15, %v1020_v14  ;;  %v3591_v18 = vadd.f32 %v1041_v12, %v1021_v57  ;;  %v3593_v36 = vadd.f32 %v1505_v17, %v1488_v50  ;;  %v3595_v9 = vadd.f32 %v1506_v55, %v1489_v26 }
 0x206   : > { %v1763_v61 = vpop.f32.mrf.mxu1  ;;  %v1642_v57 = vadd.f32 %v1641_v16, %v1618_v53 }
 0x207   : > { %v1994_v42 = vmul.f32 %v3593_v36, %v3593_v36  ;;  %v1995_v22 = vmul.f32 %v3595_v9, %v3595_v9  ;;  %v1974_v37 = vmul.f32 %v3589_v52, %v3589_v52  ;;  %v1975_v13 = vmul.f32 %v3591_v18, %v3591_v18  ;;  %3067 = vset.pattern.permute.xlu0 %v3101_v11  ;;  %v3632_v11 = vld [vmem:[%s3757_s8] sm:$0xf] }
 0x208   : > { %v1787_v54 = vpop.f32.mrf.mxu2  ;;  %v3613_v26 = vadd.f32 %v1663_v0, %v1642_v57 }
 0x209   : > { %v1996_v44 = vsel %vm452_vm0, %v1994_v42, 0.0  ;;  %v1997_v45 = vsel %vm452_vm0, %v1995_v22, 0.0  ;;  %v1976_v58 = vsel %vm452_vm0, %v1974_v37, 0.0  ;;  %v1977_v62 = vsel %vm452_vm0, %v1975_v13, 0.0  ;;  %v1809_v60 = vpop.f32.mrf.mxu3 }
 0x20a   : > { %v1998_v38 = vadd.f32 %v1997_v45, %v1996_v44  ;;  %v1978_v28 = vadd.f32 %v1977_v62, %v1976_v58 }
 0x20b   : > { %v1739_v10 = vpop.f32.mrf.mxu0 }
 0x20c   : > { %1999 = vadd.xlane.f32.xlu2 %v1998_v38  ;;  %1979 = vadd.xlane.f32.xlu1 %v1978_v28  ;;  %v1740_v2 = vadd.f32 %v1739_v10, %v1716_v32 }
 0x20e   : > { %v1764_v14 = vadd.f32 %v1763_v61, %v1740_v2 }
 0x210   : > { %v1788_v50 = vadd.f32 %v1787_v54, %v1764_v14 }
 0x212   : > { %v3615_v15 = vadd.f32 %v1809_v60, %v1788_v50 }
 0x214   : > { %1841 = vrot.lane.b32.xlu0 %v3615_v15, %s3106_s14 }
 0x21c   : > { %1860 = vrot.lane.b32.xlu0 %v3615_v15, %s3108_s16 }
 0x224   : > { %1821 = vrot.lane.b32.xlu2 %v3615_v15, %s3107_s15  ;;  %1853 = vperm.xlu0 %3067, %v3632_v11  }
 0x225   : > { %1825 = vrot.lane.b32.xlu1 %v3613_v26, %s3107_s15 }
 0x22c   : > { %1879 = vrot.lane.b32.xlu2 %v3615_v15, %s3110_s18  ;;  %3069 = vset.pattern.permute.xlu0 %v3103_v23 }
 0x22d   : > { %1844 = vrot.lane.b32.xlu1 %v3613_v26, %s3106_s14 }
 0x234   : > { %1917 = vrot.lane.b32.xlu2 %v3613_v26, %s3111_s19 }
 0x235   : > { %1815 = vperm.xlu1 %3065, %v3632_v11  }
 0x23c   : > { %1910 = vperm.xlu2 %3070, %v3632_v11  }
 0x23d   : > { %3066 = vset.pattern.permute.xlu1 %v3097_v1 }
 0x23e   : > { %1834 = vperm.xlu1 %3066, %v3632_v11  }
 0x244   : > { %3071 = vset.pattern.permute.xlu2 %v3105_v25 }
 0x245   : > { %1929 = vperm.xlu2 %3071, %v3632_v11  }
 0x246   : > { %1863 = vrot.lane.b32.xlu1 %v3613_v26, %s3108_s16 }
 0x247   : > { %3068 = vset.pattern.permute.xlu1 %v3102_v19 }
 0x24d   : > { %3072 = vset.pattern.permute.xlu2 %v3113_v7 }
 0x24e   : > { %1882 = vrot.lane.b32.xlu1 %v3613_v26, %s3110_s18 }
 0x256   : > { %1872 = vperm.xlu1 %3068, %v3632_v11  }
 0x25e   : > { %1900 = vrot.lane.b32.xlu1 %v3615_v15, %s3109_s17 }
 0x25f   : > { %3073 = vset.pattern.permute.xlu1 %v3114_v21 }
 0x266   : > { %1919 = vrot.lane.b32.xlu1 %v3615_v15, %s3111_s19 }
 0x26e   : > { %1936 = vrot.lane.b32.xlu1 %v3613_v26, %s3112_s20 }
 0x271   : > { %v3661_v62 = vpop.permute.xlu0 %2309 }
 0x276   : > { %1955 = vrot.lane.b32.xlu1 %v3613_v26, %s3115_s21 }
 0x27e   : > { %1967 = vperm.xlu1 %3073, %v3632_v11  }
 0x27f   : > { %v2000_v19 = vpop.xlane.xlu2 %1999  ;;  %v1980_v23 = vpop.xlane.xlu1 %1979 }
 0x280   : > { %v2001_v25 = vmax.f32 %v2000_v19, 1e-24  ;;  %v1981_v7 = vmax.f32 %v1980_v23, 1e-24 }
 0x282   : > { %3081 = vrsqrt.f32 %v2001_v25  ;;  %vm2008_vm4 = vweird.f32 %v2001_v25  ;;  %vm1988_vm6 = vweird.f32 %v1981_v7 }
 0x283   : > { %3083 = vrsqrt.f32 %v1981_v7 }
 0x288   : > { %v3082_v12 = vpop.eup %3081 }
 0x289   : > { %v3084_v17 = vpop.eup %3083  ;;  %v2003_v21 = vmul.f32 %v3082_v12, %v2001_v25  ;;  %vm2009_vm2 = vweird.f32 %v3082_v12 }
 0x28a   : > { %v1983_v55 = vmul.f32 %v3084_v17, %v1981_v7  ;;  %vm1989_vm3 = vweird.f32 %v3084_v17  ;;  %vm2010_vm5 = vmor %vm2008_vm4, %vm2009_vm2 }
 0x28b   : > { %v2004_v29 = vmul.f32 %v3082_v12, %v2003_v21  ;;  %vm1990_vm7 = vmor %vm1988_vm6, %vm1989_vm3 }
 0x28c   : > { %v1984_v43 = vmul.f32 %v3084_v17, %v1983_v55  ;;  %v1822_v55 = vpop.permute.xlu2 %1821 }
 0x28d   : > { %v2005_v42 = vmul.f32 0.5, %v2004_v29 }
 0x28e   : > { %v1985_v22 = vmul.f32 0.5, %v1984_v43 }
 0x28f   : > { %v2006_v37 = vsub.f32 1.5, %v2005_v42 }
 0x290   : > { %v1986_v13 = vsub.f32 1.5, %v1985_v22 }
 0x291   : > { %v2007_v44 = vmul.f32 %v3082_v12, %v2006_v37 }
 0x292   : > { %v1987_v45 = vmul.f32 %v3084_v17, %v1986_v13 }
 0x293   : > { %v2011_v58 = vsel %vm2010_vm5, %v3082_v12, %v2007_v44 }
 0x294   : > { %v2012_v38 = vmul.f32 %v2011_v58, %v3593_v36  ;;  %v2013_v28 = vmul.f32 %v2011_v58, %v3595_v9  ;;  %v1991_v63 = vsel %vm1990_vm7, %v3084_v17, %v1987_v45 }
 0x295   : > { %v1992_v3 = vmul.f32 %v1991_v63, %v3589_v52  ;;  %v1993_v16 = vmul.f32 %v1991_v63, %v3591_v18  ;;  %v1842_v52 = vpop.permute.xlu0 %1841 }
 0x296   : > { %v2029_v0 = vand.u32 4294901760, %v2012_v38  ;;  %v2175_v27 = vand.u32 4294901760, %v2013_v28 }
 0x297   : > { %v2031_v47 = vand.u32 4294901760, %v1992_v3  ;;  %v2177_v56 = vand.u32 4294901760, %v1993_v16  ;;  %v1826_v33 = vpop.permute.xlu1 %1825 }
 0x298   : > { %2030 = vmatpush.xpose.msrb.mxu0 %v2029_v0  ;;  %2106 = vmatpush.xpose.msrb.mxu3 %v2029_v0  ;;  %v2056_v6 = vsub.f32 %v2012_v38, %v2029_v0  ;;  %v2202_v32 = vsub.f32 %v2013_v28, %v2175_v27  ;;  %v1827_v29 = vsel %vm873_vm9, %v1826_v33, %v1822_v55 }
 0x299   : > { %v2032_v10 = vsub.f32 %v1992_v3, %v2031_v47  ;;  %v2178_v2 = vsub.f32 %v1993_v16, %v2177_v56  ;;  %v1830_v43 = vsel %vm873_vm9, %v1822_v55, %v1826_v33  ;;  %v1832_v13 = vmul.f32 %v1827_v29, %v3435_v41 }
 0x29a   : > { %2083 = vmatpush.xpose.msrb.mxu2 %v2056_v6  ;;  %v2057_v36 = vand.u32 4294901760, %v2056_v6  ;;  %v2203_v61 = vand.u32 4294901760, %v2202_v32  ;;  %v1831_v37 = vmul.f32 %v1830_v43, %v3432_v31  ;;  %vm2313_vm9 = vcmask 27648  }
 0x29b   : > { %v2033_v9 = vand.u32 4294901760, %v2032_v10  ;;  %v2179_v53 = vand.u32 4294901760, %v2178_v2 }
 0x29c   : > { %2132 = vmatpush.xpose.msra.mxu0 %v2057_v36  ;;  %v2058_v18 = vsub.f32 %v2056_v6, %v2057_v36  ;;  %v2204_v14 = vsub.f32 %v2202_v32, %v2203_v61 }
 0x29d   : > { %2110 = vmatmul.f32.vlgmr.msrb.gmra.mxu3 %v2033_v9  ;;  %2086 = vmatmul.f32.vlgmr.msrb.gmra.mxu2 %v2032_v10  ;;  %v2034_v57 = vsub.f32 %v2032_v10, %v2033_v9  ;;  %v2180_v19 = vsub.f32 %v2178_v2, %v2179_v53  ;;  %v1861_v17 = vpop.permute.xlu0 %1860 }
 0x29e   : > { %2176 = vmatpush.xpose.msra.mxu2 %v2175_v27  ;;  %v2059_v54 = vand.u32 4294901760, %v2058_v18  ;;  %v2205_v60 = vand.u32 4294901760, %v2204_v14 }
 0x29f   : > { %v2035_v50 = vand.u32 4294901760, %v2034_v57  ;;  %v1845_v23 = vpop.permute.xlu1 %1844  ;;  %v2181_v12 = vand.u32 4294901760, %v2180_v19 }
 0x2a0   : > { %2060 = vmatpush.xpose.msrb.mxu1 %v2059_v54  ;;  %2206 = vmatpush.xpose.msra.mxu3 %v2205_v60  ;;  %v1846_v25 = vsel %vm895_vm10, %v1845_v23, %v1842_v52  ;;  %v1849_v7 = vsel %vm895_vm10, %v1842_v52, %v1845_v23 }
 0x2a1   : > { %2036 = vmatmul.f32.vlgmr.msrb.gmra.mxu0 %v2035_v50  ;;  %v1850_v42 = vmul.f32 %v1849_v7, %v3444_v48  ;;  %v1851_v22 = vmul.f32 %v1846_v25, %v3447_v49 }
 0x2a2   : > { %2278 = vmatpush.xpose.msrb.mxu2 %v2203_v61  ;;  %2229 = vmatpush.xpose.msrb.mxu0 %v2202_v32 }
 0x2a3   : > { %2062 = vmatmul.f32.vlgmr.msrb.gmra.mxu1 %v2031_v47 }
 0x2a4   : > { %2154 = vmatpush.xpose.msra.mxu1 %v2029_v0  ;;  %2300 = vmatpush.xpose.msrb.mxu3 %v2175_v27 }
 0x2a5   : > { %2208 = vmatmul.f32.vlgmr.msra.gmra.mxu3 %v2177_v56  ;;  %2182 = vmatmul.f32.vlgmr.msra.gmra.mxu2 %v2181_v12  ;;  %v1854_v44 = vpop.permute.xlu0 %1853 }
 0x2a6   : > { %v1856_v3 = vmul.f32 %v1854_v44, %v1850_v42  ;;  %v1857_v16 = vmul.f32 %v1854_v44, %v1851_v22 }
 0x2a7   : > { %v1816_v21 = vpop.permute.xlu1 %1815 }
 0x2a8   : > { %2252 = vmatpush.xpose.msrb.mxu1 %v2175_v27  ;;  %v1818_v45 = vmul.f32 %v1816_v21, %v3613_v26  ;;  %v1819_v58 = vmul.f32 %v1816_v21, %v3615_v15 }
 0x2a9   : > { %2134 = vmatmul.f32.vlgmr.msra.gmra.mxu0 %v2031_v47 }
 0x2ab   : > { %2156 = vmatmul.f32.vlgmr.msra.gmra.mxu1 %v2031_v47 }
 0x2ad   : > { %2302 = vmatmul.f32.vlgmr.msrb.gmra.mxu3 %v2177_v56  ;;  %2280 = vmatmul.f32.vlgmr.msrb.gmra.mxu2 %v2177_v56 }
 0x2b0   : > { %v1835_v38 = vpop.permute.xlu1 %1834 }
 0x2b1   : > { %2232 = vmatmul.f32.vlgmr.msrb.gmra.mxu0 %v2178_v2  ;;  %v1837_v28 = vmul.f32 %v1835_v38, %v1831_v37  ;;  %v1838_v63 = vmul.f32 %v1835_v38, %v1832_v13 }
 0x2b3   : > { %2256 = vmatmul.f32.vlgmr.msrb.gmra.mxu1 %v2179_v53  ;;  %v1839_v48 = vadd.f32 %v1837_v28, %v1818_v45  ;;  %v1840_v0 = vadd.f32 %v1838_v63, %v1819_v58 }
 0x2b5   : > { %v1858_v27 = vadd.f32 %v1856_v3, %v1839_v48  ;;  %v1859_v49 = vadd.f32 %v1857_v16, %v1840_v0 }
 0x2b8   : > { %v1864_v47 = vpop.permute.xlu1 %1863 }
 0x2b9   : > { %v1865_v41 = vsel %vm917_vm12, %v1864_v47, %v1861_v17  ;;  %v1868_v56 = vsel %vm917_vm12, %v1861_v17, %v1864_v47 }
 0x2ba   : > { %v1869_v33 = vmul.f32 %v1868_v56, %v3458_v8  ;;  %v1870_v6 = vmul.f32 %v1865_v41, %v3461_v39 }
 0x2c0   : > { %v3677_v31 = vpop.permute.xlu1 %1882 }
 0x2c8   : > { %v1873_v32 = vpop.permute.xlu1 %1872 }
 0x2c9   : > { %v1875_v10 = vmul.f32 %v1873_v32, %v1869_v33  ;;  %v1876_v2 = vmul.f32 %v1873_v32, %v1870_v6 }
 0x2cb   : > { %v3683_v36 = vadd.f32 %v1875_v10, %v1858_v27  ;;  %v3685_v61 = vadd.f32 %v1876_v2, %v1859_v49 }
 0x31e   : > { %v2037_v9 = vpop.f32.mrf.mxu0 }
 0x320   : > { %v2111_v53 = vpop.f32.mrf.mxu3  ;;  %v2063_v52 = vpop.f32.mrf.mxu1 }
 0x321   : > { %v2064_v18 = vadd.f32 %v2063_v52, %v2037_v9  ;;  %v2087_v14 = vpop.f32.mrf.mxu2 }
 0x323   : > { %v2088_v57 = vadd.f32 %v2087_v14, %v2064_v18 }
 0x325   : > { %v2112_v54 = vadd.f32 %v2111_v53, %v2088_v57 }
 0x326   : > { %v2135_v60 = vpop.f32.mrf.mxu0 }
 0x327   : > { %v2136_v50 = vadd.f32 %v2135_v60, %v2112_v54 }
 0x328   : > { %v2157_v19 = vpop.f32.mrf.mxu1  ;;  %v2209_v39 = vpop.f32.mrf.mxu3 }
 0x329   : > { %v2158_v8 = vadd.f32 %v2157_v19, %v2136_v50  ;;  %v2183_v23 = vpop.f32.mrf.mxu2 }
 0x32b   : > { %v2184_v25 = vadd.f32 %v2183_v23, %v2158_v8 }
 0x32d   : > { %v2210_v7 = vadd.f32 %v2209_v39, %v2184_v25 }
 0x32e   : > { %v2233_v12 = vpop.f32.mrf.mxu0 }
 0x32f   : > { %v2234_v17 = vadd.f32 %v2233_v12, %v2210_v7 }
 0x330   : > { %v2257_v21 = vpop.f32.mrf.mxu1  ;;  %v2303_v42 = vpop.f32.mrf.mxu3 }
 0x331   : > { %v2258_v55 = vadd.f32 %v2257_v21, %v2234_v17  ;;  %v2281_v29 = vpop.f32.mrf.mxu2 }
 0x333   : > { %v2282_v43 = vadd.f32 %v2281_v29, %v2258_v55 }
 0x335   : > { %v2304_v22 = vadd.f32 %v2303_v42, %v2282_v43 }
 0x337   : > { %v2312_v37 = vmul.f32 %v3661_v62, %v2304_v22  ;;  %v2320_v62 = vld [vmem:[%s3760_s11] sm:$0xf] }
 0x339   : > { %v2314_v13 = vsel %vm2313_vm9, %v2312_v37, -inf }
 0x33a   : > { %2315 = vmax.xlane.f32.xlu0 %v2314_v13 }
 0x34e   : > { %1898 = vrot.lane.b32.xlu0 %v3613_v26, %s3109_s17 }
 0x356   : > { %1891 = vperm.xlu0 %3069, %v3632_v11  }
 0x35e   : > { %1938 = vrot.lane.b32.xlu0 %v3615_v15, %s3112_s20  ;;  %s440_s20 = scalar_lea.vmem %s3762_s13, %s3016_s29 }
 0x35f   : > { %3074 = vset.pattern.permute.xlu0 %v3097_v1  ;;  %v1880_v1 = vpop.permute.xlu2 %1879 }
 0x360   : > { %v1884_v47 = vsel %vm939_vm14, %v3677_v31, %v1880_v1  ;;  %v1887_v41 = vsel %vm939_vm14, %v1880_v1, %v3677_v31 }
 0x361   : > { %v1888_v33 = vmul.f32 %v1887_v41, %v3484_v46 }
 0x366   : > { %1957 = vrot.lane.b32.xlu0 %v3615_v15, %s3115_s21  ;;  %v1901_v15 = vpop.permute.xlu1 %1900 }
 0x367   : > { %v1918_v3 = vpop.permute.xlu2 %1917 }
 0x36e   : > { %v1920_v48 = vpop.permute.xlu1 %1919 }
 0x36f   : > { %v1911_v0 = vpop.permute.xlu2 %1910  ;;  %v1921_v9 = vsel %vm982_vm13, %v1918_v3, %v1920_v48  ;;  %v1925_v31 = vsel %vm982_vm13, %v1920_v48, %v1918_v3 }
 0x370   : > { %v1926_v54 = vmul.f32 %v1921_v9, %v3478_v30  ;;  %v1927_v60 = vmul.f32 %v1925_v31, %v3481_v40 }
 0x376   : > { %v1937_v27 = vpop.permute.xlu1 %1936 }
 0x377   : > { %v1930_v56 = vpop.permute.xlu2 %1929 }
 0x378   : > { %v1933_v12 = vmul.f32 %v1930_v56, %v1927_v60 }
 0x37e   : > { %v1956_v53 = vpop.permute.xlu1 %1955 }
 0x386   : > { %v1968_v40 = vpop.permute.xlu1 %1967 }
 0x3ad   : > { %v2316_v44 = vpop.xlane.xlu0 %2315 }
 0x3ae   : > { %v2317_v45 = vsub.f32 %v2312_v37, %v2316_v44 }
 0x3b0   : > { %v2318_v58 = vmul.f32 1.442695, %v2317_v45 }
 0x3b2   : > { %3085 = vpow2.f32 %v2318_v58 }
 0x3b8   : > { %v3086_v38 = vpop.eup %3085 }
 0x3b9   : > { %v3700_v26 = vmul.f32 %v3086_v38, %v2320_v62 }
 0x3bb   : > { %v2322_v28 = vsel %vm2313_vm9, %v3700_v26, 0.0 }
 0x3bc   : > { %2323 = vadd.xlane.f32.xlu2 %v2322_v28 }
 0x3c0   : > { %v1899_v63 = vpop.permute.xlu0 %1898 }
 0x3c1   : > { %v1902_v6 = vsel %vm960_vm11, %v1899_v63, %v1901_v15  ;;  %v1906_v32 = vsel %vm960_vm11, %v1901_v15, %v1899_v63 }
 0x3c2   : > { %v1907_v52 = vmul.f32 %v1902_v6, %v3470_v34  ;;  %v1908_v18 = vmul.f32 %v1906_v32, %v3473_v24 }
 0x3c4   : > { %v1913_v50 = vmul.f32 %v1911_v0, %v1907_v52  ;;  %v1914_v19 = vmul.f32 %v1911_v0, %v1908_v18  ;;  %v2641_v18 = vld [vmem:[%s3759_s10] sm:$0xf] }
 0x3c5   : > { %v2643_v31 = vsel %vm558_vm8, %v2641_v18, 0 }
 0x3c8   : > { %v1892_v16 = vpop.permute.xlu0 %1891 }
 0x3c9   : > { %v1894_v10 = vmul.f32 %v1892_v16, %v1888_v33 }
 0x3cb   : > { %v1896_v46 = vadd.f32 %v1894_v10, %v3683_v36  ;;  %v1932_v36 = vmul.f32 %v1930_v56, %v1926_v54 }
 0x3cd   : > { %v1915_v39 = vadd.f32 %v1913_v50, %v1896_v46 }
 0x3cf   : > { %v1934_v43 = vadd.f32 %v1932_v36, %v1915_v39 }
 0x3d0   : > { %v1939_v49 = vpop.permute.xlu0 %1938 }
 0x3d1   : > { %v1940_v34 = vsel %vm1004_vm15, %v1937_v27, %v1939_v49  ;;  %v1944_v24 = vsel %vm1004_vm15, %v1939_v49, %v1937_v27 }
 0x3d2   : > { %v1945_v17 = vmul.f32 %v1940_v34, %v3546_v4  ;;  %v1946_v21 = vmul.f32 %v1944_v24, %v3549_v35 }
 0x3d4   : > { %1948 = vperm.xlu2 %3072, %v3632_v11   ;;  %v1889_v11 = vmul.f32 %v1884_v47, %v3487_v51 }
 0x3d6   : > { %v1895_v2 = vmul.f32 %v1892_v16, %v1889_v11 }
 0x3d8   : > { %v1958_v14 = vpop.permute.xlu0 %1957  ;;  %v1897_v51 = vadd.f32 %v1895_v2, %v3685_v61 }
 0x3d9   : > { %v1959_v8 = vsel %vm1026_vm1, %v1956_v53, %v1958_v14  ;;  %v1963_v23 = vsel %vm1026_vm1, %v1958_v14, %v1956_v53  ;;  %v2668_v14 = vand.u32 4294901760, %v2643_v31 }
 0x3da   : > { %v1916_v25 = vadd.f32 %v1914_v19, %v1897_v51  ;;  %v1964_v61 = vmul.f32 %v1959_v8, %v3570_v20  ;;  %v1965_v30 = vmul.f32 %v1963_v23, %v3573_v59 }
 0x3db   : > { %v2669_v60 = vsub.f32 %v2643_v31, %v2668_v14 }
 0x3dc   : > { %v1935_v42 = vadd.f32 %v1933_v12, %v1916_v25  ;;  %v1970_v13 = vmul.f32 %v1968_v40, %v1964_v61  ;;  %v1971_v45 = vmul.f32 %v1968_v40, %v1965_v30 }
 0x3dd   : > { %v2670_v8 = vand.u32 4294901760, %v2669_v60 }
 0x3df   : > { %v2671_v25 = vsub.f32 %v2669_v60, %v2670_v8 }
 0x3e1   : > { %v2672_v30 = vand.u32 4294901760, %v2671_v25 }
 0x42f   : > { %v2324_v57 = vpop.xlane.xlu2 %2323 }
 0x430   : > { %3087 = vrcp.f32 %v2324_v57  ;;  %v2336_v58 = vand.u32 2147483648, %v2324_v57  ;;  %v2334_v59 = vand.u32 2147483647, %v2324_v57  ;;  %vm2330_vm11 = vweird.f32 %v2324_v57 }
 0x432   : > { %v2337_v35 = vor.u32 1.1754944e-38, %v2336_v58  ;;  %vm2335_vm13 = vcmp.eq.f32.partialorder %v2334_v59, 8.507059e+37 }
 0x436   : > { %v3088_v7 = vpop.eup %3087 }
 0x437   : > { %v2326_v55 = vmul.f32 %v3088_v7, %v2324_v57  ;;  %v1949_v29 = vpop.permute.xlu2 %1948  ;;  %vm2331_vm10 = vweird.f32 %v3088_v7 }
 0x438   : > { %v1951_v22 = vmul.f32 %v1949_v29, %v1945_v17  ;;  %v1952_v37 = vmul.f32 %v1949_v29, %v1946_v21  ;;  %vm2332_vm12 = vmor %vm2330_vm11, %vm2331_vm10 }
 0x439   : > { %v2327_v44 = vsub.f32 1.0, %v2326_v55 }
 0x43a   : > { %v1953_v20 = vadd.f32 %v1951_v22, %v1934_v43  ;;  %v1954_v62 = vadd.f32 %v1952_v37, %v1935_v42 }
 0x43b   : > { %v2328_v38 = vmul.f32 %v3088_v7, %v2327_v44 }
 0x43c   : > { %v1972_v28 = vadd.f32 %v1970_v13, %v1953_v20  ;;  %v1973_v1 = vadd.f32 %v1971_v45, %v1954_v62 }
 0x43d   : > { %v2329_v4 = vadd.f32 %v3088_v7, %v2328_v38 }
 0x43e   : > { %v2344_v63 = vsel %vm452_vm0, %v1972_v28, 0  ;;  %v2347_v15 = vsel %vm452_vm0, %v1973_v1, 0 }
 0x43f   : > { %v2333_v3 = vsel %vm2332_vm12, %v3088_v7, %v2329_v4  ;;  %v2510_v16 = vand.u32 4294901760, %v2347_v15  ;;  %v2364_v48 = vand.u32 4294901760, %v2344_v63 }
 0x440   : > { %v2338_v0 = vsel %vm2335_vm13, %v2337_v35, %v2333_v3 }
 0x441   : > { %v2537_v27 = vsub.f32 %v2347_v15, %v2510_v16  ;;  %2365 = vmatpush.msra.mxu0 %v2364_v48  ;;  %2441 = vmatpush.msra.mxu3 %v2364_v48  ;;  %v2391_v49 = vsub.f32 %v2344_v63, %v2364_v48  ;;  %v2339_v47 = vmul.f32 %v2338_v0, %v3700_v26 }
 0x443   : > { %2418 = vmatpush.msra.mxu2 %v2391_v49  ;;  %v2392_v41 = vand.u32 4294901760, %v2391_v49  ;;  %v2341_v56 = vsel %vm558_vm8, %v2339_v47, 0  ;;  %v2538_v33 = vand.u32 4294901760, %v2537_v27 }
 0x444   : > { %v2366_v11 = vand.u32 4294901760, %v2341_v56 }
 0x445   : > { %2511 = vmatpush.msrb.mxu2 %v2510_v16  ;;  %2467 = vmatpush.msrb.mxu0 %v2392_v41  ;;  %v2393_v6 = vsub.f32 %v2391_v49, %v2392_v41  ;;  %v2539_v32 = vsub.f32 %v2537_v27, %v2538_v33 }
 0x446   : > { %v2367_v10 = vsub.f32 %v2341_v56, %v2366_v11 }
 0x447   : > { %v2394_v2 = vand.u32 4294901760, %v2393_v6  ;;  %v2540_v9 = vand.u32 4294901760, %v2539_v32 }
 0x448   : > { %2421 = vmatmul.f32.vlgmr.msra.gmra.mxu2 %v2367_v10  ;;  %v2368_v53 = vand.u32 4294901760, %v2367_v10 }
 0x449   : > { %2613 = vmatpush.msra.mxu2 %v2538_v33  ;;  %2395 = vmatpush.msra.mxu1 %v2394_v2 }
 0x44a   : > { %2541 = vmatpush.msrb.mxu3 %v2540_v9  ;;  %2397 = vmatmul.f32.vlgmr.msra.gmra.mxu1 %v2366_v11  ;;  %v2369_v26 = vsub.f32 %v2367_v10, %v2368_v53 }
 0x44b   : > { %2445 = vmatmul.f32.vlgmr.msra.gmra.mxu3 %v2368_v53  ;;  %2489 = vmatpush.msrb.mxu1 %v2364_v48 }
 0x44c   : > { %2635 = vmatpush.msra.mxu3 %v2510_v16  ;;  %v2370_v52 = vand.u32 4294901760, %v2369_v26 }
 0x44d   : > { %2587 = vmatpush.msra.mxu1 %v2510_v16 }
 0x44e   : > { %2371 = vmatmul.f32.vlgmr.msra.gmra.mxu0 %v2370_v52 }
 0x44f   : > { %2564 = vmatpush.msra.mxu0 %v2537_v27 }
 0x450   : > { %2517 = vmatmul.f32.vlgmr.msrb.gmra.mxu2 %v2370_v52 }
 0x452   : > { %2491 = vmatmul.f32.vlgmr.msrb.gmra.mxu1 %v2366_v11 }
 0x453   : > { %2543 = vmatmul.f32.vlgmr.msrb.gmra.mxu3 %v2366_v11 }
 0x456   : > { %2469 = vmatmul.f32.vlgmr.msrb.gmra.mxu0 %v2366_v11 }
 0x458   : > { %2615 = vmatmul.f32.vlgmr.msra.gmra.mxu2 %v2366_v11 }
 0x45a   : > { %2591 = vmatmul.f32.vlgmr.msra.gmra.mxu1 %v2368_v53 }
 0x45b   : > { %2637 = vmatmul.f32.vlgmr.msra.gmra.mxu3 %v2366_v11 }
 0x45e   : > { %2567 = vmatmul.f32.vlgmr.msra.gmra.mxu0 %v2367_v10 }
 0x4c7   : > { %v2398_v57 = vpop.f32.mrf.mxu1 }
 0x4cb   : > { %v2372_v46 = vpop.f32.mrf.mxu0  ;;  %v2422_v51 = vpop.f32.mrf.mxu2 }
 0x4cc   : > { %v2399_v54 = vadd.f32 %v2398_v57, %v2372_v46 }
 0x4ce   : > { %v2423_v50 = vadd.f32 %v2422_v51, %v2399_v54  ;;  %v2446_v19 = vpop.f32.mrf.mxu3 }
 0x4cf   : > { %v2492_v24 = vpop.f32.mrf.mxu1 }
 0x4d0   : > { %v2447_v34 = vadd.f32 %v2446_v19, %v2423_v50 }
 0x4d3   : > { %v2470_v23 = vpop.f32.mrf.mxu0  ;;  %v2518_v36 = vpop.f32.mrf.mxu2 }
 0x4d4   : > { %v2471_v39 = vadd.f32 %v2470_v23, %v2447_v34 }
 0x4d6   : > { %v2493_v61 = vadd.f32 %v2492_v24, %v2471_v39  ;;  %v2544_v7 = vpop.f32.mrf.mxu3 }
 0x4d7   : > { %v2545_v17 = vadd.f32 %v2544_v7, %v2518_v36  ;;  %v2592_v43 = vpop.f32.mrf.mxu1 }
 0x4d8   : > { %v2646_v12 = vsel %vm452_vm0, %v2493_v61, 0 }
 0x4d9   : > { %v2666_v40 = vand.u32 4294901760, %v2646_v12 }
 0x4db   : > { %v2693_v21 = vsub.f32 %v2646_v12, %v2666_v40  ;;  %v2568_v55 = vpop.f32.mrf.mxu0  ;;  %2667 = vmatpush.msrb.mxu0 %v2666_v40  ;;  %2743 = vmatpush.msrb.mxu3 %v2666_v40  ;;  %v2616_v37 = vpop.f32.mrf.mxu2 }
 0x4dc   : > { %v2569_v29 = vadd.f32 %v2568_v55, %v2545_v17  ;;  %2673 = vmatmul.f32.vlgmr.msrb.gmra.mxu0 %v2672_v30  ;;  %2747 = vmatmul.f32.vlgmr.msrb.gmra.mxu3 %v2670_v8 }
 0x4dd   : > { %2720 = vmatpush.msrb.mxu2 %v2693_v21  ;;  %v2694_v42 = vand.u32 4294901760, %v2693_v21 }
 0x4de   : > { %v2593_v22 = vadd.f32 %v2592_v43, %v2569_v29  ;;  %2723 = vmatmul.f32.vlgmr.msrb.gmra.mxu2 %v2669_v60  ;;  %v2638_v45 = vpop.f32.mrf.mxu3 }
 0x4df   : > { %2769 = vmatpush.msra.mxu0 %v2694_v42  ;;  %v2695_v13 = vsub.f32 %v2693_v21, %v2694_v42 }
 0x4e0   : > { %v2617_v44 = vadd.f32 %v2616_v37, %v2593_v22 }
 0x4e1   : > { %v2696_v58 = vand.u32 4294901760, %v2695_v13 }
 0x4e2   : > { %v2639_v20 = vadd.f32 %v2638_v45, %v2617_v44 }
 0x4e3   : > { %2697 = vmatpush.msrb.mxu1 %v2696_v58 }
 0x4e4   : > { %v2649_v62 = vsel %vm452_vm0, %v2639_v20, 0  ;;  %2771 = vmatmul.f32.vlgmr.msra.gmra.mxu0 %v2668_v14  ;;  %2699 = vmatmul.f32.vlgmr.msrb.gmra.mxu1 %v2668_v14 }
 0x4e5   : > { %2791 = vmatpush.msra.mxu1 %v2666_v40  ;;  %v2812_v38 = vand.u32 4294901760, %v2649_v62 }
 0x4e7   : > { %v2839_v59 = vsub.f32 %v2649_v62, %v2812_v38  ;;  %2813 = vmatpush.msra.mxu2 %v2812_v38  ;;  %2889 = vmatpush.msrb.mxu1 %v2812_v38 }
 0x4e8   : > { %2819 = vmatmul.f32.vlgmr.msra.gmra.mxu2 %v2672_v30 }
 0x4e9   : > { %2866 = vmatpush.msrb.mxu0 %v2839_v59  ;;  %v2840_v28 = vand.u32 4294901760, %v2839_v59 }
 0x4eb   : > { %2915 = vmatpush.msrb.mxu2 %v2840_v28  ;;  %v2841_v1 = vsub.f32 %v2839_v59, %v2840_v28 }
 0x4ec   : > { %2869 = vmatmul.f32.vlgmr.msrb.gmra.mxu0 %v2669_v60  ;;  %2793 = vmatmul.f32.vlgmr.msra.gmra.mxu1 %v2668_v14 }
 0x4ed   : > { %v2842_v4 = vand.u32 4294901760, %v2841_v1 }
 0x4ef   : > { %2843 = vmatpush.msra.mxu3 %v2842_v4 }
 0x4f0   : > { %2845 = vmatmul.f32.vlgmr.msra.gmra.mxu3 %v2668_v14  ;;  %2917 = vmatmul.f32.vlgmr.msrb.gmra.mxu2 %v2668_v14 }
 0x4f1   : > { %2937 = vmatpush.msrb.mxu3 %v2812_v38 }
 0x4f4   : > { %2893 = vmatmul.f32.vlgmr.msrb.gmra.mxu1 %v2670_v8 }
 0x4f8   : > { %2939 = vmatmul.f32.vlgmr.msrb.gmra.mxu3 %v2668_v14 }
 0x559   : > { %v2674_v35 = vpop.f32.mrf.mxu0 }
 0x55f   : > { %v2748_v3 = vpop.f32.mrf.mxu3 }
 0x561   : > { %v2700_v63 = vpop.f32.mrf.mxu1  ;;  %v2724_v15 = vpop.f32.mrf.mxu2 }
 0x562   : > { %v2772_v16 = vpop.f32.mrf.mxu0  ;;  %v2701_v27 = vadd.f32 %v2700_v63, %v2674_v35 }
 0x564   : > { %v2725_v49 = vadd.f32 %v2724_v15, %v2701_v27 }
 0x566   : > { %v2749_v11 = vadd.f32 %v2748_v3, %v2725_v49 }
 0x568   : > { %v2773_v2 = vadd.f32 %v2772_v16, %v2749_v11 }
 0x569   : > { %v2794_v48 = vpop.f32.mrf.mxu1 }
 0x56a   : > { %v2870_v41 = vpop.f32.mrf.mxu0  ;;  %v2795_v52 = vadd.f32 %v2794_v48, %v2773_v2 }
 0x56b   : > { %v2820_v0 = vpop.f32.mrf.mxu2 }
 0x571   : > { %v2894_v33 = vpop.f32.mrf.mxu1 }
 0x573   : > { %v2846_v47 = vpop.f32.mrf.mxu3  ;;  %v2918_v32 = vpop.f32.mrf.mxu2 }
 0x574   : > { %v2847_v56 = vadd.f32 %v2846_v47, %v2820_v0 }
 0x576   : > { %v2871_v6 = vadd.f32 %v2870_v41, %v2847_v56 }
 0x578   : > { %v2895_v10 = vadd.f32 %v2894_v33, %v2871_v6 }
 0x57a   : > { %v2919_v9 = vadd.f32 %v2918_v32, %v2895_v10 }
 0x57b   : > { %v2940_v53 = vpop.f32.mrf.mxu3 }
 0x57c   : > { %v2941_v26 = vadd.f32 %v2940_v53, %v2919_v9 }
 0x57e   : > { %v2945_v18 = vrot.slane %v2941_v26, 4 }
 0x580   : > { %v2946_v31 = vsel %vm452_vm0, %v2795_v52, %v2945_v18 }
 0x581   : > { %v2948_v14 = vadd.f32 %v2946_v31, %v3210_v5 }
 0x583   : > { %2949 = vst [vmem:[%s440_s20] sm:$0xff] %v2948_v14 }
 0x584 PF: > { %s23_s25 = sadd.s32 1, %s3095_s25  }
 0x585   : > { %p20_p4 = scmp.ge.s32.totalorder %s23_s25, 4  }
 0x587   :  { %22 = sbr.rel (!%p20_p4) target bundleno = 1 (0x1), region = 102 }

</bundles_post_ra>
